<compile_context>
chip_gen: v5e
topology: v5e:2x2
jax: 0.10.0
libtpu: 0.0.40
codegen_flags: <defaults>
</compile_context>

<pallas_src>
import jax
import jax.numpy as jnp
from jax.experimental import pallas as pl
from jax.experimental.pallas import tpu as pltpu

# ----------------------------- configuration --------------------------------
B = 2                        # real batch size
BP = 8                       # batch padded to the native sublane tile
INPUT_DIM = 32               # input_dim
E = 16                       # slot_embedding_dim
H = 128                      # rnn_hidden_dim
SH = 64                      # slot_hidden_dim
SLOT_NAMES = ("wh", "aux", "verb")
NUM_LABELS = {"wh": 6, "aux": 5, "verb": 8}
NUM_SLOTS = len(SLOT_NAMES)
NUM_LAYERS = 2               # hardcoded in the kernel (two stacked cells + highway)
XE = INPUT_DIM + E           # 48: fused [inputs, embedding] feature dim
LOGIT_PAD = 128              # lane-dense logits slab width


# ------------------------------ Pallas kernel --------------------------------
def _fused_slots_kernel(
    xe_ref,                                           # (3, BP, 48) f32
    wih0_ref, whh0_ref, b0_ref,                       # (3,48,512)bf16 (3,128,512)bf16 (3,1,512)f32
    wnl0xe_ref, wnl0h_ref, bnl0_ref, wlin0_ref,       # (3,48,128) (3,128,128) (3,1,128) (3,48,128)
    wih1_ref, whh1_ref, b1_ref,                       # (3,128,512) (3,128,512) (3,1,512)
    wsh_ref, bsh_ref, wsp_ref, bsp_ref,               # (3,128,64) (3,1,64) (3,64,128) (3,1,128)
    out_ref):                                         # (3, BP, 128) f32
  bp = xe_ref.shape[1]

  def mxdot(a, w):
    # bf16 x bf16 on the MXU, f32 accumulation.
    return jnp.dot(a.astype(jnp.bfloat16), w, preferred_element_type=jnp.float32)

  def lstm_cell(gates, c):
    # PyTorch LSTMCell gate order: input, forget, cell(g), output. All f32.
    i_g = jax.nn.sigmoid(gates[:, 0 * H:1 * H])
    f_g = jax.nn.sigmoid(gates[:, 1 * H:2 * H])
    g_g = jnp.tanh(gates[:, 2 * H:3 * H])
    o_g = jax.nn.sigmoid(gates[:, 3 * H:4 * H])
    new_c = f_g * c + i_g * g_g
    new_h = o_g * jnp.tanh(new_c)
    return new_h, new_c

  # recurrent state lives entirely in registers/VMEM across the 3 slots
  h0 = jnp.zeros((bp, H), jnp.float32)
  c0 = jnp.zeros((bp, H), jnp.float32)
  h1 = jnp.zeros((bp, H), jnp.float32)
  c1 = jnp.zeros((bp, H), jnp.float32)

  for s in range(NUM_SLOTS):            # unrolled at trace time
    xe = xe_ref[s]                      # (BP, 48) = [inputs | teacher-forced embedding]

    # ----- layer 0: LSTMCell on cat([inputs, curr_embedding]) -----
    gates0 = mxdot(xe, wih0_ref[s]) + mxdot(h0, whh0_ref[s]) + b0_ref[s]
    h0, c0 = lstm_cell(gates0, c0)
    # recurrent dropout: identity at inference time (training=False)

    # ----- layer 0 highway: gate*new_h + (1-gate)*lin(curr_input) -----
    nonlin0 = mxdot(xe, wnl0xe_ref[s]) + mxdot(h0, wnl0h_ref[s]) + bnl0_ref[s]
    g0 = jax.nn.sigmoid(nonlin0)
    cur1 = g0 * h0 + (1.0 - g0) * mxdot(xe, wlin0_ref[s])

    # ----- layer 1: LSTMCell on the layer-0 highway output -----
    gates1 = mxdot(cur1, wih1_ref[s]) + mxdot(h1, whh1_ref[s]) + b1_ref[s]
    h1, c1 = lstm_cell(gates1, c1)
    # NOTE: the layer-1 (last layer) highway output is computed-and-discarded by the
    # PyTorch module; omitted here (identical forward outputs).

    # ----- slot hidden + slot prediction (lane-dense padded logits slab) -----
    hidden = jax.nn.relu(mxdot(h1, wsh_ref[s]) + bsh_ref[s])
    out_ref[s] = mxdot(hidden, wsp_ref[s]) + bsp_ref[s]


def _call_fused(packed, xe_pad):
  vmem = pl.BlockSpec(memory_space=pltpu.MemorySpace.VMEM)
  args = (
      xe_pad,
      packed["wih0"], packed["whh0"], packed["b0"],
      packed["wnl0_xe"], packed["wnl0_h"], packed["bnl0"], packed["wlin0"],
      packed["wih1"], packed["whh1"], packed["b1"],
      packed["wsh"], packed["bsh"], packed["wsp"], packed["bsp"],
  )
  return pl.pallas_call(
      _fused_slots_kernel,
      out_shape=jax.ShapeDtypeStruct((NUM_SLOTS, BP, LOGIT_PAD), jnp.float32),
      in_specs=[vmem] * len(args),
      out_specs=vmem,
  )(*args)


# ------------------------------ full forward ---------------------------------
def forward_pallas(packed, inputs, slot_labels):
  """SlotSequenceGenerator.forward (teacher-forced), single fused Pallas kernel."""
  b = inputs.shape[0]
  # Teacher-forced step embeddings: labels are *inputs*, so these gathers run before
  # (not between) kernel launches and cannot serialize the slot chain.
  embs = [jnp.broadcast_to(packed["start_symbol"][None, :], (b, E))]
  for n in SLOT_NAMES[:-1]:
    embs.append(jnp.take(packed["embedders"][n], slot_labels[n], axis=0))
  # Fuse [inputs, embedding] once per slot (merged K=48 matmul operands).
  xe = jnp.stack([jnp.concatenate([inputs, e], axis=-1) for e in embs])  # (3, b, 48)
  xe = jnp.pad(xe, ((0, 0), (0, BP - b), (0, 0)))                        # (3, BP, 48)
  out = _call_fused(packed, xe)                                          # (3, BP, 128)
  return {n: out[i, :b, :NUM_LABELS[n]] for i, n in enumerate(SLOT_NAMES)}


# ----------------------------- weight packing ---------------------------------
def pack_params(params):
  """One-time repack: stack per-slot weights, cast weights to bf16, pad logits head."""
  wdt = jnp.bfloat16

  def stack(fn, dtype):
    return jnp.stack([jnp.asarray(fn(params["slots"][n]), dtype) for n in SLOT_NAMES])

  packed = {
      "wih0":    stack(lambda sp: sp["wih0"], wdt),                     # (3, 48, 512)
      "whh0":    stack(lambda sp: sp["whh0"], wdt),                     # (3, 128, 512)
      "b0":      stack(lambda sp: sp["b0"][None, :], jnp.float32),      # (3, 1, 512)
      "wnl0_xe": stack(lambda sp: sp["wnl0"][:XE], wdt),                # (3, 48, 128)
      "wnl0_h":  stack(lambda sp: sp["wnl0"][XE:], wdt),                # (3, 128, 128)
      "bnl0":    stack(lambda sp: sp["bnl0"][None, :], jnp.float32),    # (3, 1, 128)
      "wlin0":   stack(lambda sp: sp["wlin0"], wdt),                    # (3, 48, 128)
      "wih1":    stack(lambda sp: sp["wih1"], wdt),                     # (3, 128, 512)
      "whh1":    stack(lambda sp: sp["whh1"], wdt),                     # (3, 128, 512)
      "b1":      stack(lambda sp: sp["b1"][None, :], jnp.float32),      # (3, 1, 512)
      "wsh":     stack(lambda sp: sp["wsh"], wdt),                      # (3, 128, 64)
      "bsh":     stack(lambda sp: sp["bsh"][None, :], jnp.float32),     # (3, 1, 64)
      "wsp":     stack(lambda sp: jnp.pad(
          sp["wsp"], ((0, 0), (0, LOGIT_PAD - sp["wsp"].shape[1]))), wdt),  # (3, 64, 128)
      "bsp":     stack(lambda sp: jnp.pad(
          sp["bsp"], (0, LOGIT_PAD - sp["bsp"].shape[0]))[None, :], jnp.float32),  # (3,1,128)
      "start_symbol": params["start_symbol"],
      "embedders": params["embedders"],
  }
  return packed


# ------------------------- pure-JAX references (check) -------------------------
def forward_ref_mixed(packed, inputs, slot_labels):
  """Same math / same mixed precision as the kernel, in plain JAX (tight check)."""
  b = inputs.shape[0]

  def mxdot(a, w):
    return jnp.dot(a.astype(jnp.bfloat16), w, preferred_element_type=jnp.float32)

  def lstm(gates, c):
    i_g = jax.nn.sigmoid(gates[:, :H]); f_g = jax.nn.sigmoid(gates[:, H:2 * H])
    g_g = jnp.tanh(gates[:, 2 * H:3 * H]); o_g = jax.nn.sigmoid(gates[:, 3 * H:])
    nc = f_g * c + i_g * g_g
    return o_g * jnp.tanh(nc), nc

  embs = [jnp.broadcast_to(packed["start_symbol"][None, :], (b, E))]
  for n in SLOT_NAMES[:-1]:
    embs.append(jnp.take(packed["embedders"][n], slot_labels[n], axis=0))
  h0 = c0 = h1 = c1 = jnp.zeros((b, H), jnp.float32)
  logits = {}
  for s, n in enumerate(SLOT_NAMES):
    xe = jnp.concatenate([inputs, embs[s]], axis=-1)
    gates0 = mxdot(xe, packed["wih0"][s]) + mxdot(h0, packed["whh0"][s]) + packed["b0"][s]
    h0, c0 = lstm(gates0, c0)
    nonlin0 = (mxdot(xe, packed["wnl0_xe"][s]) + mxdot(h0, packed["wnl0_h"][s])
               + packed["bnl0"][s])
    g0 = jax.nn.sigmoid(nonlin0)
    cur1 = g0 * h0 + (1.0 - g0) * mxdot(xe, packed["wlin0"][s])
    gates1 = mxdot(cur1, packed["wih1"][s]) + mxdot(h1, packed["whh1"][s]) + packed["b1"][s]
    h1, c1 = lstm(gates1, c1)
    hidden = jax.nn.relu(mxdot(h1, packed["wsh"][s]) + packed["bsh"][s])
    logits[n] = (mxdot(hidden, packed["wsp"][s]) + packed["bsp"][s])[:, :NUM_LABELS[n]]
  return logits


def forward_ref_f32(params, inputs, slot_labels):
  """Full-f32 reference matching the PyTorch module (semantics check)."""
  b = inputs.shape[0]
  emb = jnp.broadcast_to(params["start_symbol"][None, :], (b, E))
  zeros = jnp.zeros((b, H), jnp.float32)
  mem = [(zeros, zeros) for _ in range(NUM_LAYERS)]
  slot_logits = {}
  for i, n in enumerate(SLOT_NAMES):
    sp = params["slots"][n]
    cur = jnp.concatenate([inputs, emb], axis=-1)
    new_mem = []
    nh = None
    for l in range(NUM_LAYERS):
      h, c = mem[l]
      gates = cur @ sp[f"wih{l}"] + h @ sp[f"whh{l}"] + sp[f"b{l}"]
      i_g = jax.nn.sigmoid(gates[:, 0 * H:1 * H])
      f_g = jax.nn.sigmoid(gates[:, 1 * H:2 * H])
      g_g = jnp.tanh(gates[:, 2 * H:3 * H])
      o_g = jax.nn.sigmoid(gates[:, 3 * H:4 * H])
      nc = f_g * c + i_g * g_g
      nh = o_g * jnp.tanh(nc)
      new_mem.append((nh, nc))
      nonlin = jnp.concatenate([cur, nh], axis=-1) @ sp[f"wnl{l}"] + sp[f"bnl{l}"]
      gate = jax.nn.sigmoid(nonlin)
      cur = gate * nh + (1.0 - gate) * (cur @ sp[f"wlin{l}"])
    hidden = jax.nn.relu(nh @ sp["wsh"] + sp["bsh"])
    slot_logits[n] = hidden @ sp["wsp"] + sp["bsp"]
    mem = new_mem
    if i < len(SLOT_NAMES) - 1:
      emb = jnp.take(params["embedders"][n], slot_labels[n], axis=0)
  return slot_logits


# ------------------------------ parameter init --------------------------------
def init_params(key):
  def nrm(k, shape, scale=0.1):
    return scale * jax.random.normal(k, shape, dtype=jnp.float32)

  keys = iter(jax.random.split(key, 256))
  params = {"slots": {}, "embedders": {}}
  params["start_symbol"] = jax.random.normal(next(keys), (E,), dtype=jnp.float32)
  d0 = INPUT_DIM + E
  for i, n in enumerate(SLOT_NAMES):
    num_labels = NUM_LABELS[n]
    sp = {}
    # layer 0 (input size = input_dim + slot_embedding_dim)
    sp["wih0"] = nrm(next(keys), (d0, 4 * H))
    sp["whh0"] = nrm(next(keys), (H, 4 * H))
    sp["b0"] = nrm(next(keys), (4 * H,)) + nrm(next(keys), (4 * H,))   # b_ih + b_hh
    sp["wnl0"] = nrm(next(keys), (d0 + H, H))
    sp["bnl0"] = nrm(next(keys), (H,))
    sp["wlin0"] = nrm(next(keys), (d0, H))
    # layer 1 (input size = rnn_hidden_dim)
    sp["wih1"] = nrm(next(keys), (H, 4 * H))
    sp["whh1"] = nrm(next(keys), (H, 4 * H))
    sp["b1"] = nrm(next(keys), (4 * H,)) + nrm(next(keys), (4 * H,))
    sp["wnl1"] = nrm(next(keys), (2 * H, H))      # present in module; dead in forward()
    sp["bnl1"] = nrm(next(keys), (H,))
    sp["wlin1"] = nrm(next(keys), (H, H))
    # slot hidden / slot pred
    sp["wsh"] = nrm(next(keys), (H, SH))
    sp["bsh"] = nrm(next(keys), (SH,))
    sp["wsp"] = nrm(next(keys), (SH, num_labels))
    sp["bsp"] = nrm(next(keys), (num_labels,))
    params["slots"][n] = sp
    if i < len(SLOT_NAMES) - 1:
      params["embedders"][n] = jax.random.normal(next(keys), (num_labels, E),
                                                 dtype=jnp.float32)
  return params


# ---------------------------------- main --------------------------------------
if __name__ == "__main__":
  key = jax.random.PRNGKey(0)
  k_params, k_in, *k_labels = jax.random.split(key, 2 + len(SLOT_NAMES))

  params = init_params(k_params)
  packed = pack_params(params)          # one-time repack (outside jit / per-step path)
  inputs = jax.random.normal(k_in, (B, INPUT_DIM), dtype=jnp.float32)
  slot_labels = {
      n: jax.random.randint(k_labels[i], (B,), 0, NUM_LABELS[n])
      for i, n in enumerate(SLOT_NAMES)
  }

  fwd = jax.jit(forward_pallas)
  out = jax.block_until_ready(fwd(packed, inputs, slot_labels))

  ref_mixed = jax.block_until_ready(forward_ref_mixed(packed, inputs, slot_labels))
  ref_f32 = jax.block_until_ready(forward_ref_f32(params, inputs, slot_labels))

  for n in SLOT_NAMES:
    assert out[n].shape == (B, NUM_LABELS[n]), (n, out[n].shape)
    # Tight check vs. an identical mixed-precision JAX path (validates the kernel).
    err_m = float(jnp.max(jnp.abs(out[n] - ref_mixed[n])))
    assert jnp.allclose(out[n], ref_mixed[n], atol=1e-4, rtol=1e-4), (n, err_m)
    # Loose check vs. the full-f32 module math (slack = bf16 weight/activation rounding).
    err_f = float(jnp.max(jnp.abs(out[n] - ref_f32[n])))
    assert jnp.allclose(out[n], ref_f32[n], atol=5e-2, rtol=5e-2), (n, err_f)

  # TODO(synk): beam_decode is host-side data-dependent beam search (sorting, vocab
  # string lookups); it is not part of forward() and is not ported.
  print("KERNEL_OK")
</pallas_src>

<mosaic_0001>
module attributes {stable_mosaic.version = 11 : i64} {
  func.func @_fused_slots_kernel(%arg0: memref<3x8x48xf32, #tpu.memory_space<vmem>>, %arg1: memref<3x48x512xbf16, #tpu.memory_space<vmem>>, %arg2: memref<3x128x512xbf16, #tpu.memory_space<vmem>>, %arg3: memref<3x1x512xf32, #tpu.memory_space<vmem>>, %arg4: memref<3x48x128xbf16, #tpu.memory_space<vmem>>, %arg5: memref<3x128x128xbf16, #tpu.memory_space<vmem>>, %arg6: memref<3x1x128xf32, #tpu.memory_space<vmem>>, %arg7: memref<3x48x128xbf16, #tpu.memory_space<vmem>>, %arg8: memref<3x128x512xbf16, #tpu.memory_space<vmem>>, %arg9: memref<3x128x512xbf16, #tpu.memory_space<vmem>>, %arg10: memref<3x1x512xf32, #tpu.memory_space<vmem>>, %arg11: memref<3x128x64xbf16, #tpu.memory_space<vmem>>, %arg12: memref<3x1x64xf32, #tpu.memory_space<vmem>>, %arg13: memref<3x64x128xbf16, #tpu.memory_space<vmem>>, %arg14: memref<3x1x128xf32, #tpu.memory_space<vmem>>, %arg15: memref<3x8x128xf32, #tpu.memory_space<vmem>>) attributes {dimension_semantics = [], scalar_prefetch = 0 : i64, scratch_operands = 0 : i64, tpu.core_type = #tpu.core_type<tc>} {
    %cst = arith.constant 0.000000e+00 : f32
    %0 = vector.broadcast %cst : f32 to vector<8x128xf32>
    %cst_0 = arith.constant 0.000000e+00 : f32
    %1 = vector.broadcast %cst_0 : f32 to vector<8x128xf32>
    %cst_1 = arith.constant 0.000000e+00 : f32
    %2 = vector.broadcast %cst_1 : f32 to vector<8x128xf32>
    %cst_2 = arith.constant 0.000000e+00 : f32
    %3 = vector.broadcast %cst_2 : f32 to vector<8x128xf32>
    %c0 = arith.constant 0 : index
    %c0_3 = arith.constant 0 : index
    %c0_4 = arith.constant 0 : index
    %4 = vector.load %arg0[%c0, %c0_3, %c0_4] : memref<3x8x48xf32, #tpu.memory_space<vmem>>, vector<1x8x48xf32>
    %5 = vector.shape_cast %4 : vector<1x8x48xf32> to vector<8x48xf32>
    %c0_5 = arith.constant 0 : index
    %c0_6 = arith.constant 0 : index
    %c0_7 = arith.constant 0 : index
    %6 = vector.load %arg1[%c0_5, %c0_6, %c0_7] : memref<3x48x512xbf16, #tpu.memory_space<vmem>>, vector<1x48x512xbf16>
    %7 = vector.shape_cast %6 : vector<1x48x512xbf16> to vector<48x512xbf16>
    %8 = arith.truncf %5 : vector<8x48xf32> to vector<8x48xbf16>
    %cst_8 = arith.constant dense<0.000000e+00> : vector<8x512xf32>
    %9 = tpu.matmul %8, %7, %cst_8 {dimension_numbers = #tpu.dot_dimension_numbers<[1], [0], [0], [1], [0, 0, 1, 1], [], []>} : vector<8x48xbf16>, vector<48x512xbf16>, vector<8x512xf32> -> vector<8x512xf32>
    %c0_9 = arith.constant 0 : index
    %c0_10 = arith.constant 0 : index
    %c0_11 = arith.constant 0 : index
    %10 = vector.load %arg2[%c0_9, %c0_10, %c0_11] : memref<3x128x512xbf16, #tpu.memory_space<vmem>>, vector<1x128x512xbf16>
    %11 = vector.shape_cast %10 : vector<1x128x512xbf16> to vector<128x512xbf16>
    %12 = arith.truncf %0 : vector<8x128xf32> to vector<8x128xbf16>
    %cst_12 = arith.constant dense<0.000000e+00> : vector<8x512xf32>
    %13 = tpu.matmul %12, %11, %cst_12 {dimension_numbers = #tpu.dot_dimension_numbers<[1], [0], [0], [1], [0, 0, 1, 1], [], []>} : vector<8x128xbf16>, vector<128x512xbf16>, vector<8x512xf32> -> vector<8x512xf32>
    %14 = arith.addf %9, %13 : vector<8x512xf32>
    %c0_13 = arith.constant 0 : index
    %c0_14 = arith.constant 0 : index
    %c0_15 = arith.constant 0 : index
    %15 = vector.load %arg3[%c0_13, %c0_14, %c0_15] : memref<3x1x512xf32, #tpu.memory_space<vmem>>, vector<1x1x512xf32>
    %16 = vector.shape_cast %15 : vector<1x1x512xf32> to vector<1x512xf32>
    %17 = vector.broadcast %16 : vector<1x512xf32> to vector<8x512xf32>
    %18 = arith.addf %14, %17 : vector<8x512xf32>
    %19 = vector.extract_strided_slice %18 {offsets = [0, 0], sizes = [8, 128], strides = [1, 1]} : vector<8x512xf32> to vector<8x128xf32>
    %20 = arith.negf %19 : vector<8x128xf32>
    %21 = math.exp %20 : vector<8x128xf32>
    %cst_16 = arith.constant 1.000000e+00 : f32
    %22 = vector.broadcast %cst_16 : f32 to vector<8x128xf32>
    %23 = arith.addf %22, %21 : vector<8x128xf32>
    %24 = arith.divf %22, %23 : vector<8x128xf32>
    %25 = vector.extract_strided_slice %18 {offsets = [0, 128], sizes = [8, 128], strides = [1, 1]} : vector<8x512xf32> to vector<8x128xf32>
    %26 = arith.negf %25 : vector<8x128xf32>
    %27 = math.exp %26 : vector<8x128xf32>
    %cst_17 = arith.constant 1.000000e+00 : f32
    %28 = vector.broadcast %cst_17 : f32 to vector<8x128xf32>
    %29 = arith.addf %28, %27 : vector<8x128xf32>
    %30 = arith.divf %28, %29 : vector<8x128xf32>
    %31 = vector.extract_strided_slice %18 {offsets = [0, 256], sizes = [8, 128], strides = [1, 1]} : vector<8x512xf32> to vector<8x128xf32>
    %32 = math.tanh %31 : vector<8x128xf32>
    %33 = vector.extract_strided_slice %18 {offsets = [0, 384], sizes = [8, 128], strides = [1, 1]} : vector<8x512xf32> to vector<8x128xf32>
    %34 = arith.negf %33 : vector<8x128xf32>
    %35 = math.exp %34 : vector<8x128xf32>
    %cst_18 = arith.constant 1.000000e+00 : f32
    %36 = vector.broadcast %cst_18 : f32 to vector<8x128xf32>
    %37 = arith.addf %36, %35 : vector<8x128xf32>
    %38 = arith.divf %36, %37 : vector<8x128xf32>
    %39 = arith.mulf %30, %1 : vector<8x128xf32>
    %40 = arith.mulf %24, %32 : vector<8x128xf32>
    %41 = arith.addf %39, %40 : vector<8x128xf32>
    %42 = math.tanh %41 : vector<8x128xf32>
    %43 = arith.mulf %38, %42 : vector<8x128xf32>
    %c0_19 = arith.constant 0 : index
    %c0_20 = arith.constant 0 : index
    %c0_21 = arith.constant 0 : index
    %44 = vector.load %arg4[%c0_19, %c0_20, %c0_21] : memref<3x48x128xbf16, #tpu.memory_space<vmem>>, vector<1x48x128xbf16>
    %45 = vector.shape_cast %44 : vector<1x48x128xbf16> to vector<48x128xbf16>
    %46 = arith.truncf %5 : vector<8x48xf32> to vector<8x48xbf16>
    %cst_22 = arith.constant dense<0.000000e+00> : vector<8x128xf32>
    %47 = tpu.matmul %46, %45, %cst_22 {dimension_numbers = #tpu.dot_dimension_numbers<[1], [0], [0], [1], [0, 0, 1, 1], [], []>} : vector<8x48xbf16>, vector<48x128xbf16>, vector<8x128xf32> -> vector<8x128xf32>
    %c0_23 = arith.constant 0 : index
    %c0_24 = arith.constant 0 : index
    %c0_25 = arith.constant 0 : index
    %48 = vector.load %arg5[%c0_23, %c0_24, %c0_25] : memref<3x128x128xbf16, #tpu.memory_space<vmem>>, vector<1x128x128xbf16>
    %49 = vector.shape_cast %48 : vector<1x128x128xbf16> to vector<128x128xbf16>
    %50 = arith.truncf %43 : vector<8x128xf32> to vector<8x128xbf16>
    %cst_26 = arith.constant dense<0.000000e+00> : vector<8x128xf32>
    %51 = tpu.matmul %50, %49, %cst_26 {dimension_numbers = #tpu.dot_dimension_numbers<[1], [0], [0], [1], [0, 0, 1, 1], [], []>} : vector<8x128xbf16>, vector<128x128xbf16>, vector<8x128xf32> -> vector<8x128xf32>
    %52 = arith.addf %47, %51 : vector<8x128xf32>
    %c0_27 = arith.constant 0 : index
    %c0_28 = arith.constant 0 : index
    %c0_29 = arith.constant 0 : index
    %53 = vector.load %arg6[%c0_27, %c0_28, %c0_29] : memref<3x1x128xf32, #tpu.memory_space<vmem>>, vector<1x1x128xf32>
    %54 = vector.shape_cast %53 : vector<1x1x128xf32> to vector<1x128xf32>
    %55 = vector.broadcast %54 : vector<1x128xf32> to vector<8x128xf32>
    %56 = arith.addf %52, %55 : vector<8x128xf32>
    %57 = arith.negf %56 : vector<8x128xf32>
    %58 = math.exp %57 : vector<8x128xf32>
    %cst_30 = arith.constant 1.000000e+00 : f32
    %59 = vector.broadcast %cst_30 : f32 to vector<8x128xf32>
    %60 = arith.addf %59, %58 : vector<8x128xf32>
    %61 = arith.divf %59, %60 : vector<8x128xf32>
    %62 = arith.mulf %61, %43 : vector<8x128xf32>
    %cst_31 = arith.constant 1.000000e+00 : f32
    %63 = vector.broadcast %cst_31 : f32 to vector<8x128xf32>
    %64 = arith.subf %63, %61 : vector<8x128xf32>
    %c0_32 = arith.constant 0 : index
    %c0_33 = arith.constant 0 : index
    %c0_34 = arith.constant 0 : index
    %65 = vector.load %arg7[%c0_32, %c0_33, %c0_34] : memref<3x48x128xbf16, #tpu.memory_space<vmem>>, vector<1x48x128xbf16>
    %66 = vector.shape_cast %65 : vector<1x48x128xbf16> to vector<48x128xbf16>
    %67 = arith.truncf %5 : vector<8x48xf32> to vector<8x48xbf16>
    %cst_35 = arith.constant dense<0.000000e+00> : vector<8x128xf32>
    %68 = tpu.matmul %67, %66, %cst_35 {dimension_numbers = #tpu.dot_dimension_numbers<[1], [0], [0], [1], [0, 0, 1, 1], [], []>} : vector<8x48xbf16>, vector<48x128xbf16>, vector<8x128xf32> -> vector<8x128xf32>
    %69 = arith.mulf %64, %68 : vector<8x128xf32>
    %70 = arith.addf %62, %69 : vector<8x128xf32>
    %c0_36 = arith.constant 0 : index
    %c0_37 = arith.constant 0 : index
    %c0_38 = arith.constant 0 : index
    %71 = vector.load %arg8[%c0_36, %c0_37, %c0_38] : memref<3x128x512xbf16, #tpu.memory_space<vmem>>, vector<1x128x512xbf16>
    %72 = vector.shape_cast %71 : vector<1x128x512xbf16> to vector<128x512xbf16>
    %73 = arith.truncf %70 : vector<8x128xf32> to vector<8x128xbf16>
    %cst_39 = arith.constant dense<0.000000e+00> : vector<8x512xf32>
    %74 = tpu.matmul %73, %72, %cst_39 {dimension_numbers = #tpu.dot_dimension_numbers<[1], [0], [0], [1], [0, 0, 1, 1], [], []>} : vector<8x128xbf16>, vector<128x512xbf16>, vector<8x512xf32> -> vector<8x512xf32>
    %c0_40 = arith.constant 0 : index
    %c0_41 = arith.constant 0 : index
    %c0_42 = arith.constant 0 : index
    %75 = vector.load %arg9[%c0_40, %c0_41, %c0_42] : memref<3x128x512xbf16, #tpu.memory_space<vmem>>, vector<1x128x512xbf16>
    %76 = vector.shape_cast %75 : vector<1x128x512xbf16> to vector<128x512xbf16>
    %77 = arith.truncf %2 : vector<8x128xf32> to vector<8x128xbf16>
    %cst_43 = arith.constant dense<0.000000e+00> : vector<8x512xf32>
    %78 = tpu.matmul %77, %76, %cst_43 {dimension_numbers = #tpu.dot_dimension_numbers<[1], [0], [0], [1], [0, 0, 1, 1], [], []>} : vector<8x128xbf16>, vector<128x512xbf16>, vector<8x512xf32> -> vector<8x512xf32>
    %79 = arith.addf %74, %78 : vector<8x512xf32>
    %c0_44 = arith.constant 0 : index
    %c0_45 = arith.constant 0 : index
    %c0_46 = arith.constant 0 : index
    %80 = vector.load %arg10[%c0_44, %c0_45, %c0_46] : memref<3x1x512xf32, #tpu.memory_space<vmem>>, vector<1x1x512xf32>
    %81 = vector.shape_cast %80 : vector<1x1x512xf32> to vector<1x512xf32>
    %82 = vector.broadcast %81 : vector<1x512xf32> to vector<8x512xf32>
    %83 = arith.addf %79, %82 : vector<8x512xf32>
    %84 = vector.extract_strided_slice %83 {offsets = [0, 0], sizes = [8, 128], strides = [1, 1]} : vector<8x512xf32> to vector<8x128xf32>
    %85 = arith.negf %84 : vector<8x128xf32>
    %86 = math.exp %85 : vector<8x128xf32>
    %cst_47 = arith.constant 1.000000e+00 : f32
    %87 = vector.broadcast %cst_47 : f32 to vector<8x128xf32>
    %88 = arith.addf %87, %86 : vector<8x128xf32>
    %89 = arith.divf %87, %88 : vector<8x128xf32>
    %90 = vector.extract_strided_slice %83 {offsets = [0, 128], sizes = [8, 128], strides = [1, 1]} : vector<8x512xf32> to vector<8x128xf32>
    %91 = arith.negf %90 : vector<8x128xf32>
    %92 = math.exp %91 : vector<8x128xf32>
    %cst_48 = arith.constant 1.000000e+00 : f32
    %93 = vector.broadcast %cst_48 : f32 to vector<8x128xf32>
    %94 = arith.addf %93, %92 : vector<8x128xf32>
    %95 = arith.divf %93, %94 : vector<8x128xf32>
    %96 = vector.extract_strided_slice %83 {offsets = [0, 256], sizes = [8, 128], strides = [1, 1]} : vector<8x512xf32> to vector<8x128xf32>
    %97 = math.tanh %96 : vector<8x128xf32>
    %98 = vector.extract_strided_slice %83 {offsets = [0, 384], sizes = [8, 128], strides = [1, 1]} : vector<8x512xf32> to vector<8x128xf32>
    %99 = arith.negf %98 : vector<8x128xf32>
    %100 = math.exp %99 : vector<8x128xf32>
    %cst_49 = arith.constant 1.000000e+00 : f32
    %101 = vector.broadcast %cst_49 : f32 to vector<8x128xf32>
    %102 = arith.addf %101, %100 : vector<8x128xf32>
    %103 = arith.divf %101, %102 : vector<8x128xf32>
    %104 = arith.mulf %95, %3 : vector<8x128xf32>
    %105 = arith.mulf %89, %97 : vector<8x128xf32>
    %106 = arith.addf %104, %105 : vector<8x128xf32>
    %107 = math.tanh %106 : vector<8x128xf32>
    %108 = arith.mulf %103, %107 : vector<8x128xf32>
    %c0_50 = arith.constant 0 : index
    %c0_51 = arith.constant 0 : index
    %c0_52 = arith.constant 0 : index
    %109 = vector.load %arg11[%c0_50, %c0_51, %c0_52] : memref<3x128x64xbf16, #tpu.memory_space<vmem>>, vector<1x128x64xbf16>
    %110 = vector.shape_cast %109 : vector<1x128x64xbf16> to vector<128x64xbf16>
    %111 = arith.truncf %108 : vector<8x128xf32> to vector<8x128xbf16>
    %cst_53 = arith.constant dense<0.000000e+00> : vector<8x64xf32>
    %112 = tpu.matmul %111, %110, %cst_53 {dimension_numbers = #tpu.dot_dimension_numbers<[1], [0], [0], [1], [0, 0, 1, 1], [], []>} : vector<8x128xbf16>, vector<128x64xbf16>, vector<8x64xf32> -> vector<8x64xf32>
    %c0_54 = arith.constant 0 : index
    %c0_55 = arith.constant 0 : index
    %c0_56 = arith.constant 0 : index
    %113 = vector.load %arg12[%c0_54, %c0_55, %c0_56] : memref<3x1x64xf32, #tpu.memory_space<vmem>>, vector<1x1x64xf32>
    %114 = vector.shape_cast %113 : vector<1x1x64xf32> to vector<1x64xf32>
    %115 = vector.broadcast %114 : vector<1x64xf32> to vector<8x64xf32>
    %116 = arith.addf %112, %115 : vector<8x64xf32>
    %cst_57 = arith.constant 0.000000e+00 : f32
    %117 = vector.broadcast %cst_57 : f32 to vector<8x64xf32>
    %118 = arith.maximumf %116, %117 : vector<8x64xf32>
    %c0_58 = arith.constant 0 : index
    %c0_59 = arith.constant 0 : index
    %c0_60 = arith.constant 0 : index
    %119 = vector.load %arg13[%c0_58, %c0_59, %c0_60] : memref<3x64x128xbf16, #tpu.memory_space<vmem>>, vector<1x64x128xbf16>
    %120 = vector.shape_cast %119 : vector<1x64x128xbf16> to vector<64x128xbf16>
    %121 = arith.truncf %118 : vector<8x64xf32> to vector<8x64xbf16>
    %cst_61 = arith.constant dense<0.000000e+00> : vector<8x128xf32>
    %122 = tpu.matmul %121, %120, %cst_61 {dimension_numbers = #tpu.dot_dimension_numbers<[1], [0], [0], [1], [0, 0, 1, 1], [], []>} : vector<8x64xbf16>, vector<64x128xbf16>, vector<8x128xf32> -> vector<8x128xf32>
    %c0_62 = arith.constant 0 : index
    %c0_63 = arith.constant 0 : index
    %c0_64 = arith.constant 0 : index
    %123 = vector.load %arg14[%c0_62, %c0_63, %c0_64] : memref<3x1x128xf32, #tpu.memory_space<vmem>>, vector<1x1x128xf32>
    %124 = vector.shape_cast %123 : vector<1x1x128xf32> to vector<1x128xf32>
    %125 = vector.broadcast %124 : vector<1x128xf32> to vector<8x128xf32>
    %126 = arith.addf %122, %125 : vector<8x128xf32>
    %c0_65 = arith.constant 0 : index
    %c0_66 = arith.constant 0 : index
    %c0_67 = arith.constant 0 : index
    %127 = vector.load %arg15[%c0_65, %c0_66, %c0_67] : memref<3x8x128xf32, #tpu.memory_space<vmem>>, vector<1x8x128xf32>
    %128 = vector.shape_cast %127 : vector<1x8x128xf32> to vector<8x128xf32>
    %129 = vector.shape_cast %126 : vector<8x128xf32> to vector<1x8x128xf32>
    tpu.vector_store %arg15[%c0_65, %c0_66, %c0_67], %129 {strides = array<i32>} : memref<3x8x128xf32, #tpu.memory_space<vmem>>, vector<1x8x128xf32>,
    %c1 = arith.constant 1 : index
    %c0_68 = arith.constant 0 : index
    %c0_69 = arith.constant 0 : index
    %130 = vector.load %arg0[%c1, %c0_68, %c0_69] : memref<3x8x48xf32, #tpu.memory_space<vmem>>, vector<1x8x48xf32>
    %131 = vector.shape_cast %130 : vector<1x8x48xf32> to vector<8x48xf32>
    %c1_70 = arith.constant 1 : index
    %c0_71 = arith.constant 0 : index
    %c0_72 = arith.constant 0 : index
    %132 = vector.load %arg1[%c1_70, %c0_71, %c0_72] : memref<3x48x512xbf16, #tpu.memory_space<vmem>>, vector<1x48x512xbf16>
    %133 = vector.shape_cast %132 : vector<1x48x512xbf16> to vector<48x512xbf16>
    %134 = arith.truncf %131 : vector<8x48xf32> to vector<8x48xbf16>
    %cst_73 = arith.constant dense<0.000000e+00> : vector<8x512xf32>
    %135 = tpu.matmul %134, %133, %cst_73 {dimension_numbers = #tpu.dot_dimension_numbers<[1], [0], [0], [1], [0, 0, 1, 1], [], []>} : vector<8x48xbf16>, vector<48x512xbf16>, vector<8x512xf32> -> vector<8x512xf32>
    %c1_74 = arith.constant 1 : index
    %c0_75 = arith.constant 0 : index
    %c0_76 = arith.constant 0 : index
    %136 = vector.load %arg2[%c1_74, %c0_75, %c0_76] : memref<3x128x512xbf16, #tpu.memory_space<vmem>>, vector<1x128x512xbf16>
    %137 = vector.shape_cast %136 : vector<1x128x512xbf16> to vector<128x512xbf16>
    %138 = arith.truncf %43 : vector<8x128xf32> to vector<8x128xbf16>
    %cst_77 = arith.constant dense<0.000000e+00> : vector<8x512xf32>
    %139 = tpu.matmul %138, %137, %cst_77 {dimension_numbers = #tpu.dot_dimension_numbers<[1], [0], [0], [1], [0, 0, 1, 1], [], []>} : vector<8x128xbf16>, vector<128x512xbf16>, vector<8x512xf32> -> vector<8x512xf32>
    %140 = arith.addf %135, %139 : vector<8x512xf32>
    %c1_78 = arith.constant 1 : index
    %c0_79 = arith.constant 0 : index
    %c0_80 = arith.constant 0 : index
    %141 = vector.load %arg3[%c1_78, %c0_79, %c0_80] : memref<3x1x512xf32, #tpu.memory_space<vmem>>, vector<1x1x512xf32>
    %142 = vector.shape_cast %141 : vector<1x1x512xf32> to vector<1x512xf32>
    %143 = vector.broadcast %142 : vector<1x512xf32> to vector<8x512xf32>
    %144 = arith.addf %140, %143 : vector<8x512xf32>
    %145 = vector.extract_strided_slice %144 {offsets = [0, 0], sizes = [8, 128], strides = [1, 1]} : vector<8x512xf32> to vector<8x128xf32>
    %146 = arith.negf %145 : vector<8x128xf32>
    %147 = math.exp %146 : vector<8x128xf32>
    %cst_81 = arith.constant 1.000000e+00 : f32
    %148 = vector.broadcast %cst_81 : f32 to vector<8x128xf32>
    %149 = arith.addf %148, %147 : vector<8x128xf32>
    %150 = arith.divf %148, %149 : vector<8x128xf32>
    %151 = vector.extract_strided_slice %144 {offsets = [0, 128], sizes = [8, 128], strides = [1, 1]} : vector<8x512xf32> to vector<8x128xf32>
    %152 = arith.negf %151 : vector<8x128xf32>
    %153 = math.exp %152 : vector<8x128xf32>
    %cst_82 = arith.constant 1.000000e+00 : f32
    %154 = vector.broadcast %cst_82 : f32 to vector<8x128xf32>
    %155 = arith.addf %154, %153 : vector<8x128xf32>
    %156 = arith.divf %154, %155 : vector<8x128xf32>
    %157 = vector.extract_strided_slice %144 {offsets = [0, 256], sizes = [8, 128], strides = [1, 1]} : vector<8x512xf32> to vector<8x128xf32>
    %158 = math.tanh %157 : vector<8x128xf32>
    %159 = vector.extract_strided_slice %144 {offsets = [0, 384], sizes = [8, 128], strides = [1, 1]} : vector<8x512xf32> to vector<8x128xf32>
    %160 = arith.negf %159 : vector<8x128xf32>
    %161 = math.exp %160 : vector<8x128xf32>
    %cst_83 = arith.constant 1.000000e+00 : f32
    %162 = vector.broadcast %cst_83 : f32 to vector<8x128xf32>
    %163 = arith.addf %162, %161 : vector<8x128xf32>
    %164 = arith.divf %162, %163 : vector<8x128xf32>
    %165 = arith.mulf %156, %41 : vector<8x128xf32>
    %166 = arith.mulf %150, %158 : vector<8x128xf32>
    %167 = arith.addf %165, %166 : vector<8x128xf32>
    %168 = math.tanh %167 : vector<8x128xf32>
    %169 = arith.mulf %164, %168 : vector<8x128xf32>
    %c1_84 = arith.constant 1 : index
    %c0_85 = arith.constant 0 : index
    %c0_86 = arith.constant 0 : index
    %170 = vector.load %arg4[%c1_84, %c0_85, %c0_86] : memref<3x48x128xbf16, #tpu.memory_space<vmem>>, vector<1x48x128xbf16>
    %171 = vector.shape_cast %170 : vector<1x48x128xbf16> to vector<48x128xbf16>
    %172 = arith.truncf %131 : vector<8x48xf32> to vector<8x48xbf16>
    %cst_87 = arith.constant dense<0.000000e+00> : vector<8x128xf32>
    %173 = tpu.matmul %172, %171, %cst_87 {dimension_numbers = #tpu.dot_dimension_numbers<[1], [0], [0], [1], [0, 0, 1, 1], [], []>} : vector<8x48xbf16>, vector<48x128xbf16>, vector<8x128xf32> -> vector<8x128xf32>
    %c1_88 = arith.constant 1 : index
    %c0_89 = arith.constant 0 : index
    %c0_90 = arith.constant 0 : index
    %174 = vector.load %arg5[%c1_88, %c0_89, %c0_90] : memref<3x128x128xbf16, #tpu.memory_space<vmem>>, vector<1x128x128xbf16>
    %175 = vector.shape_cast %174 : vector<1x128x128xbf16> to vector<128x128xbf16>
    %176 = arith.truncf %169 : vector<8x128xf32> to vector<8x128xbf16>
    %cst_91 = arith.constant dense<0.000000e+00> : vector<8x128xf32>
    %177 = tpu.matmul %176, %175, %cst_91 {dimension_numbers = #tpu.dot_dimension_numbers<[1], [0], [0], [1], [0, 0, 1, 1], [], []>} : vector<8x128xbf16>, vector<128x128xbf16>, vector<8x128xf32> -> vector<8x128xf32>
    %178 = arith.addf %173, %177 : vector<8x128xf32>
    %c1_92 = arith.constant 1 : index
    %c0_93 = arith.constant 0 : index
    %c0_94 = arith.constant 0 : index
    %179 = vector.load %arg6[%c1_92, %c0_93, %c0_94] : memref<3x1x128xf32, #tpu.memory_space<vmem>>, vector<1x1x128xf32>
    %180 = vector.shape_cast %179 : vector<1x1x128xf32> to vector<1x128xf32>
    %181 = vector.broadcast %180 : vector<1x128xf32> to vector<8x128xf32>
    %182 = arith.addf %178, %181 : vector<8x128xf32>
    %183 = arith.negf %182 : vector<8x128xf32>
    %184 = math.exp %183 : vector<8x128xf32>
    %cst_95 = arith.constant 1.000000e+00 : f32
    %185 = vector.broadcast %cst_95 : f32 to vector<8x128xf32>
    %186 = arith.addf %185, %184 : vector<8x128xf32>
    %187 = arith.divf %185, %186 : vector<8x128xf32>
    %188 = arith.mulf %187, %169 : vector<8x128xf32>
    %cst_96 = arith.constant 1.000000e+00 : f32
    %189 = vector.broadcast %cst_96 : f32 to vector<8x128xf32>
    %190 = arith.subf %189, %187 : vector<8x128xf32>
    %c1_97 = arith.constant 1 : index
    %c0_98 = arith.constant 0 : index
    %c0_99 = arith.constant 0 : index
    %191 = vector.load %arg7[%c1_97, %c0_98, %c0_99] : memref<3x48x128xbf16, #tpu.memory_space<vmem>>, vector<1x48x128xbf16>
    %192 = vector.shape_cast %191 : vector<1x48x128xbf16> to vector<48x128xbf16>
    %193 = arith.truncf %131 : vector<8x48xf32> to vector<8x48xbf16>
    %cst_100 = arith.constant dense<0.000000e+00> : vector<8x128xf32>
    %194 = tpu.matmul %193, %192, %cst_100 {dimension_numbers = #tpu.dot_dimension_numbers<[1], [0], [0], [1], [0, 0, 1, 1], [], []>} : vector<8x48xbf16>, vector<48x128xbf16>, vector<8x128xf32> -> vector<8x128xf32>
    %195 = arith.mulf %190, %194 : vector<8x128xf32>
    %196 = arith.addf %188, %195 : vector<8x128xf32>
    %c1_101 = arith.constant 1 : index
    %c0_102 = arith.constant 0 : index
    %c0_103 = arith.constant 0 : index
    %197 = vector.load %arg8[%c1_101, %c0_102, %c0_103] : memref<3x128x512xbf16, #tpu.memory_space<vmem>>, vector<1x128x512xbf16>
    %198 = vector.shape_cast %197 : vector<1x128x512xbf16> to vector<128x512xbf16>
    %199 = arith.truncf %196 : vector<8x128xf32> to vector<8x128xbf16>
    %cst_104 = arith.constant dense<0.000000e+00> : vector<8x512xf32>
    %200 = tpu.matmul %199, %198, %cst_104 {dimension_numbers = #tpu.dot_dimension_numbers<[1], [0], [0], [1], [0, 0, 1, 1], [], []>} : vector<8x128xbf16>, vector<128x512xbf16>, vector<8x512xf32> -> vector<8x512xf32>
    %c1_105 = arith.constant 1 : index
    %c0_106 = arith.constant 0 : index
    %c0_107 = arith.constant 0 : index
    %201 = vector.load %arg9[%c1_105, %c0_106, %c0_107] : memref<3x128x512xbf16, #tpu.memory_space<vmem>>, vector<1x128x512xbf16>
    %202 = vector.shape_cast %201 : vector<1x128x512xbf16> to vector<128x512xbf16>
    %203 = arith.truncf %108 : vector<8x128xf32> to vector<8x128xbf16>
    %cst_108 = arith.constant dense<0.000000e+00> : vector<8x512xf32>
    %204 = tpu.matmul %203, %202, %cst_108 {dimension_numbers = #tpu.dot_dimension_numbers<[1], [0], [0], [1], [0, 0, 1, 1], [], []>} : vector<8x128xbf16>, vector<128x512xbf16>, vector<8x512xf32> -> vector<8x512xf32>
    %205 = arith.addf %200, %204 : vector<8x512xf32>
    %c1_109 = arith.constant 1 : index
    %c0_110 = arith.constant 0 : index
    %c0_111 = arith.constant 0 : index
    %206 = vector.load %arg10[%c1_109, %c0_110, %c0_111] : memref<3x1x512xf32, #tpu.memory_space<vmem>>, vector<1x1x512xf32>
    %207 = vector.shape_cast %206 : vector<1x1x512xf32> to vector<1x512xf32>
    %208 = vector.broadcast %207 : vector<1x512xf32> to vector<8x512xf32>
    %209 = arith.addf %205, %208 : vector<8x512xf32>
    %210 = vector.extract_strided_slice %209 {offsets = [0, 0], sizes = [8, 128], strides = [1, 1]} : vector<8x512xf32> to vector<8x128xf32>
    %211 = arith.negf %210 : vector<8x128xf32>
    %212 = math.exp %211 : vector<8x128xf32>
    %cst_112 = arith.constant 1.000000e+00 : f32
    %213 = vector.broadcast %cst_112 : f32 to vector<8x128xf32>
    %214 = arith.addf %213, %212 : vector<8x128xf32>
    %215 = arith.divf %213, %214 : vector<8x128xf32>
    %216 = vector.extract_strided_slice %209 {offsets = [0, 128], sizes = [8, 128], strides = [1, 1]} : vector<8x512xf32> to vector<8x128xf32>
    %217 = arith.negf %216 : vector<8x128xf32>
    %218 = math.exp %217 : vector<8x128xf32>
    %cst_113 = arith.constant 1.000000e+00 : f32
    %219 = vector.broadcast %cst_113 : f32 to vector<8x128xf32>
    %220 = arith.addf %219, %218 : vector<8x128xf32>
    %221 = arith.divf %219, %220 : vector<8x128xf32>
    %222 = vector.extract_strided_slice %209 {offsets = [0, 256], sizes = [8, 128], strides = [1, 1]} : vector<8x512xf32> to vector<8x128xf32>
    %223 = math.tanh %222 : vector<8x128xf32>
    %224 = vector.extract_strided_slice %209 {offsets = [0, 384], sizes = [8, 128], strides = [1, 1]} : vector<8x512xf32> to vector<8x128xf32>
    %225 = arith.negf %224 : vector<8x128xf32>
    %226 = math.exp %225 : vector<8x128xf32>
    %cst_114 = arith.constant 1.000000e+00 : f32
    %227 = vector.broadcast %cst_114 : f32 to vector<8x128xf32>
    %228 = arith.addf %227, %226 : vector<8x128xf32>
    %229 = arith.divf %227, %228 : vector<8x128xf32>
    %230 = arith.mulf %221, %106 : vector<8x128xf32>
    %231 = arith.mulf %215, %223 : vector<8x128xf32>
    %232 = arith.addf %230, %231 : vector<8x128xf32>
    %233 = math.tanh %232 : vector<8x128xf32>
    %234 = arith.mulf %229, %233 : vector<8x128xf32>
    %c1_115 = arith.constant 1 : index
    %c0_116 = arith.constant 0 : index
    %c0_117 = arith.constant 0 : index
    %235 = vector.load %arg11[%c1_115, %c0_116, %c0_117] : memref<3x128x64xbf16, #tpu.memory_space<vmem>>, vector<1x128x64xbf16>
    %236 = vector.shape_cast %235 : vector<1x128x64xbf16> to vector<128x64xbf16>
    %237 = arith.truncf %234 : vector<8x128xf32> to vector<8x128xbf16>
    %cst_118 = arith.constant dense<0.000000e+00> : vector<8x64xf32>
    %238 = tpu.matmul %237, %236, %cst_118 {dimension_numbers = #tpu.dot_dimension_numbers<[1], [0], [0], [1], [0, 0, 1, 1], [], []>} : vector<8x128xbf16>, vector<128x64xbf16>, vector<8x64xf32> -> vector<8x64xf32>
    %c1_119 = arith.constant 1 : index
    %c0_120 = arith.constant 0 : index
    %c0_121 = arith.constant 0 : index
    %239 = vector.load %arg12[%c1_119, %c0_120, %c0_121] : memref<3x1x64xf32, #tpu.memory_space<vmem>>, vector<1x1x64xf32>
    %240 = vector.shape_cast %239 : vector<1x1x64xf32> to vector<1x64xf32>
    %241 = vector.broadcast %240 : vector<1x64xf32> to vector<8x64xf32>
    %242 = arith.addf %238, %241 : vector<8x64xf32>
    %cst_122 = arith.constant 0.000000e+00 : f32
    %243 = vector.broadcast %cst_122 : f32 to vector<8x64xf32>
    %244 = arith.maximumf %242, %243 : vector<8x64xf32>
    %c1_123 = arith.constant 1 : index
    %c0_124 = arith.constant 0 : index
    %c0_125 = arith.constant 0 : index
    %245 = vector.load %arg13[%c1_123, %c0_124, %c0_125] : memref<3x64x128xbf16, #tpu.memory_space<vmem>>, vector<1x64x128xbf16>
    %246 = vector.shape_cast %245 : vector<1x64x128xbf16> to vector<64x128xbf16>
    %247 = arith.truncf %244 : vector<8x64xf32> to vector<8x64xbf16>
    %cst_126 = arith.constant dense<0.000000e+00> : vector<8x128xf32>
    %248 = tpu.matmul %247, %246, %cst_126 {dimension_numbers = #tpu.dot_dimension_numbers<[1], [0], [0], [1], [0, 0, 1, 1], [], []>} : vector<8x64xbf16>, vector<64x128xbf16>, vector<8x128xf32> -> vector<8x128xf32>
    %c1_127 = arith.constant 1 : index
    %c0_128 = arith.constant 0 : index
    %c0_129 = arith.constant 0 : index
    %249 = vector.load %arg14[%c1_127, %c0_128, %c0_129] : memref<3x1x128xf32, #tpu.memory_space<vmem>>, vector<1x1x128xf32>
    %250 = vector.shape_cast %249 : vector<1x1x128xf32> to vector<1x128xf32>
    %251 = vector.broadcast %250 : vector<1x128xf32> to vector<8x128xf32>
    %252 = arith.addf %248, %251 : vector<8x128xf32>
    %c1_130 = arith.constant 1 : index
    %c0_131 = arith.constant 0 : index
    %c0_132 = arith.constant 0 : index
    %253 = vector.load %arg15[%c1_130, %c0_131, %c0_132] : memref<3x8x128xf32, #tpu.memory_space<vmem>>, vector<1x8x128xf32>
    %254 = vector.shape_cast %253 : vector<1x8x128xf32> to vector<8x128xf32>
    %255 = vector.shape_cast %252 : vector<8x128xf32> to vector<1x8x128xf32>
    tpu.vector_store %arg15[%c1_130, %c0_131, %c0_132], %255 {strides = array<i32>} : memref<3x8x128xf32, #tpu.memory_space<vmem>>, vector<1x8x128xf32>,
    %c2 = arith.constant 2 : index
    %c0_133 = arith.constant 0 : index
    %c0_134 = arith.constant 0 : index
    %256 = vector.load %arg0[%c2, %c0_133, %c0_134] : memref<3x8x48xf32, #tpu.memory_space<vmem>>, vector<1x8x48xf32>
    %257 = vector.shape_cast %256 : vector<1x8x48xf32> to vector<8x48xf32>
    %c2_135 = arith.constant 2 : index
    %c0_136 = arith.constant 0 : index
    %c0_137 = arith.constant 0 : index
    %258 = vector.load %arg1[%c2_135, %c0_136, %c0_137] : memref<3x48x512xbf16, #tpu.memory_space<vmem>>, vector<1x48x512xbf16>
    %259 = vector.shape_cast %258 : vector<1x48x512xbf16> to vector<48x512xbf16>
    %260 = arith.truncf %257 : vector<8x48xf32> to vector<8x48xbf16>
    %cst_138 = arith.constant dense<0.000000e+00> : vector<8x512xf32>
    %261 = tpu.matmul %260, %259, %cst_138 {dimension_numbers = #tpu.dot_dimension_numbers<[1], [0], [0], [1], [0, 0, 1, 1], [], []>} : vector<8x48xbf16>, vector<48x512xbf16>, vector<8x512xf32> -> vector<8x512xf32>
    %c2_139 = arith.constant 2 : index
    %c0_140 = arith.constant 0 : index
    %c0_141 = arith.constant 0 : index
    %262 = vector.load %arg2[%c2_139, %c0_140, %c0_141] : memref<3x128x512xbf16, #tpu.memory_space<vmem>>, vector<1x128x512xbf16>
    %263 = vector.shape_cast %262 : vector<1x128x512xbf16> to vector<128x512xbf16>
    %264 = arith.truncf %169 : vector<8x128xf32> to vector<8x128xbf16>
    %cst_142 = arith.constant dense<0.000000e+00> : vector<8x512xf32>
    %265 = tpu.matmul %264, %263, %cst_142 {dimension_numbers = #tpu.dot_dimension_numbers<[1], [0], [0], [1], [0, 0, 1, 1], [], []>} : vector<8x128xbf16>, vector<128x512xbf16>, vector<8x512xf32> -> vector<8x512xf32>
    %266 = arith.addf %261, %265 : vector<8x512xf32>
    %c2_143 = arith.constant 2 : index
    %c0_144 = arith.constant 0 : index
    %c0_145 = arith.constant 0 : index
    %267 = vector.load %arg3[%c2_143, %c0_144, %c0_145] : memref<3x1x512xf32, #tpu.memory_space<vmem>>, vector<1x1x512xf32>
    %268 = vector.shape_cast %267 : vector<1x1x512xf32> to vector<1x512xf32>
    %269 = vector.broadcast %268 : vector<1x512xf32> to vector<8x512xf32>
    %270 = arith.addf %266, %269 : vector<8x512xf32>
    %271 = vector.extract_strided_slice %270 {offsets = [0, 0], sizes = [8, 128], strides = [1, 1]} : vector<8x512xf32> to vector<8x128xf32>
    %272 = arith.negf %271 : vector<8x128xf32>
    %273 = math.exp %272 : vector<8x128xf32>
    %cst_146 = arith.constant 1.000000e+00 : f32
    %274 = vector.broadcast %cst_146 : f32 to vector<8x128xf32>
    %275 = arith.addf %274, %273 : vector<8x128xf32>
    %276 = arith.divf %274, %275 : vector<8x128xf32>
    %277 = vector.extract_strided_slice %270 {offsets = [0, 128], sizes = [8, 128], strides = [1, 1]} : vector<8x512xf32> to vector<8x128xf32>
    %278 = arith.negf %277 : vector<8x128xf32>
    %279 = math.exp %278 : vector<8x128xf32>
    %cst_147 = arith.constant 1.000000e+00 : f32
    %280 = vector.broadcast %cst_147 : f32 to vector<8x128xf32>
    %281 = arith.addf %280, %279 : vector<8x128xf32>
    %282 = arith.divf %280, %281 : vector<8x128xf32>
    %283 = vector.extract_strided_slice %270 {offsets = [0, 256], sizes = [8, 128], strides = [1, 1]} : vector<8x512xf32> to vector<8x128xf32>
    %284 = math.tanh %283 : vector<8x128xf32>
    %285 = vector.extract_strided_slice %270 {offsets = [0, 384], sizes = [8, 128], strides = [1, 1]} : vector<8x512xf32> to vector<8x128xf32>
    %286 = arith.negf %285 : vector<8x128xf32>
    %287 = math.exp %286 : vector<8x128xf32>
    %cst_148 = arith.constant 1.000000e+00 : f32
    %288 = vector.broadcast %cst_148 : f32 to vector<8x128xf32>
    %289 = arith.addf %288, %287 : vector<8x128xf32>
    %290 = arith.divf %288, %289 : vector<8x128xf32>
    %291 = arith.mulf %282, %167 : vector<8x128xf32>
    %292 = arith.mulf %276, %284 : vector<8x128xf32>
    %293 = arith.addf %291, %292 : vector<8x128xf32>
    %294 = math.tanh %293 : vector<8x128xf32>
    %295 = arith.mulf %290, %294 : vector<8x128xf32>
    %c2_149 = arith.constant 2 : index
    %c0_150 = arith.constant 0 : index
    %c0_151 = arith.constant 0 : index
    %296 = vector.load %arg4[%c2_149, %c0_150, %c0_151] : memref<3x48x128xbf16, #tpu.memory_space<vmem>>, vector<1x48x128xbf16>
    %297 = vector.shape_cast %296 : vector<1x48x128xbf16> to vector<48x128xbf16>
    %298 = arith.truncf %257 : vector<8x48xf32> to vector<8x48xbf16>
    %cst_152 = arith.constant dense<0.000000e+00> : vector<8x128xf32>
    %299 = tpu.matmul %298, %297, %cst_152 {dimension_numbers = #tpu.dot_dimension_numbers<[1], [0], [0], [1], [0, 0, 1, 1], [], []>} : vector<8x48xbf16>, vector<48x128xbf16>, vector<8x128xf32> -> vector<8x128xf32>
    %c2_153 = arith.constant 2 : index
    %c0_154 = arith.constant 0 : index
    %c0_155 = arith.constant 0 : index
    %300 = vector.load %arg5[%c2_153, %c0_154, %c0_155] : memref<3x128x128xbf16, #tpu.memory_space<vmem>>, vector<1x128x128xbf16>
    %301 = vector.shape_cast %300 : vector<1x128x128xbf16> to vector<128x128xbf16>
    %302 = arith.truncf %295 : vector<8x128xf32> to vector<8x128xbf16>
    %cst_156 = arith.constant dense<0.000000e+00> : vector<8x128xf32>
    %303 = tpu.matmul %302, %301, %cst_156 {dimension_numbers = #tpu.dot_dimension_numbers<[1], [0], [0], [1], [0, 0, 1, 1], [], []>} : vector<8x128xbf16>, vector<128x128xbf16>, vector<8x128xf32> -> vector<8x128xf32>
    %304 = arith.addf %299, %303 : vector<8x128xf32>
    %c2_157 = arith.constant 2 : index
    %c0_158 = arith.constant 0 : index
    %c0_159 = arith.constant 0 : index
    %305 = vector.load %arg6[%c2_157, %c0_158, %c0_159] : memref<3x1x128xf32, #tpu.memory_space<vmem>>, vector<1x1x128xf32>
    %306 = vector.shape_cast %305 : vector<1x1x128xf32> to vector<1x128xf32>
    %307 = vector.broadcast %306 : vector<1x128xf32> to vector<8x128xf32>
    %308 = arith.addf %304, %307 : vector<8x128xf32>
    %309 = arith.negf %308 : vector<8x128xf32>
    %310 = math.exp %309 : vector<8x128xf32>
    %cst_160 = arith.constant 1.000000e+00 : f32
    %311 = vector.broadcast %cst_160 : f32 to vector<8x128xf32>
    %312 = arith.addf %311, %310 : vector<8x128xf32>
    %313 = arith.divf %311, %312 : vector<8x128xf32>
    %314 = arith.mulf %313, %295 : vector<8x128xf32>
    %cst_161 = arith.constant 1.000000e+00 : f32
    %315 = vector.broadcast %cst_161 : f32 to vector<8x128xf32>
    %316 = arith.subf %315, %313 : vector<8x128xf32>
    %c2_162 = arith.constant 2 : index
    %c0_163 = arith.constant 0 : index
    %c0_164 = arith.constant 0 : index
    %317 = vector.load %arg7[%c2_162, %c0_163, %c0_164] : memref<3x48x128xbf16, #tpu.memory_space<vmem>>, vector<1x48x128xbf16>
    %318 = vector.shape_cast %317 : vector<1x48x128xbf16> to vector<48x128xbf16>
    %319 = arith.truncf %257 : vector<8x48xf32> to vector<8x48xbf16>
    %cst_165 = arith.constant dense<0.000000e+00> : vector<8x128xf32>
    %320 = tpu.matmul %319, %318, %cst_165 {dimension_numbers = #tpu.dot_dimension_numbers<[1], [0], [0], [1], [0, 0, 1, 1], [], []>} : vector<8x48xbf16>, vector<48x128xbf16>, vector<8x128xf32> -> vector<8x128xf32>
    %321 = arith.mulf %316, %320 : vector<8x128xf32>
    %322 = arith.addf %314, %321 : vector<8x128xf32>
    %c2_166 = arith.constant 2 : index
    %c0_167 = arith.constant 0 : index
    %c0_168 = arith.constant 0 : index
    %323 = vector.load %arg8[%c2_166, %c0_167, %c0_168] : memref<3x128x512xbf16, #tpu.memory_space<vmem>>, vector<1x128x512xbf16>
    %324 = vector.shape_cast %323 : vector<1x128x512xbf16> to vector<128x512xbf16>
    %325 = arith.truncf %322 : vector<8x128xf32> to vector<8x128xbf16>
    %cst_169 = arith.constant dense<0.000000e+00> : vector<8x512xf32>
    %326 = tpu.matmul %325, %324, %cst_169 {dimension_numbers = #tpu.dot_dimension_numbers<[1], [0], [0], [1], [0, 0, 1, 1], [], []>} : vector<8x128xbf16>, vector<128x512xbf16>, vector<8x512xf32> -> vector<8x512xf32>
    %c2_170 = arith.constant 2 : index
    %c0_171 = arith.constant 0 : index
    %c0_172 = arith.constant 0 : index
    %327 = vector.load %arg9[%c2_170, %c0_171, %c0_172] : memref<3x128x512xbf16, #tpu.memory_space<vmem>>, vector<1x128x512xbf16>
    %328 = vector.shape_cast %327 : vector<1x128x512xbf16> to vector<128x512xbf16>
    %329 = arith.truncf %234 : vector<8x128xf32> to vector<8x128xbf16>
    %cst_173 = arith.constant dense<0.000000e+00> : vector<8x512xf32>
    %330 = tpu.matmul %329, %328, %cst_173 {dimension_numbers = #tpu.dot_dimension_numbers<[1], [0], [0], [1], [0, 0, 1, 1], [], []>} : vector<8x128xbf16>, vector<128x512xbf16>, vector<8x512xf32> -> vector<8x512xf32>
    %331 = arith.addf %326, %330 : vector<8x512xf32>
    %c2_174 = arith.constant 2 : index
    %c0_175 = arith.constant 0 : index
    %c0_176 = arith.constant 0 : index
    %332 = vector.load %arg10[%c2_174, %c0_175, %c0_176] : memref<3x1x512xf32, #tpu.memory_space<vmem>>, vector<1x1x512xf32>
    %333 = vector.shape_cast %332 : vector<1x1x512xf32> to vector<1x512xf32>
    %334 = vector.broadcast %333 : vector<1x512xf32> to vector<8x512xf32>
    %335 = arith.addf %331, %334 : vector<8x512xf32>
    %336 = vector.extract_strided_slice %335 {offsets = [0, 0], sizes = [8, 128], strides = [1, 1]} : vector<8x512xf32> to vector<8x128xf32>
    %337 = arith.negf %336 : vector<8x128xf32>
    %338 = math.exp %337 : vector<8x128xf32>
    %cst_177 = arith.constant 1.000000e+00 : f32
    %339 = vector.broadcast %cst_177 : f32 to vector<8x128xf32>
    %340 = arith.addf %339, %338 : vector<8x128xf32>
    %341 = arith.divf %339, %340 : vector<8x128xf32>
    %342 = vector.extract_strided_slice %335 {offsets = [0, 128], sizes = [8, 128], strides = [1, 1]} : vector<8x512xf32> to vector<8x128xf32>
    %343 = arith.negf %342 : vector<8x128xf32>
    %344 = math.exp %343 : vector<8x128xf32>
    %cst_178 = arith.constant 1.000000e+00 : f32
    %345 = vector.broadcast %cst_178 : f32 to vector<8x128xf32>
    %346 = arith.addf %345, %344 : vector<8x128xf32>
    %347 = arith.divf %345, %346 : vector<8x128xf32>
    %348 = vector.extract_strided_slice %335 {offsets = [0, 256], sizes = [8, 128], strides = [1, 1]} : vector<8x512xf32> to vector<8x128xf32>
    %349 = math.tanh %348 : vector<8x128xf32>
    %350 = vector.extract_strided_slice %335 {offsets = [0, 384], sizes = [8, 128], strides = [1, 1]} : vector<8x512xf32> to vector<8x128xf32>
    %351 = arith.negf %350 : vector<8x128xf32>
    %352 = math.exp %351 : vector<8x128xf32>
    %cst_179 = arith.constant 1.000000e+00 : f32
    %353 = vector.broadcast %cst_179 : f32 to vector<8x128xf32>
    %354 = arith.addf %353, %352 : vector<8x128xf32>
    %355 = arith.divf %353, %354 : vector<8x128xf32>
    %356 = arith.mulf %347, %232 : vector<8x128xf32>
    %357 = arith.mulf %341, %349 : vector<8x128xf32>
    %358 = arith.addf %356, %357 : vector<8x128xf32>
    %359 = math.tanh %358 : vector<8x128xf32>
    %360 = arith.mulf %355, %359 : vector<8x128xf32>
    %c2_180 = arith.constant 2 : index
    %c0_181 = arith.constant 0 : index
    %c0_182 = arith.constant 0 : index
    %361 = vector.load %arg11[%c2_180, %c0_181, %c0_182] : memref<3x128x64xbf16, #tpu.memory_space<vmem>>, vector<1x128x64xbf16>
    %362 = vector.shape_cast %361 : vector<1x128x64xbf16> to vector<128x64xbf16>
    %363 = arith.truncf %360 : vector<8x128xf32> to vector<8x128xbf16>
    %cst_183 = arith.constant dense<0.000000e+00> : vector<8x64xf32>
    %364 = tpu.matmul %363, %362, %cst_183 {dimension_numbers = #tpu.dot_dimension_numbers<[1], [0], [0], [1], [0, 0, 1, 1], [], []>} : vector<8x128xbf16>, vector<128x64xbf16>, vector<8x64xf32> -> vector<8x64xf32>
    %c2_184 = arith.constant 2 : index
    %c0_185 = arith.constant 0 : index
    %c0_186 = arith.constant 0 : index
    %365 = vector.load %arg12[%c2_184, %c0_185, %c0_186] : memref<3x1x64xf32, #tpu.memory_space<vmem>>, vector<1x1x64xf32>
    %366 = vector.shape_cast %365 : vector<1x1x64xf32> to vector<1x64xf32>
    %367 = vector.broadcast %366 : vector<1x64xf32> to vector<8x64xf32>
    %368 = arith.addf %364, %367 : vector<8x64xf32>
    %cst_187 = arith.constant 0.000000e+00 : f32
    %369 = vector.broadcast %cst_187 : f32 to vector<8x64xf32>
    %370 = arith.maximumf %368, %369 : vector<8x64xf32>
    %c2_188 = arith.constant 2 : index
    %c0_189 = arith.constant 0 : index
    %c0_190 = arith.constant 0 : index
    %371 = vector.load %arg13[%c2_188, %c0_189, %c0_190] : memref<3x64x128xbf16, #tpu.memory_space<vmem>>, vector<1x64x128xbf16>
    %372 = vector.shape_cast %371 : vector<1x64x128xbf16> to vector<64x128xbf16>
    %373 = arith.truncf %370 : vector<8x64xf32> to vector<8x64xbf16>
    %cst_191 = arith.constant dense<0.000000e+00> : vector<8x128xf32>
    %374 = tpu.matmul %373, %372, %cst_191 {dimension_numbers = #tpu.dot_dimension_numbers<[1], [0], [0], [1], [0, 0, 1, 1], [], []>} : vector<8x64xbf16>, vector<64x128xbf16>, vector<8x128xf32> -> vector<8x128xf32>
    %c2_192 = arith.constant 2 : index
    %c0_193 = arith.constant 0 : index
    %c0_194 = arith.constant 0 : index
    %375 = vector.load %arg14[%c2_192, %c0_193, %c0_194] : memref<3x1x128xf32, #tpu.memory_space<vmem>>, vector<1x1x128xf32>
    %376 = vector.shape_cast %375 : vector<1x1x128xf32> to vector<1x128xf32>
    %377 = vector.broadcast %376 : vector<1x128xf32> to vector<8x128xf32>
    %378 = arith.addf %374, %377 : vector<8x128xf32>
    %c2_195 = arith.constant 2 : index
    %c0_196 = arith.constant 0 : index
    %c0_197 = arith.constant 0 : index
    %379 = vector.load %arg15[%c2_195, %c0_196, %c0_197] : memref<3x8x128xf32, #tpu.memory_space<vmem>>, vector<1x8x128xf32>
    %380 = vector.shape_cast %379 : vector<1x8x128xf32> to vector<8x128xf32>
    %381 = vector.shape_cast %378 : vector<8x128xf32> to vector<1x8x128xf32>
    tpu.vector_store %arg15[%c2_195, %c0_196, %c0_197], %381 {strides = array<i32>} : memref<3x8x128xf32, #tpu.memory_space<vmem>>, vector<1x8x128xf32>,
    return
  }
}

</mosaic_0001>

<bundles_post_ra>
// kernel: forward_pallas.1
= control target key start
LH: loop header
LB: loop body
LE: loop exit
PB: predicated region body
PF: predicated region fallthrough
CT: control target
= control target key end

     0   :  { %20 = vsyncpa [#allocation3], 0  ;;  %s7540_s0 = inlined_call_operand.vmem [shape: f32[3,8,48], index: 0, kind: input, shape index: {}]   ;;  %s7541_s1 = inlined_call_operand.vmem [shape: bf16[3,48,512], index: 1, kind: input, shape index: {}]   ;;  %s7542_s2 = inlined_call_operand.hbm [shape: bf16[3,128,512], index: 2, kind: input, shape index: {}]   ;;  %s7543_s3 = inlined_call_operand.vmem [shape: f32[3,1,512], index: 3, kind: input, shape index: {}]   ;;  %s7544_s4 = inlined_call_operand.hbm [shape: bf16[3,48,128], index: 4, kind: input, shape index: {}]   ;;  %s7545_s5 = inlined_call_operand.hbm [shape: bf16[3,128,128], index: 5, kind: input, shape index: {}]   ;;  %s7546_s6 = inlined_call_operand.vmem [shape: f32[3,1,128], index: 6, kind: input, shape index: {}]   ;;  %s7547_s7 = inlined_call_operand.hbm [shape: bf16[3,48,128], index: 7, kind: input, shape index: {}]   ;;  %s7548_s8 = inlined_call_operand.hbm [shape: bf16[3,128,512], index: 8, kind: input, shape index: {}]   ;;  %s7549_s9 = inlined_call_operand.hbm [shape: bf16[3,128,512], index: 9, kind: input, shape index: {}]   ;;  %s7550_s10 = inlined_call_operand.vmem [shape: f32[3,1,512], index: 10, kind: input, shape index: {}]   ;;  %s7551_s11 = inlined_call_operand.vmem [shape: bf16[3,128,64], index: 11, kind: input, shape index: {}]   ;;  %s7552_s12 = inlined_call_operand.vmem [shape: f32[3,1,64], index: 12, kind: input, shape index: {}]   ;;  %s7553_s13 = inlined_call_operand.hbm [shape: bf16[3,64,128], index: 13, kind: input, shape index: {}]   ;;  %s7554_s14 = inlined_call_operand.vmem [shape: f32[3,1,128], index: 14, kind: input, shape index: {}]   ;;  %s7555_s15 = inlined_call_operand.vmem [shape: f32[3,8,128], index: 15, kind: output, shape index: {}]  }
   0x1   :  { %21 = vsyncpa [#allocation5], 0 }
   0x2   :  { %22 = vsyncpa [#allocation8], 0  ;;  %s47_s20 = sshll.u32 %s7544_s4, 4  ;;  %s48_s20 = int_to_ptr.hbm [resolvable:$true] %s47_s20 }
   0x3   :  { %23 = vsyncpa [#allocation11], 0  ;;  %s6628_s21 = smov [#allocation4]   ;;  %s75_s25 = sshll.u32 %s7547_s7, 4  ;;  %s76_s25 = int_to_ptr.hbm [resolvable:$true] %s75_s25 }
   0x4   :  { %s49_s22 = sshll.u32 %s6628_s21, 4  ;;  %s6629_s26 = smov 64   ;;  %s50_s22 = int_to_ptr.vmem [resolvable:$true] %s49_s22 }
   0x5   :  { %s6630_s27 = smov 4   ;;  %s6631_s28 = smov [#allocation7]  }
   0x6   :  { %55 = dma.hbm_to_vmem [thread:$0]  %s48_s20, 1152, %s50_s22, [#allocation5], %s6629_s26, %s6629_s26, %s6630_s27  }
   0x7   :  { %s77_s29 = sshll.u32 %s6631_s28, 4  ;;  %s101_s16 = sshll.u32 %s7549_s9, 4  ;;  %s78_s29 = int_to_ptr.vmem [resolvable:$true] %s77_s29  ;;  %s102_s16 = int_to_ptr.hbm [resolvable:$true] %s101_s16 }
   0x8   :  { %83 = dma.hbm_to_vmem [thread:$0]  %s76_s25, 1152, %s78_s29, [#allocation8], %s6629_s26, %s6629_s26, %s6630_s27  }
   0x9   :  { %s6632_s7 = smov [#allocation10]   ;;  %s32_s20 = sshll.u32 %s7542_s2, 4  ;;  %s33_s20 = int_to_ptr.hbm [resolvable:$true] %s32_s20 }
   0xa   :  { %s103_s17 = sshll.u32 %s6632_s7, 4  ;;  %s6633_s21 = smov 256   ;;  %s104_s17 = int_to_ptr.vmem [resolvable:$true] %s103_s17 }
   0xb   :  { %s6634_s22 = smov 16   ;;  %s6635_s23 = smov [#allocation2]  }
   0xc   :  { %109 = dma.hbm_to_vmem [thread:$0]  %s102_s16, 12288, %s104_s17, [#allocation11], %s6633_s21, %s6633_s21, %s6634_s22  }
   0xd   :  { %s34_s24 = sshll.u32 %s6635_s23, 4  ;;  %s60_s29 = sshll.u32 %s7545_s5, 4  ;;  %s35_s24 = int_to_ptr.vmem [resolvable:$true] %s34_s24  ;;  %s61_s29 = int_to_ptr.hbm [resolvable:$true] %s60_s29 }
   0xe   :  { %40 = dma.hbm_to_vmem [thread:$0]  %s33_s20, 12288, %s35_s24, [#allocation3], %s6633_s21, %s6633_s21, %s6634_s22  }
   0xf   :  { %s88_s30 = sshll.u32 %s7548_s8, 4  ;;  %s6636_s7 = smov [#allocation6]   ;;  %s89_s30 = int_to_ptr.hbm [resolvable:$true] %s88_s30 }
  0x10   :  { %s62_s18 = sshll.u32 %s6636_s7, 4  ;;  %s6637_s2 = smov [#allocation9]   ;;  %s63_s18 = int_to_ptr.vmem [resolvable:$true] %s62_s18 }
  0x11   :  { %68 = dma.hbm_to_vmem [thread:$0]  %s61_s29, 3072, %s63_s18, [#allocation5], %s6629_s26, %s6629_s26, %s6630_s27  }
  0x12   :  { %s90_s16 = sshll.u32 %s6637_s2, 4  ;;  %s120_s5 = sshll.u32 %s7553_s13, 4  ;;  %s91_s16 = int_to_ptr.vmem [resolvable:$true] %s90_s16  ;;  %s121_s5 = int_to_ptr.hbm [resolvable:$true] %s120_s5 }
  0x13   :  { %96 = dma.hbm_to_vmem [thread:$0]  %s89_s30, 12288, %s91_s16, [#allocation8], %s6633_s21, %s6633_s21, %s6634_s22  }
  0x14   :  { %s6638_s20 = smov [#allocation12]  }
  0x15   :  { %s122_s23 = sshll.u32 %s6638_s20, 4  ;;  %s123_s23 = int_to_ptr.vmem [resolvable:$true] %s122_s23 }
  0x16   :  { %128 = dma.hbm_to_vmem [thread:$0]  %s121_s5, 1536, %s123_s23, [#allocation11], %s6629_s26, %s6629_s26, %s6630_s27  }
  0x17   :  { %6620 = dma.done.wait [#allocation3], 12288  }
  0x18   :  { %6621 = vsyncadd [#allocation3], 4294955008 }
  0x19   :  { %6622 = dma.done.wait [#allocation5], 4224  }
  0x1a   :  { %6623 = vsyncadd [#allocation5], 4294963072 }
  0x1b   :  { %6624 = dma.done.wait [#allocation8], 13440  }
  0x1c   :  { %6625 = vsyncadd [#allocation8], 4294953856 }
  0x1d   :  { %6626 = dma.done.wait [#allocation11], 13824  }
  0x1e   :  { %6627 = vsyncadd [#allocation11], 4294953472  ;;  %v4315_v0 = vld [vmem:[#allocation2 + $0xe0] sm:$0xf]  ;;  %v5963_v1 = vld [vmem:[#allocation2 + $0xec] sm:$0xf0] }
  0x1f   :  { %v5961_v2 = vld [vmem:[#allocation2 + $0xe4] sm:$0xf]  ;;  %v4316_v3 = vor.u32 %v5963_v1, %v4315_v0  ;;  %v4317_v4 = vld [vmem:[#allocation2 + $0xf0] sm:$0xf0]  ;;  %v4323_v5 = vld [vmem:[#allocation2 + $0xe8] sm:$0xf] }
  0x20   :  { %v5964_v6 = vld [vmem:[#allocation2 + $0xf4] sm:$0xf0]  ;;  %v4320_v7 = vor.u32 %v5961_v2, %v4317_v4  ;;  %v5962_v9 = vld [vmem:[#allocation2 + $0xec] sm:$0xf]  ;;  %v4325_v10 = vld [vmem:[#allocation2 + $0xf8] sm:$0xf0] }
  0x21   :  { %v4324_v8 = vor.u32 %v5964_v6, %v4323_v5  ;;  %v4299_v11 = vld [vmem:[#allocation2 + $0xc0] sm:$0xf]  ;;  %366 = vmatpush.bf16.msra.mxu0 %v4316_v3  ;;  %v4328_v12 = vor.u32 %v5962_v9, %v4325_v10  ;;  %v5959_v13 = vld [vmem:[#allocation2 + $0xcc] sm:$0xf0]  ;;  %v5957_v14 = vld [vmem:[#allocation2 + $0xc4] sm:$0xf] }
  0x22   :  { %v4301_v15 = vld [vmem:[#allocation2 + $0xd0] sm:$0xf0]  ;;  %379 = vmatpush.bf16.msra.mxu1 %v4320_v7  ;;  %v4300_v16 = vor.u32 %v5959_v13, %v4299_v11  ;;  %v4307_v18 = vld [vmem:[#allocation2 + $0xc8] sm:$0xf]  ;;  %v5960_v19 = vld [vmem:[#allocation2 + $0xd4] sm:$0xf0] }
  0x23   :  { %392 = vmatpush.bf16.msra.mxu2 %v4324_v8  ;;  %v4304_v17 = vor.u32 %v5957_v14, %v4301_v15  ;;  %v5958_v20 = vld [vmem:[#allocation2 + $0xcc] sm:$0xf]  ;;  %405 = vmatpush.bf16.msra.mxu3 %v4328_v12  ;;  %v4308_v21 = vor.u32 %v5960_v19, %v4307_v18  ;;  %v4309_v22 = vld [vmem:[#allocation2 + $0xd8] sm:$0xf0]  ;;  %v4283_v23 = vld [vmem:[#allocation2 + $0xa0] sm:$0xf] }
  0x24   :  { %v5955_v24 = vld [vmem:[#allocation2 + $0xac] sm:$0xf0]  ;;  %v4312_v25 = vor.u32 %v5958_v20, %v4309_v22  ;;  %v5953_v26 = vld [vmem:[#allocation2 + $0xa4] sm:$0xf]  ;;  %v4285_v27 = vld [vmem:[#allocation2 + $0xb0] sm:$0xf0] }
  0x25   :  { %v4291_v28 = vld [vmem:[#allocation2 + $0xa8] sm:$0xf]  ;;  %367 = vmatpush.bf16.msra.mxu0 %v4300_v16  ;;  %v4284_v29 = vor.u32 %v5955_v24, %v4283_v23  ;;  %v5956_v30 = vld [vmem:[#allocation2 + $0xb4] sm:$0xf0]  ;;  %v5954_v31 = vld [vmem:[#allocation2 + $0xac] sm:$0xf]  ;;  %v4288_v33 = vor.u32 %v5953_v26, %v4285_v27 }
  0x26   :  { %v4293_v32 = vld [vmem:[#allocation2 + $0xb8] sm:$0xf0]  ;;  %380 = vmatpush.bf16.msra.mxu1 %v4304_v17  ;;  %v4292_v34 = vor.u32 %v5956_v30, %v4291_v28  ;;  %v4267_v35 = vld [vmem:[#allocation2 + $0x80] sm:$0xf]  ;;  %v5951_v36 = vld [vmem:[#allocation2 + $0x8c] sm:$0xf0] }
  0x27   :  { %393 = vmatpush.bf16.msra.mxu2 %v4308_v21  ;;  %v5949_v37 = vld [vmem:[#allocation2 + $0x84] sm:$0xf]  ;;  %406 = vmatpush.bf16.msra.mxu3 %v4312_v25  ;;  %v4296_v38 = vor.u32 %v5954_v31, %v4293_v32  ;;  %v4269_v39 = vld [vmem:[#allocation2 + $0x90] sm:$0xf0]  ;;  %v4275_v40 = vld [vmem:[#allocation2 + $0x88] sm:$0xf]  ;;  %v4268_v44 = vor.u32 %v5951_v36, %v4267_v35 }
  0x28   :  { %v5952_v41 = vld [vmem:[#allocation2 + $0x94] sm:$0xf0]  ;;  %v5950_v42 = vld [vmem:[#allocation2 + $0x8c] sm:$0xf]  ;;  %v4277_v43 = vld [vmem:[#allocation2 + $0x98] sm:$0xf0]  ;;  %v4272_v45 = vor.u32 %v5949_v37, %v4269_v39 }
  0x29   :  { %368 = vmatpush.bf16.msra.mxu0 %v4284_v29  ;;  %v4276_v46 = vor.u32 %v5952_v41, %v4275_v40  ;;  %v4251_v47 = vld [vmem:[#allocation2 + $0x60] sm:$0xf]  ;;  %v5947_v48 = vld [vmem:[#allocation2 + $0x6c] sm:$0xf0]  ;;  %v5945_v49 = vld [vmem:[#allocation2 + $0x64] sm:$0xf]  ;;  %v4280_v50 = vor.u32 %v5950_v42, %v4277_v43 }
  0x2a   :  { %381 = vmatpush.bf16.msra.mxu1 %v4288_v33  ;;  %v4253_v51 = vld [vmem:[#allocation2 + $0x70] sm:$0xf0]  ;;  %v4259_v52 = vld [vmem:[#allocation2 + $0x68] sm:$0xf]  ;;  %v5948_v53 = vld [vmem:[#allocation2 + $0x74] sm:$0xf0]  ;;  %v4252_v56 = vor.u32 %v5947_v48, %v4251_v47 }
  0x2b   :  { %394 = vmatpush.bf16.msra.mxu2 %v4292_v34  ;;  %407 = vmatpush.bf16.msra.mxu3 %v4296_v38  ;;  %v5946_v54 = vld [vmem:[#allocation2 + $0x6c] sm:$0xf]  ;;  %v4261_v55 = vld [vmem:[#allocation2 + $0x78] sm:$0xf0]  ;;  %v4256_v57 = vor.u32 %v5945_v49, %v4253_v51  ;;  %v4260_v58 = vor.u32 %v5948_v53, %v4259_v52  ;;  %v4235_v59 = vld [vmem:[#allocation2 + $0x40] sm:$0xf] }
  0x2c   :  { %v5943_v60 = vld [vmem:[#allocation2 + $0x4c] sm:$0xf0]  ;;  %v5941_v61 = vld [vmem:[#allocation2 + $0x44] sm:$0xf]  ;;  %v4264_v62 = vor.u32 %v5946_v54, %v4261_v55  ;;  %v4237_v63 = vld [vmem:[#allocation2 + $0x50] sm:$0xf0] }
  0x2d   :  { %369 = vmatpush.bf16.msra.mxu0 %v4268_v44  ;;  %v4243_v0 = vld [vmem:[#allocation2 + $0x48] sm:$0xf]  ;;  %v5944_v1 = vld [vmem:[#allocation2 + $0x54] sm:$0xf0]  ;;  %v5942_v2 = vld [vmem:[#allocation2 + $0x4c] sm:$0xf]  ;;  %v4236_v4 = vor.u32 %v5943_v60, %v4235_v59  ;;  %v4240_v5 = vor.u32 %v5941_v61, %v4237_v63 }
  0x2e   :  { %382 = vmatpush.bf16.msra.mxu1 %v4272_v45  ;;  %v4245_v3 = vld [vmem:[#allocation2 + $0x58] sm:$0xf0]  ;;  %v4244_v6 = vor.u32 %v5944_v1, %v4243_v0  ;;  %v4219_v7 = vld [vmem:[#allocation2 + $0x20] sm:$0xf]  ;;  %v5939_v8 = vld [vmem:[#allocation2 + $0x2c] sm:$0xf0] }
  0x2f   :  { %395 = vmatpush.bf16.msra.mxu2 %v4276_v46  ;;  %408 = vmatpush.bf16.msra.mxu3 %v4280_v50  ;;  %v5937_v9 = vld [vmem:[#allocation2 + $0x24] sm:$0xf]  ;;  %v4248_v10 = vor.u32 %v5942_v2, %v4245_v3  ;;  %v4221_v11 = vld [vmem:[#allocation2 + $0x30] sm:$0xf0]  ;;  %v4227_v12 = vld [vmem:[#allocation2 + $0x28] sm:$0xf]  ;;  %v4220_v16 = vor.u32 %v5939_v8, %v4219_v7 }
  0x30   :  { %v5940_v13 = vld [vmem:[#allocation2 + $0x34] sm:$0xf0]  ;;  %v5938_v14 = vld [vmem:[#allocation2 + $0x2c] sm:$0xf]  ;;  %v4229_v15 = vld [vmem:[#allocation2 + $0x38] sm:$0xf0]  ;;  %v4224_v20 = vor.u32 %v5937_v9, %v4221_v11 }
  0x31   :  { %370 = vmatpush.bf16.msra.mxu0 %v4252_v56  ;;  %v4203_v17 = vld [vmem:[#allocation2] sm:$0xf]  ;;  %v5935_v18 = vld [vmem:[#allocation2 + $0xc] sm:$0xf0]  ;;  %v5933_v19 = vld [vmem:[#allocation2 + $0x4] sm:$0xf]  ;;  %v4228_v21 = vor.u32 %v5940_v13, %v4227_v12  ;;  %v4232_v25 = vor.u32 %v5938_v14, %v4229_v15 }
  0x32   :  { %383 = vmatpush.bf16.msra.mxu1 %v4256_v57  ;;  %v4205_v22 = vld [vmem:[#allocation2 + $0x10] sm:$0xf0]  ;;  %v4211_v23 = vld [vmem:[#allocation2 + $0x8] sm:$0xf]  ;;  %v5936_v24 = vld [vmem:[#allocation2 + $0x14] sm:$0xf0]  ;;  %v4204_v31 = vor.u32 %v5935_v18, %v4203_v17 }
  0x33   :  { %396 = vmatpush.bf16.msra.mxu2 %v4260_v58  ;;  %409 = vmatpush.bf16.msra.mxu3 %v4264_v62  ;;  %v5934_v26 = vld [vmem:[#allocation2 + $0xc] sm:$0xf]  ;;  %v4213_v27 = vld [vmem:[#allocation2 + $0x18] sm:$0xf0]  ;;  %v4363_v28 = vld [vmem:[%s7541_s1 + $0x40] sm:$0xf]  ;;  %v4208_v35 = vor.u32 %v5933_v19, %v4205_v22  ;;  %v4212_v36 = vor.u32 %v5936_v24, %v4211_v23 }
  0x34   :  { %v5931_v29 = vld [vmem:[%s7541_s1 + $0x4c] sm:$0xf0]  ;;  %v5929_v30 = vld [vmem:[%s7541_s1 + $0x44] sm:$0xf]  ;;  %v4365_v32 = vld [vmem:[%s7541_s1 + $0x50] sm:$0xf0]  ;;  %v4216_v40 = vor.u32 %v5934_v26, %v4213_v27 }
  0x35   :  { %371 = vmatpush.bf16.msra.mxu0 %v4236_v4  ;;  %v4371_v33 = vld [vmem:[%s7541_s1 + $0x48] sm:$0xf]  ;;  %v5932_v34 = vld [vmem:[%s7541_s1 + $0x54] sm:$0xf0]  ;;  %v5930_v37 = vld [vmem:[%s7541_s1 + $0x4c] sm:$0xf]  ;;  %v4364_v41 = vor.u32 %v5931_v29, %v4363_v28  ;;  %v4368_v45 = vor.u32 %v5929_v30, %v4365_v32 }
  0x36   :  { %384 = vmatpush.bf16.msra.mxu1 %v4240_v5  ;;  %v4373_v38 = vld [vmem:[%s7541_s1 + $0x58] sm:$0xf0]  ;;  %v4347_v39 = vld [vmem:[%s7541_s1 + $0x20] sm:$0xf]  ;;  %v5927_v42 = vld [vmem:[%s7541_s1 + $0x2c] sm:$0xf0]  ;;  %v4372_v46 = vor.u32 %v5932_v34, %v4371_v33 }
  0x37   :  { %397 = vmatpush.bf16.msra.mxu2 %v4244_v6  ;;  %410 = vmatpush.bf16.msra.mxu3 %v4248_v10  ;;  %v5925_v43 = vld [vmem:[%s7541_s1 + $0x24] sm:$0xf]  ;;  %v4349_v44 = vld [vmem:[%s7541_s1 + $0x30] sm:$0xf0]  ;;  %v4376_v47 = vor.u32 %v5930_v37, %v4373_v38  ;;  %v4348_v48 = vor.u32 %v5927_v42, %v4347_v39  ;;  %v4355_v49 = vld [vmem:[%s7541_s1 + $0x28] sm:$0xf] }
  0x38   :  { %v5928_v50 = vld [vmem:[%s7541_s1 + $0x34] sm:$0xf0]  ;;  %v5926_v51 = vld [vmem:[%s7541_s1 + $0x2c] sm:$0xf]  ;;  %v6639_v52 = vmov 0   ;;  %v4352_v53 = vor.u32 %v5925_v43, %v4349_v44  ;;  %v160_v5 = vld [vmem:[%s7540_s0] sm:$0xff] }
  0x39   :  { %372 = vmatpush.bf16.msra.mxu0 %v4220_v16  ;;  %v4357_v54 = vld [vmem:[%s7541_s1 + $0x38] sm:$0xf0]  ;;  %v4331_v55 = vld [vmem:[%s7541_s1] sm:$0xf]  ;;  %v5923_v56 = vld [vmem:[%s7541_s1 + $0xc] sm:$0xf0]  ;;  %v4356_v59 = vor.u32 %v5928_v50, %v4355_v49  ;;  %v6832_v6 = vpack.c.bf16 %v160_v5, %v160_v5 }
  0x3a   :  { %385 = vmatpush.bf16.msra.mxu1 %v4224_v20  ;;  %v5921_v57 = vld [vmem:[%s7541_s1 + $0x4] sm:$0xf]  ;;  %v4333_v58 = vld [vmem:[%s7541_s1 + $0x10] sm:$0xf0]  ;;  %v4360_v60 = vor.u32 %v5926_v51, %v4357_v54  ;;  %v4332_v61 = vor.u32 %v5923_v56, %v4331_v55  ;;  %v4339_v62 = vld [vmem:[%s7541_s1 + $0x8] sm:$0xf] }
  0x3b   :  { %398 = vmatpush.bf16.msra.mxu2 %v4228_v21  ;;  %411 = vmatpush.bf16.msra.mxu3 %v4232_v25  ;;  %v5924_v63 = vld [vmem:[%s7541_s1 + $0x14] sm:$0xf0]  ;;  %v4336_v0 = vor.u32 %v5921_v57, %v4333_v58  ;;  %v5922_v1 = vld [vmem:[%s7541_s1 + $0xc] sm:$0xf]  ;;  %v4341_v2 = vld [vmem:[%s7541_s1 + $0x18] sm:$0xf0] }
  0x3c   :  { %v4340_v3 = vor.u32 %v5924_v63, %v4339_v62  ;;  %v4344_v4 = vor.u32 %v5922_v1, %v4341_v2  ;;  %vm478_vm0 = vcmask 392192   ;;  %v5975_v9 = vld [vmem:[#allocation6 + $0x38] sm:$0xff]  ;;  %v5974_v10 = vld [vmem:[#allocation6 + $0x30] sm:$0xff]  ;;  %v5973_v15 = vld [vmem:[#allocation6 + $0x28] sm:$0xff] }
  0x3d   :  { %373 = vmatpush.bf16.msra.mxu0 %v4204_v31  ;;  %v534_v16 = vld [vmem:[%s7543_s3] sm:$0xf]  ;;  %v5972_v17 = vld [vmem:[#allocation6 + $0x20] sm:$0xff]  ;;  %v5967_v18 = vld [vmem:[#allocation4 + $0x10] sm:$0xff] }
  0x3e   :  { %386 = vmatpush.bf16.msra.mxu1 %v4208_v35  ;;  %v536_v20 = vperm.slane %v534_v16, 0  ;;  %v537_v23 = vperm.slane %v534_v16, 1  ;;  %v5971_v27 = vld [vmem:[#allocation6 + $0x18] sm:$0xff]  ;;  %v5966_v28 = vld [vmem:[#allocation4 + $0x8] sm:$0xff]  ;;  %v5970_v33 = vld [vmem:[#allocation6 + $0x10] sm:$0xff] }
  0x3f   :  { %399 = vmatpush.bf16.msra.mxu2 %v4212_v36  ;;  %412 = vmatpush.bf16.msra.mxu3 %v4216_v40  ;;  %v5965_v34 = vld [vmem:[#allocation4] sm:$0xff]  ;;  %v539_v36 = vperm.slane %v534_v16, 3  ;;  %v5969_v39 = vld [vmem:[#allocation6 + $0x8] sm:$0xff]  ;;  %v5968_v43 = vld [vmem:[#allocation6] sm:$0xff] }
  0x40   :  { %374 = vmatmul.bf16.vlgmr.msra.gmra.mxu0 %v6639_v52  ;;  %v5978_v54 = vld [vmem:[#allocation7 + $0x10] sm:$0xff]  ;;  %v5977_v55 = vld [vmem:[#allocation7 + $0x8] sm:$0xff]  ;;  %v4567_v57 = vld [vmem:[#allocation10 + $0xf8] sm:$0xf0] }
  0x41   :  { %487 = vmatpush.bf16.msrb.mxu0 %v4364_v41  ;;  %387 = vmatmul.bf16.vlgmr.msra.gmra.mxu1 %v6639_v52  ;;  %v6040_v56 = vld [vmem:[#allocation10 + $0xec] sm:$0xf]  ;;  %v4565_v62 = vld [vmem:[#allocation10 + $0xe8] sm:$0xf]  ;;  %v6042_v63 = vld [vmem:[#allocation10 + $0xf4] sm:$0xf0] }
  0x42   :  { %500 = vmatpush.bf16.msrb.mxu1 %v4368_v45  ;;  %400 = vmatmul.bf16.vlgmr.msra.gmra.mxu2 %v6639_v52  ;;  %v4570_v58 = vor.u32 %v6040_v56, %v4567_v57  ;;  %v5976_v5 = vld [vmem:[#allocation7] sm:$0xff]  ;;  %v6033_v56 = vld [vmem:[#allocation10 + $0xac] sm:$0xf0] }
  0x43   :  { %413 = vmatmul.bf16.vlgmr.msra.gmra.mxu3 %v6639_v52  ;;  %513 = vmatpush.bf16.msrb.mxu2 %v4372_v46 }
  0x44   :  { %526 = vmatpush.bf16.msrb.mxu3 %v4376_v47 }
  0x45   :  { %488 = vmatpush.bf16.msrb.mxu0 %v4348_v48 }
  0x46   :  { %501 = vmatpush.bf16.msrb.mxu1 %v4352_v53  ;;  %v538_v53 = vperm.slane %v534_v16, 2  ;;  %v6866_v16 = vld [vmem:[#allocation10 + $0x8c] sm:$0xf] }
  0x47   :  { %514 = vmatpush.bf16.msrb.mxu2 %v4356_v59  ;;  %v6036_v59 = vld [vmem:[#allocation10 + $0xcc] sm:$0xf] }
  0x48   :  { %527 = vmatpush.bf16.msrb.mxu3 %v4360_v60 }
  0x49   :  { %489 = vmatpush.bf16.msrb.mxu0 %v4332_v61 }
  0x4a   :  { %502 = vmatpush.bf16.msrb.mxu1 %v4336_v0  ;;  %v4551_v0 = vld [vmem:[#allocation10 + $0xd8] sm:$0xf0] }
  0x4b   :  { %515 = vmatpush.bf16.msrb.mxu2 %v4340_v3 }
  0x4c   :  { %528 = vmatpush.bf16.msrb.mxu3 %v4344_v4 }
  0x4d   :  { %682 = vmatpush.bf16.msra.mxu0 %v5975_v9 }
  0x4e   :  { %718 = vmatpush.bf16.msra.mxu1 %v5967_v18 }
  0x4f   :  { %781 = vmatpush.bf16.msra.mxu2 %v5978_v54  ;;  %v4503_v54 = vld [vmem:[#allocation10 + $0x78] sm:$0xf0] }
  0x50   :  { %4377 = vmatmul.msk.bf16.vlgmr.msrb.gmra.mxu0 %vm478_vm0, %v6832_v6 }
  0x51   :  { %4378 = vmatmul.msk.bf16.vlgmr.msrb.gmra.mxu1 %vm478_vm0, %v6832_v6  ;;  %683 = vmatpush.bf16.msra.mxu0 %v5974_v10  ;;  %v4549_v10 = vld [vmem:[#allocation10 + $0xc8] sm:$0xf] }
  0x52   :  { %4379 = vmatmul.msk.bf16.vlgmr.msrb.gmra.mxu2 %vm478_vm0, %v6832_v6  ;;  %719 = vmatpush.bf16.msra.mxu1 %v5966_v28 }
  0x53   :  { %4380 = vmatmul.msk.bf16.vlgmr.msrb.gmra.mxu3 %vm478_vm0, %v6832_v6  ;;  %782 = vmatpush.bf16.msra.mxu2 %v5977_v55  ;;  %v4525_v55 = vld [vmem:[#allocation10 + $0xa0] sm:$0xf] }
  0x55   :  { %684 = vmatpush.bf16.msra.mxu0 %v5973_v15  ;;  %v6038_v15 = vld [vmem:[#allocation10 + $0xd4] sm:$0xf0] }
  0x56   :  { %720 = vmatpush.bf16.msra.mxu1 %v5965_v34 }
  0x57   :  { %783 = vmatpush.bf16.msra.mxu2 %v5976_v5 }
  0x59   :  { %685 = vmatpush.bf16.msra.mxu0 %v5972_v17  ;;  %v4557_v17 = vld [vmem:[#allocation10 + $0xe0] sm:$0xf] }
  0x5d   :  { %686 = vmatpush.bf16.msra.mxu0 %v5971_v27 }
  0x61   :  { %687 = vmatpush.bf16.msra.mxu0 %v5970_v33  ;;  %4428 = vmatmul.msk.bf16.vlgmr.msra.gmra.mxu1 %vm478_vm0, %v6832_v6  ;;  %v4509_v33 = vld [vmem:[#allocation10 + $0x80] sm:$0xf] }
  0x62   :  { %4442 = vmatmul.msk.bf16.vlgmr.msra.gmra.mxu2 %vm478_vm0, %v6832_v6 }
  0x65   :  { %688 = vmatpush.bf16.msra.mxu0 %v5969_v39 }
  0x69   :  { %689 = vmatpush.bf16.msra.mxu0 %v5968_v43 }
  0x6d   :  { %1055 = vmatpush.bf16.msrb.mxu0 %v4570_v58 }
  0xbd   :  { %v375_v7 = vpop.f32.mrf.mxu0 }
  0xbe   :  { %v388_v8 = vpop.f32.mrf.mxu1 }
  0xc5   :  { %v401_v11 = vpop.f32.mrf.mxu2  ;;  %v377_v13 = vpop.f32.mrf.mxu0 }
  0xc6   :  { %v414_v12 = vpop.f32.mrf.mxu3  ;;  %v390_v14 = vpop.f32.mrf.mxu1 }
  0xc7   :  { %v4566_v14 = vor.u32 %v6042_v63, %v4565_v62 }
  0xc9   :  { %1042 = vmatpush.bf16.msrb.mxu2 %v4566_v14  ;;  %v4501_v14 = vld [vmem:[#allocation10 + $0x68] sm:$0xf] }
  0xcd   :  { %v403_v19 = vpop.f32.mrf.mxu2  ;;  %v491_v22 = vpop.f32.mrf.mxu0 }
  0xce   :  { %v416_v21 = vpop.f32.mrf.mxu3  ;;  %v492_v24 = vadd.f32 %v491_v22, %v375_v7  ;;  %v504_v25 = vpop.f32.mrf.mxu1  ;;  %v4554_v7 = vor.u32 %v6036_v59, %v4551_v0  ;;  %v4519_v19 = vld [vmem:[#allocation10 + $0x98] sm:$0xf0]  ;;  %v6031_v59 = vld [vmem:[#allocation10 + $0xa4] sm:$0xf]  ;;  %v4517_v0 = vld [vmem:[#allocation10 + $0x88] sm:$0xf] }
  0xcf   :  { %v505_v26 = vadd.f32 %v504_v25, %v388_v8  ;;  %v6039_v25 = vld [vmem:[#allocation10 + $0xe4] sm:$0xf]  ;;  %v4522_v39 = vor.u32 %v6866_v16, %v4519_v19 }
  0xd0   :  { %v544_v29 = vadd.f32 %v536_v20, %v492_v24  ;;  %v6041_v20 = vld [vmem:[#allocation10 + $0xec] sm:$0xf0]  ;;  %1056 = vmatpush.bf16.msrb.mxu0 %v4554_v7 }
  0xd1   :  { %v545_v30 = vadd.f32 %v537_v23, %v505_v26  ;;  %v4558_v24 = vor.u32 %v6041_v20, %v4557_v17  ;;  %v4559_v26 = vld [vmem:[#allocation10 + $0xf0] sm:$0xf0] }
  0xd2   :  { %v4381_v31 = vmul.f32 -1.442695, %v544_v29  ;;  %v4533_v29 = vld [vmem:[#allocation10 + $0xa8] sm:$0xf] }
  0xd3   :  { %v4382_v32 = vmul.f32 -1.442695, %v545_v30  ;;  %v4562_v30 = vor.u32 %v6039_v25, %v4559_v26  ;;  %1016 = vmatpush.bf16.msra.mxu3 %v4558_v24 }
  0xd4   :  { %6344 = vpow2.f32 %v4381_v31 }
  0xd5   :  { %v517_v35 = vpop.f32.mrf.mxu2  ;;  %6346 = vpow2.f32 %v4382_v32  ;;  %v493_v38 = vpop.f32.mrf.mxu0  ;;  %1029 = vmatpush.bf16.msrb.mxu1 %v4562_v30  ;;  %v6016_v30 = vld [vmem:[#allocation10 + $0x2c] sm:$0xf]  ;;  %v4471_v32 = vld [vmem:[#allocation10 + $0x38] sm:$0xf0] }
  0xd6   :  { %v530_v37 = vpop.f32.mrf.mxu3  ;;  %v506_v41 = vpop.f32.mrf.mxu1  ;;  %v518_v51 = vadd.f32 %v517_v35, %v401_v11  ;;  %v6032_v11 = vld [vmem:[#allocation10 + $0xac] sm:$0xf]  ;;  %v4550_v35 = vor.u32 %v6038_v15, %v4549_v10  ;;  %v4487_v10 = vld [vmem:[#allocation10 + $0x58] sm:$0xf0]  ;;  %v6026_v15 = vld [vmem:[#allocation10 + $0x74] sm:$0xf0] }
  0xd7   :  { %v531_v40 = vadd.f32 %v530_v37, %v414_v12  ;;  %v4535_v12 = vld [vmem:[#allocation10 + $0xb8] sm:$0xf0]  ;;  %v4541_v37 = vld [vmem:[#allocation10 + $0xc0] sm:$0xf]  ;;  %v6035_v41 = vld [vmem:[#allocation10 + $0xc4] sm:$0xf]  ;;  %v4502_v19 = vor.u32 %v6026_v15, %v4501_v14 }
  0xd8   :  { %v546_v61 = vadd.f32 %v538_v53, %v518_v51  ;;  %v4538_v23 = vor.u32 %v6032_v11, %v4535_v12  ;;  %1043 = vmatpush.bf16.msrb.mxu2 %v4550_v35  ;;  %v4474_v35 = vor.u32 %v6016_v30, %v4471_v32  ;;  %v4463_v15 = vld [vmem:[#allocation10 + $0x30] sm:$0xf0]  ;;  %v5998_v30 = vld [vmem:[#allocation9 + $0x94] sm:$0xf0] }
  0xd9   :  { %v547_v42 = vadd.f32 %v539_v36, %v531_v40  ;;  %v6034_v36 = vld [vmem:[#allocation10 + $0xb4] sm:$0xf0]  ;;  %v6037_v40 = vld [vmem:[#allocation10 + $0xcc] sm:$0xf0] }
  0xda   :  { %v6345_v44 = vpop.eup %6344  ;;  %1057 = vmatpush.bf16.msrb.mxu0 %v4538_v23  ;;  %v4534_v58 = vor.u32 %v6034_v36, %v4533_v29  ;;  %v6018_v29 = vld [vmem:[#allocation10 + $0x34] sm:$0xf0] }
  0xdb   :  { %v4383_v45 = vmul.f32 -1.442695, %v547_v42  ;;  %v6347_v46 = vpop.eup %6346  ;;  %v6847_v47 = vadd.f32 1.0, %v6345_v44  ;;  %v4543_v42 = vld [vmem:[#allocation10 + $0xd0] sm:$0xf0] }
  0xdc   :  { %v6849_v48 = vadd.f32 1.0, %v6347_v46  ;;  %1044 = vmatpush.bf16.msrb.mxu2 %v4534_v58  ;;  %v4493_v46 = vld [vmem:[#allocation10 + $0x60] sm:$0xf] }
  0xdd   :  { %6348 = vpow2.f32 %v4383_v45  ;;  %v519_v49 = vpop.f32.mrf.mxu2  ;;  %v561_v2 = vand.u32 2147483647, %v6847_v47  ;;  %v563_v3 = vand.u32 2147483648, %v6847_v47  ;;  %vm557_vm1 = vweird.f32 %v6847_v47 }
  0xde   :  { %6350 = vrcp.f32 %v6847_v47  ;;  %v532_v50 = vpop.f32.mrf.mxu3  ;;  %v582_v22 = vand.u32 2147483648, %v6849_v48  ;;  %v580_v28 = vand.u32 2147483647, %v6849_v48  ;;  %vm576_vm6 = vweird.f32 %v6849_v48  ;;  %1058 = vmatpush.bf16.msrb.mxu0 %v4522_v39  ;;  %v4453_v39 = vld [vmem:[#allocation10 + $0x8] sm:$0xf]  ;;  %v6930_v58 = vpop.f32.mrf.mxu1 }
  0xdf   :  { %6352 = vrcp.f32 %v6849_v48  ;;  %vm6883_vm5 = vcmp.eq.f32.partialorder %v561_v2, 8.507059e+37  ;;  %v564_v34 = vor.u32 1.1754944e-38, %v563_v3  ;;  %v4546_v49 = vor.u32 %v6035_v41, %v4543_v42  ;;  %v6014_v41 = vld [vmem:[#allocation10 + $0x14] sm:$0xf0]  ;;  %v6012_v42 = vld [vmem:[#allocation10 + $0xc] sm:$0xf] }
  0xe0   :  { %v583_v44 = vor.u32 1.1754944e-38, %v582_v22  ;;  %vm581_vm8 = vcmp.eq.f32.partialorder %v580_v28, 8.507059e+37  ;;  %v4526_v2 = vor.u32 %v6033_v56, %v4525_v55  ;;  %v6022_v22 = vld [vmem:[#allocation10 + $0x54] sm:$0xf0]  ;;  %v6008_v56 = vld [vmem:[#allocation9 + $0xec] sm:$0xf] }
  0xe1   :  { %1030 = vmatpush.bf16.msrb.mxu1 %v4546_v49 }
  0xe3   :  { %v6349_v60 = vpop.eup %6348 }
  0xe4   :  { %v6853_v1 = vpop.eup %6350  ;;  %v6857_v4 = vadd.f32 1.0, %v6349_v60  ;;  %v4527_v60 = vld [vmem:[#allocation10 + $0xb0] sm:$0xf0] }
  0xe5   :  { %v6859_v8 = vpop.eup %6352  ;;  %v553_v9 = vmul.f32 %v6853_v1, %v6847_v47  ;;  %vm558_vm2 = vweird.f32 %v6853_v1  ;;  %v6024_v47 = vld [vmem:[#allocation10 + $0x6c] sm:$0xf]  ;;  %v4530_v7 = vor.u32 %v6031_v59, %v4527_v60  ;;  %v4477_v59 = vld [vmem:[#allocation10 + $0x40] sm:$0xf]  ;;  %v6021_v60 = vld [vmem:[#allocation10 + $0x4c] sm:$0xf0] }
  0xe6   :  { %v572_v13 = vmul.f32 %v6859_v8, %v6849_v48  ;;  %6354 = vrcp.f32 %v6857_v4  ;;  %vm577_vm3 = vweird.f32 %v6859_v8  ;;  %vm6879_vm4 = vmor %vm557_vm1, %vm558_vm2  ;;  %v4542_v48 = vor.u32 %v6037_v40, %v4541_v37  ;;  %v6027_v37 = vld [vmem:[#allocation10 + $0x84] sm:$0xf] }
  0xe7   :  { %v554_v18 = vsub.f32 1.0, %v553_v9  ;;  %6356 = vtanh.f32 %v546_v61  ;;  %vm6895_vm7 = vmor %vm576_vm6, %vm577_vm3  ;;  %v4506_v5 = vor.u32 %v6024_v47, %v4503_v54  ;;  %1031 = vmatpush.bf16.msrb.mxu1 %v4530_v7  ;;  %v602_v16 = vand.u32 2147483648, %v6857_v4  ;;  %v6025_v47 = vld [vmem:[#allocation10 + $0x6c] sm:$0xf0]  ;;  %v4679_v7 = vld [vmem:[#allocation9 + $0xd8] sm:$0xf0] }
  0xe8   :  { %v573_v21 = vsub.f32 1.0, %v572_v13  ;;  %1017 = vmatpush.bf16.msra.mxu3 %v4542_v48  ;;  %vm596_vm10 = vweird.f32 %v6857_v4  ;;  %v6023_v48 = vld [vmem:[#allocation10 + $0x64] sm:$0xf]  ;;  %v4494_v49 = vor.u32 %v6025_v47, %v4493_v46  ;;  %v4631_v46 = vld [vmem:[#allocation9 + $0x78] sm:$0xf0] }
  0xe9   :  { %v555_v27 = vmul.f32 %v6853_v1, %v554_v18  ;;  %1059 = vmatpush.bf16.msrb.mxu0 %v4506_v5  ;;  %v600_v18 = vand.u32 2147483647, %v6857_v4  ;;  %v603_v23 = vor.u32 1.1754944e-38, %v602_v16  ;;  %v6004_v5 = vld [vmem:[#allocation9 + $0xcc] sm:$0xf] }
  0xea   :  { %v574_v31 = vmul.f32 %v6859_v8, %v573_v21  ;;  %v4485_v21 = vld [vmem:[#allocation10 + $0x48] sm:$0xf]  ;;  %v4669_v47 = vld [vmem:[#allocation9 + $0xc0] sm:$0xf] }
  0xeb   :  { %v556_v38 = vadd.f32 %v6853_v1, %v555_v27  ;;  %vm601_vm12 = vcmp.eq.f32.partialorder %v600_v18, 8.507059e+37  ;;  %v4486_v26 = vor.u32 %v6022_v22, %v4485_v21  ;;  %v4661_v16 = vld [vmem:[#allocation9 + $0xa8] sm:$0xf]  ;;  %v4663_v21 = vld [vmem:[#allocation9 + $0xb8] sm:$0xf0] }
  0xec   :  { %v6890_v43 = vpop.eup %6354  ;;  %v575_v45 = vadd.f32 %v6859_v8, %v574_v31  ;;  %1018 = vmatpush.bf16.msra.mxu3 %v4526_v2 }
  0xed   :  { %v6357_v50 = vpop.eup %6356  ;;  %v560_v51 = vsel %vm6879_vm4, %v6853_v1, %v556_v38  ;;  %v592_v53 = vmul.f32 %v6890_v43, %v6857_v4  ;;  %v6030_v1 = vld [vmem:[#allocation10 + $0x94] sm:$0xf0]  ;;  %vm597_vm9 = vweird.f32 %v6890_v43  ;;  %v4469_v4 = vld [vmem:[#allocation10 + $0x28] sm:$0xf]  ;;  %v4511_v38 = vld [vmem:[#allocation10 + $0x90] sm:$0xf0] }
  0xee   :  { %v565_v57 = vsel %vm6883_vm5, %v564_v34, %v560_v51  ;;  %v579_v6 = vsel %vm6895_vm7, %v6859_v8, %v575_v45  ;;  %v6020_v8 = vld [vmem:[#allocation10 + $0x4c] sm:$0xf]  ;;  %v4518_v12 = vor.u32 %v6030_v1, %v4517_v0  ;;  %vm598_vm11 = vmor %vm596_vm10, %vm597_vm9  ;;  %v4470_v31 = vor.u32 %v6018_v29, %v4469_v4  ;;  %v6029_v34 = vld [vmem:[#allocation10 + $0x8c] sm:$0xf0]  ;;  %v724_v1 = vpop.f32.mrf.mxu1 }
  0xef   :  { %v584_v61 = vsel %vm581_vm8, %v583_v44, %v579_v6  ;;  %v607_v62 = vmul.f32 %v6357_v50, %v565_v57  ;;  %v593_v63 = vsub.f32 1.0, %v592_v53  ;;  %v4490_v17 = vor.u32 %v6020_v8, %v4487_v10  ;;  %v4495_v50 = vld [vmem:[#allocation10 + $0x70] sm:$0xf0]  ;;  %v4693_v51 = vld [vmem:[#allocation9 + $0xe8] sm:$0xf] }
  0xf0   :  { %v606_v3 = vmul.f32 0.0, %v584_v61  ;;  %1045 = vmatpush.bf16.msrb.mxu2 %v4518_v12  ;;  %v4510_v36 = vor.u32 %v6029_v34, %v4509_v33  ;;  %v4514_v40 = vor.u32 %v6027_v37, %v4511_v38  ;;  %v4454_v44 = vor.u32 %v6014_v41, %v4453_v39  ;;  %v6010_v53 = vld [vmem:[#allocation9 + $0xf4] sm:$0xf0]  ;;  %v4695_v57 = vld [vmem:[#allocation9 + $0xf8] sm:$0xf0] }
  0xf1   :  { %v594_v9 = vmul.f32 %v6890_v43, %v593_v63  ;;  %1060 = vmatpush.bf16.msrb.mxu0 %v4490_v17  ;;  %v4498_v54 = vor.u32 %v6023_v48, %v4495_v50  ;;  %v4694_v55 = vor.u32 %v6010_v53, %v4693_v51  ;;  %v4698_v6 = vor.u32 %v6008_v56, %v4695_v57  ;;  %v6019_v61 = vld [vmem:[#allocation10 + $0x44] sm:$0xf]  ;;  %v4479_v63 = vld [vmem:[#allocation10 + $0x50] sm:$0xf0]  ;;  %v4677_v0 = vld [vmem:[#allocation9 + $0xc8] sm:$0xf] }
  0xf2   :  { %v6912_v11 = vadd.f32 %v607_v62, %v606_v3  ;;  %1019 = vmatpush.bf16.msra.mxu3 %v4510_v36  ;;  %1032 = vmatpush.bf16.msrb.mxu1 %v4514_v40  ;;  %v4478_v62 = vor.u32 %v6021_v60, %v4477_v59  ;;  %v4482_v2 = vor.u32 %v6019_v61, %v4479_v63  ;;  %v6006_v3 = vld [vmem:[#allocation9 + $0xd4] sm:$0xf0]  ;;  %v4461_v10 = vld [vmem:[#allocation10 + $0x20] sm:$0xf]  ;;  %v6017_v12 = vld [vmem:[#allocation10 + $0x2c] sm:$0xf0] }
  0xf3   :  { %v595_v13 = vadd.f32 %v6890_v43, %v594_v9  ;;  %v4678_v9 = vor.u32 %v6006_v3, %v4677_v0  ;;  %v4682_v8 = vor.u32 %v6004_v5, %v4679_v7  ;;  %v4462_v14 = vor.u32 %v6017_v12, %v4461_v10  ;;  %v6002_v17 = vld [vmem:[#allocation9 + $0xb4] sm:$0xf0]  ;;  %v4447_v4 = vld [vmem:[#allocation10 + $0x10] sm:$0xf0]  ;;  %v4645_v29 = vld [vmem:[#allocation9 + $0x88] sm:$0xf] }
  0xf4   :  { %6358 = vtanh.f32 %v6912_v11  ;;  %1046 = vmatpush.bf16.msrb.mxu2 %v4502_v19  ;;  %v4662_v19 = vor.u32 %v6002_v17, %v4661_v16  ;;  %v4646_v32 = vor.u32 %v5998_v30, %v4645_v29  ;;  %v5996_v33 = vld [vmem:[#allocation9 + $0x8c] sm:$0xf]  ;;  %v4647_v34 = vld [vmem:[#allocation9 + $0x98] sm:$0xf0]  ;;  %v6009_v37 = vld [vmem:[#allocation9 + $0xec] sm:$0xf0] }
  0xf5   :  { %v599_v20 = vsel %vm598_vm11, %v6890_v43, %v595_v13  ;;  %v4455_v43 = vld [vmem:[#allocation10 + $0x18] sm:$0xf0]  ;;  %1061 = vmatpush.bf16.msrb.mxu0 %v4474_v35  ;;  %v6015_v13 = vld [vmem:[#allocation10 + $0x24] sm:$0xf]  ;;  %v4685_v35 = vld [vmem:[#allocation9 + $0xe0] sm:$0xf]  ;;  %v4650_v36 = vor.u32 %v5996_v33, %v4647_v34 }
  0xf6   :  { %v604_v25 = vsel %vm601_vm12, %v603_v23, %v599_v20  ;;  %v4458_v45 = vor.u32 %v6012_v42, %v4455_v43  ;;  %1020 = vmatpush.bf16.msra.mxu3 %v4494_v49  ;;  %1033 = vmatpush.bf16.msrb.mxu1 %v4498_v54  ;;  %v4466_v18 = vor.u32 %v6015_v13, %v4463_v15  ;;  %v6000_v20 = vld [vmem:[#allocation9 + $0xac] sm:$0xf]  ;;  %v4445_v23 = vld [vmem:[#allocation10] sm:$0xf]  ;;  %v6007_v38 = vld [vmem:[#allocation9 + $0xe4] sm:$0xf] }
  0xf7   :  { %v4666_v22 = vor.u32 %v6000_v20, %v4663_v21  ;;  %v4687_v39 = vld [vmem:[#allocation9 + $0xf0] sm:$0xf0]  ;;  %v4686_v40 = vor.u32 %v6009_v37, %v4685_v35  ;;  %v4629_v42 = vld [vmem:[#allocation9 + $0x68] sm:$0xf]  ;;  %v5994_v43 = vld [vmem:[#allocation9 + $0x74] sm:$0xf0]  ;;  %v6934_v35 = vpop.f32.mrf.mxu2 }
  0xf8   :  { %1047 = vmatpush.bf16.msrb.mxu2 %v4486_v26  ;;  %v4690_v41 = vor.u32 %v6007_v38, %v4687_v39  ;;  %v6005_v48 = vld [vmem:[#allocation9 + $0xcc] sm:$0xf0]  ;;  %v6003_v51 = vld [vmem:[#allocation9 + $0xc4] sm:$0xf]  ;;  %v4671_v53 = vld [vmem:[#allocation9 + $0xd0] sm:$0xf0] }
  0xf9   :  { %1062 = vmatpush.bf16.msrb.mxu0 %v4458_v45  ;;  %v4630_v45 = vor.u32 %v5994_v43, %v4629_v42  ;;  %v4670_v50 = vor.u32 %v6005_v48, %v4669_v47  ;;  %v4674_v54 = vor.u32 %v6003_v51, %v4671_v53  ;;  %v5990_v56 = vld [vmem:[#allocation9 + $0x54] sm:$0xf0]  ;;  %v5988_v57 = vld [vmem:[#allocation9 + $0x4c] sm:$0xf]  ;;  %v4615_v59 = vld [vmem:[#allocation9 + $0x58] sm:$0xf0] }
  0xfa   :  { %v6359_v24 = vpop.eup %6358  ;;  %1021 = vmatpush.bf16.msra.mxu3 %v4478_v62  ;;  %1034 = vmatpush.bf16.msrb.mxu1 %v4482_v2  ;;  %v4653_v60 = vld [vmem:[#allocation9 + $0xa0] sm:$0xf]  ;;  %v6001_v61 = vld [vmem:[#allocation9 + $0xac] sm:$0xf0]  ;;  %v4618_v62 = vor.u32 %v5988_v57, %v4615_v59  ;;  %v5999_v0 = vld [vmem:[#allocation9 + $0xa4] sm:$0xf] }
  0xfb   :  { %v6921_v27 = vmul.f32 %v6359_v24, %v604_v25  ;;  %v6013_v24 = vld [vmem:[#allocation10 + $0xc] sm:$0xf0]  ;;  %v6011_v25 = vld [vmem:[#allocation10 + $0x4] sm:$0xf]  ;;  %v4654_v63 = vor.u32 %v6001_v61, %v4653_v60  ;;  %v4655_v1 = vld [vmem:[#allocation9 + $0xb0] sm:$0xf0] }
  0xfc   :  { %1048 = vmatpush.bf16.msrb.mxu2 %v4470_v31  ;;  %v4446_v26 = vor.u32 %v6013_v24, %v4445_v23  ;;  %v4450_v31 = vor.u32 %v6011_v25, %v4447_v4  ;;  %v4597_v2 = vld [vmem:[#allocation9 + $0x28] sm:$0xf]  ;;  %v4658_v3 = vor.u32 %v5999_v0, %v4655_v1  ;;  %v5986_v5 = vld [vmem:[#allocation9 + $0x34] sm:$0xf0]  ;;  %v5984_v7 = vld [vmem:[#allocation9 + $0x2c] sm:$0xf] }
  0xfd   :  { %v6925_v28 = vpack.c.bf16 %v6921_v27, %v6921_v27  ;;  %v5995_v10 = vld [vmem:[#allocation9 + $0x84] sm:$0xf]  ;;  %v4598_v12 = vor.u32 %v5986_v5, %v4597_v2  ;;  %v4581_v15 = vld [vmem:[#allocation9 + $0x8] sm:$0xf]  ;;  %v4583_v20 = vld [vmem:[#allocation9 + $0x18] sm:$0xf0] }
  0xfe   :  { %1022 = vmatpush.bf16.msra.mxu3 %v4462_v14  ;;  %1035 = vmatpush.bf16.msrb.mxu1 %v4466_v18  ;;  %v4639_v14 = vld [vmem:[#allocation9 + $0x90] sm:$0xf0]  ;;  %v5982_v18 = vld [vmem:[#allocation9 + $0x14] sm:$0xf0]  ;;  %v4621_v23 = vld [vmem:[#allocation9 + $0x60] sm:$0xf] }
  0xff   :  { %690 = vmatmul.bf16.vlgmr.msra.gmra.mxu0 %v6925_v28  ;;  %v4642_v17 = vor.u32 %v5995_v10, %v4639_v14  ;;  %v4582_v21 = vor.u32 %v5982_v18, %v4581_v15  ;;  %v5993_v24 = vld [vmem:[#allocation9 + $0x6c] sm:$0xf0]  ;;  %v5991_v25 = vld [vmem:[#allocation9 + $0x64] sm:$0xf]  ;;  %v4623_v4 = vld [vmem:[#allocation9 + $0x70] sm:$0xf0]  ;;  %v787_v1 = vpop.f32.mrf.mxu2 }
 0x100   :  { %1049 = vmatpush.bf16.msrb.mxu2 %v4454_v44  ;;  %1267 = vmatpush.bf16.msra.mxu0 %v4698_v6  ;;  %v5992_v44 = vld [vmem:[#allocation9 + $0x6c] sm:$0xf]  ;;  %v4878_v29 = vld [vmem:[#allocation2 + $0x1e0] sm:$0xf]  ;;  %v6097_v30 = vld [vmem:[#allocation2 + $0x1ec] sm:$0xf0] }
 0x101   :  { %v4634_v49 = vor.u32 %v5992_v44, %v4631_v46  ;;  %v6095_v33 = vld [vmem:[#allocation2 + $0x1e4] sm:$0xf]  ;;  %v4880_v34 = vld [vmem:[#allocation2 + $0x1f0] sm:$0xf0]  ;;  %v4605_v37 = vld [vmem:[#allocation9 + $0x40] sm:$0xf] }
 0x102   :  { %1023 = vmatpush.bf16.msra.mxu3 %v4446_v26  ;;  %1036 = vmatpush.bf16.msrb.mxu1 %v4450_v31  ;;  %v4622_v26 = vor.u32 %v5993_v24, %v4621_v23  ;;  %v4626_v31 = vor.u32 %v5991_v25, %v4623_v4  ;;  %v5989_v38 = vld [vmem:[#allocation9 + $0x4c] sm:$0xf0]  ;;  %v5987_v39 = vld [vmem:[#allocation9 + $0x44] sm:$0xf]  ;;  %v6093_v43 = vld [vmem:[#allocation2 + $0x1cc] sm:$0xf0] }
 0x103   :  { %1050 = vmatmul.bf16.vlgmr.msrb.gmra.mxu2 %v6639_v52  ;;  %v4862_v42 = vld [vmem:[#allocation2 + $0x1c0] sm:$0xf]  ;;  %v6091_v47 = vld [vmem:[#allocation2 + $0x1c4] sm:$0xf]  ;;  %v4864_v48 = vld [vmem:[#allocation2 + $0x1d0] sm:$0xf0] }
 0x104   :  { %1254 = vmatpush.bf16.msra.mxu2 %v4694_v55  ;;  %1268 = vmatpush.bf16.msra.mxu0 %v4682_v8  ;;  %v4613_v55 = vld [vmem:[#allocation9 + $0x48] sm:$0xf]  ;;  %v5997_v8 = vld [vmem:[#allocation9 + $0x8c] sm:$0xf0]  ;;  %v4863_v46 = vor.u32 %v6093_v43, %v4862_v42  ;;  %v4589_v53 = vld [vmem:[#allocation9 + $0x20] sm:$0xf] }
 0x105   :  { %1024 = vmatmul.bf16.vlgmr.msra.gmra.mxu3 %v6639_v52  ;;  %1037 = vmatmul.bf16.vlgmr.msrb.gmra.mxu1 %v6639_v52  ;;  %v4614_v6 = vor.u32 %v5990_v56, %v4613_v55  ;;  %v6335_v44 = vld [vmem:[%s7546_s6] ss:$0 sm:$0xff]  ;;  %v5983_v55 = vld [vmem:[#allocation9 + $0x24] sm:$0xf]  ;;  %v4591_v57 = vld [vmem:[#allocation9 + $0x30] sm:$0xf0] }
 0x106   :  { %1228 = vmatpush.bf16.msrb.mxu3 %v4686_v40  ;;  %1241 = vmatpush.bf16.msra.mxu1 %v4690_v41  ;;  %v4606_v40 = vor.u32 %v5989_v38, %v4605_v37  ;;  %v4607_v41 = vld [vmem:[#allocation9 + $0x50] sm:$0xf0]  ;;  %v6089_v59 = vld [vmem:[#allocation2 + $0x1ac] sm:$0xf0]  ;;  %v4594_v61 = vor.u32 %v5983_v55, %v4591_v57  ;;  %v4848_v0 = vld [vmem:[#allocation2 + $0x1b0] sm:$0xf0] }
 0x107   :  { %v5981_v5 = vld [vmem:[#allocation9 + $0xc] sm:$0xf0]  ;;  %v4832_v14 = vld [vmem:[#allocation2 + $0x190] sm:$0xf0]  ;;  %v6077_v25 = vld [vmem:[#allocation2 + $0x14c] sm:$0xf0] }
 0x108   :  { %1255 = vmatpush.bf16.msra.mxu2 %v4678_v9  ;;  %1269 = vmatpush.bf16.msra.mxu0 %v4666_v22  ;;  %v4637_v9 = vld [vmem:[#allocation9 + $0x80] sm:$0xf]  ;;  %v4814_v18 = vld [vmem:[#allocation2 + $0x160] sm:$0xf]  ;;  %v4800_v4 = vld [vmem:[#allocation2 + $0x150] sm:$0xf0] }
 0x109   :  { %v4638_v16 = vor.u32 %v5997_v8, %v4637_v9  ;;  %v4575_v9 = vld [vmem:[#allocation9 + $0x10] sm:$0xf0]  ;;  %v4830_v8 = vld [vmem:[#allocation2 + $0x180] sm:$0xf]  ;;  %v4784_v37 = vld [vmem:[#allocation2 + $0x130] sm:$0xf0] }
 0x10a   :  { %1229 = vmatpush.bf16.msrb.mxu3 %v4670_v50  ;;  %1242 = vmatpush.bf16.msra.mxu1 %v4674_v54  ;;  %v4867_v50 = vor.u32 %v6091_v47, %v4864_v48  ;;  %v5985_v54 = vld [vmem:[#allocation9 + $0x2c] sm:$0xf0]  ;;  %v6067_v42 = vld [vmem:[#allocation2 + $0x104] sm:$0xf]  ;;  %v4768_v43 = vld [vmem:[#allocation2 + $0x110] sm:$0xf0] }
 0x10b   :  { %v4590_v56 = vor.u32 %v5985_v54, %v4589_v53  ;;  %v4798_v24 = vld [vmem:[#allocation2 + $0x140] sm:$0xf]  ;;  %v4771_v47 = vor.u32 %v6067_v42, %v4768_v43  ;;  %v6099_v42 = vld [vmem:[#allocation4 + $0x18] sm:$0xff]  ;;  %v5122_v43 = vld [vmem:[#allocation10 + $0x1e0] sm:$0xf] }
 0x10c   :  { %1256 = vmatpush.bf16.msra.mxu2 %v4662_v19  ;;  %1270 = vmatpush.bf16.msra.mxu0 %v4650_v36  ;;  %v5980_v19 = vld [vmem:[#allocation9 + $0xc] sm:$0xf]  ;;  %v4883_v36 = vor.u32 %v6095_v33, %v4880_v34  ;;  %v4782_v33 = vld [vmem:[#allocation2 + $0x120] sm:$0xf]  ;;  %v6073_v34 = vld [vmem:[#allocation2 + $0x12c] sm:$0xf0] }
 0x10d   :  { %v4586_v22 = vor.u32 %v5980_v19, %v4583_v20  ;;  %v6081_v19 = vld [vmem:[#allocation2 + $0x16c] sm:$0xf0]  ;;  %v6079_v20 = vld [vmem:[#allocation2 + $0x164] sm:$0xf]  ;;  %v4783_v38 = vor.u32 %v6073_v34, %v4782_v33  ;;  %v4920_v33 = vld [vmem:[%s7541_s1 + $0x98] sm:$0xf0] }
 0x10e   :  { %1230 = vmatpush.bf16.msrb.mxu3 %v4654_v63  ;;  %1243 = vmatpush.bf16.msra.mxu1 %v4658_v3  ;;  %v6087_v63 = vld [vmem:[#allocation2 + $0x1a4] sm:$0xf]  ;;  %v6048_v34 = vld [vmem:[%s7551_s11 + $0x28] sm:$0xff] }
 0x10f   :  { %1063 = vmatmul.bf16.vlgmr.msrb.gmra.mxu0 %v6639_v52  ;;  %v4599_v52 = vld [vmem:[#allocation9 + $0x38] sm:$0xf0]  ;;  %v4851_v2 = vor.u32 %v6087_v63, %v4848_v0  ;;  %v4928_v63 = vld [vmem:[%s7541_s1 + $0xb0] sm:$0xf0] }
 0x110   :  { %1257 = vmatpush.bf16.msra.mxu2 %v4646_v32  ;;  %1271 = vmatpush.bf16.msra.mxu0 %v4634_v49  ;;  %v4602_v13 = vor.u32 %v5984_v7, %v4599_v52  ;;  %v4879_v32 = vor.u32 %v6097_v30, %v4878_v29  ;;  %v5979_v52 = vld [vmem:[#allocation9 + $0x4] sm:$0xf] }
 0x111   :  { %v4578_v10 = vor.u32 %v5979_v52, %v4575_v9  ;;  %v4894_v9 = vld [vmem:[%s7541_s1 + $0x60] sm:$0xf] }
 0x112   :  { %1231 = vmatpush.bf16.msrb.mxu3 %v4638_v16  ;;  %1244 = vmatpush.bf16.msra.mxu1 %v4642_v17 }
 0x114   :  { %1258 = vmatpush.bf16.msra.mxu2 %v4630_v45  ;;  %1272 = vmatpush.bf16.msra.mxu0 %v4618_v62  ;;  %v4610_v45 = vor.u32 %v5987_v39, %v4607_v41  ;;  %v6069_v41 = vld [vmem:[#allocation2 + $0x10c] sm:$0xf0] }
 0x116   :  { %1232 = vmatpush.bf16.msrb.mxu3 %v4622_v26  ;;  %1245 = vmatpush.bf16.msra.mxu1 %v4626_v31  ;;  %v6075_v26 = vld [vmem:[#allocation2 + $0x144] sm:$0xf]  ;;  %v4799_v31 = vor.u32 %v6077_v25, %v4798_v24  ;;  %v6050_v25 = vld [vmem:[%s7551_s11 + $0x38] sm:$0xff] }
 0x118   :  { %1259 = vmatpush.bf16.msra.mxu2 %v4614_v6  ;;  %1273 = vmatpush.bf16.msra.mxu0 %v4602_v13  ;;  %v4846_v6 = vld [vmem:[#allocation2 + $0x1a0] sm:$0xf]  ;;  %v6083_v13 = vld [vmem:[#allocation2 + $0x184] sm:$0xf] }
 0x119   :  { %v4847_v62 = vor.u32 %v6089_v59, %v4846_v6  ;;  %v4835_v17 = vor.u32 %v6083_v13, %v4832_v14 }
 0x11a   :  { %1233 = vmatpush.bf16.msrb.mxu3 %v4606_v40  ;;  %1246 = vmatpush.bf16.msra.mxu1 %v4610_v45  ;;  %v4766_v40 = vld [vmem:[#allocation2 + $0x100] sm:$0xf] }
 0x11c   :  { %1260 = vmatpush.bf16.msra.mxu2 %v4598_v12  ;;  %1274 = vmatpush.bf16.msra.mxu0 %v4586_v22  ;;  %v6085_v12 = vld [vmem:[#allocation2 + $0x18c] sm:$0xf0]  ;;  %v4815_v22 = vor.u32 %v6081_v19, %v4814_v18 }
 0x11d   :  { %v4831_v16 = vor.u32 %v6085_v12, %v4830_v8  ;;  %v6057_v8 = vld [vmem:[%s7541_s1 + $0x6c] sm:$0xf0]  ;;  %v4896_v12 = vld [vmem:[%s7541_s1 + $0x70] sm:$0xf0] }
 0x11e   :  { %1234 = vmatpush.bf16.msrb.mxu3 %v4590_v56  ;;  %1247 = vmatpush.bf16.msra.mxu1 %v4594_v61  ;;  %v6065_v61 = vld [vmem:[%s7541_s1 + $0xac] sm:$0xf0]  ;;  %v4895_v13 = vor.u32 %v6057_v8, %v4894_v9  ;;  %v6163_v9 = vld [vmem:[#allocation10 + $0x18c] sm:$0xf0]  ;;  %v6161_v8 = vld [vmem:[#allocation10 + $0x184] sm:$0xf] }
 0x120   :  { %1261 = vmatpush.bf16.msra.mxu2 %v4582_v21  ;;  %1717 = vmatpush.bf16.msrb.mxu0 %v4883_v36  ;;  %v4816_v21 = vld [vmem:[#allocation2 + $0x170] sm:$0xf0]  ;;  %v6071_v36 = vld [vmem:[#allocation2 + $0x124] sm:$0xf] }
 0x121   :  { %v4819_v23 = vor.u32 %v6079_v20, %v4816_v21  ;;  %v4787_v39 = vor.u32 %v6071_v36, %v4784_v37  ;;  %v6100_v37 = vld [vmem:[#allocation4 + $0x20] sm:$0xff] }
 0x122   :  { %1248 = vmatpush.bf16.msra.mxu1 %v4578_v10  ;;  %v6055_v10 = vld [vmem:[%s7541_s1 + $0x64] sm:$0xf] }
 0x123   :  { %v4899_v14 = vor.u32 %v6055_v10, %v4896_v12 }
 0x124   :  { %1704 = vmatpush.bf16.msrb.mxu2 %v4879_v32  ;;  %1718 = vmatpush.bf16.msrb.mxu0 %v4867_v50  ;;  %v4803_v32 = vor.u32 %v6075_v26, %v4800_v4  ;;  %v6064_v26 = vld [vmem:[%s7541_s1 + $0xac] sm:$0xf]  ;;  %v4936_v4 = vld [vmem:[%s7541_s1 + $0xb8] sm:$0xf0] }
 0x128   :  { %1705 = vmatpush.bf16.msrb.mxu2 %v4863_v46  ;;  %1719 = vmatpush.bf16.msrb.mxu0 %v4851_v2  ;;  %v4767_v46 = vor.u32 %v6069_v41, %v4766_v40  ;;  %v4910_v2 = vld [vmem:[%s7541_s1 + $0x80] sm:$0xf] }
 0x129   :  { %v6047_v40 = vld [vmem:[%s7551_s11 + $0x20] sm:$0xff] }
 0x12c   :  { %1706 = vmatpush.bf16.msrb.mxu2 %v4847_v62  ;;  %1720 = vmatpush.bf16.msrb.mxu0 %v4835_v17  ;;  %v6063_v62 = vld [vmem:[%s7541_s1 + $0xa4] sm:$0xf] }
 0x130   :  { %1707 = vmatpush.bf16.msrb.mxu2 %v4831_v16  ;;  %1721 = vmatpush.bf16.msrb.mxu0 %v4819_v23 }
 0x134   :  { %1708 = vmatpush.bf16.msrb.mxu2 %v4815_v22  ;;  %1722 = vmatpush.bf16.msrb.mxu0 %v4803_v32  ;;  %v6060_v32 = vld [vmem:[%s7541_s1 + $0x8c] sm:$0xf] }
 0x135   :  { %v4923_v36 = vor.u32 %v6060_v32, %v4920_v33  ;;  %v6157_v33 = vld [vmem:[#allocation10 + $0x164] sm:$0xf] }
 0x138   :  { %1709 = vmatpush.bf16.msrb.mxu2 %v4799_v31  ;;  %1723 = vmatpush.bf16.msrb.mxu0 %v4787_v39  ;;  %v6101_v31 = vld [vmem:[#allocation4 + $0x28] sm:$0xff]  ;;  %v4904_v39 = vld [vmem:[%s7541_s1 + $0x78] sm:$0xf0] }
 0x13c   :  { %1710 = vmatpush.bf16.msrb.mxu2 %v4783_v38  ;;  %1724 = vmatpush.bf16.msrb.mxu0 %v4771_v47  ;;  %v6056_v38 = vld [vmem:[%s7541_s1 + $0x6c] sm:$0xf] }
 0x13d   :  { %v4907_v41 = vor.u32 %v6056_v38, %v4904_v39  ;;  %v6092_v39 = vld [vmem:[#allocation2 + $0x1cc] sm:$0xf] }
 0x140   :  { %1711 = vmatpush.bf16.msrb.mxu2 %v4767_v46  ;;  %v5124_v46 = vld [vmem:[#allocation10 + $0x1f0] sm:$0xf0] }
 0x17c   :  { %v691_v49 = vpop.f32.mrf.mxu0 }
 0x17d   :  { %v723_v51 = vadd.f32 %v6930_v58, %v691_v49  ;;  %v4573_v58 = vld [vmem:[#allocation9] sm:$0xf] }
 0x17e   :  { %v4574_v7 = vor.u32 %v5981_v5, %v4573_v58  ;;  %v6059_v58 = vld [vmem:[%s7541_s1 + $0x84] sm:$0xf]  ;;  %v4912_v5 = vld [vmem:[%s7541_s1 + $0x90] sm:$0xf0] }
 0x17f   :  { %v730_v60 = vadd.f32 %v6335_v44, %v723_v51  ;;  %v4915_v52 = vor.u32 %v6059_v58, %v4912_v5  ;;  %v6044_v5 = vld [vmem:[%s7551_s11 + $0x8] sm:$0xff] }
 0x180   :  { %1235 = vmatpush.bf16.msrb.mxu3 %v4574_v7 }
 0x181   :  { %v4429_v3 = vmul.f32 -1.442695, %v730_v60  ;;  %v4926_v60 = vld [vmem:[%s7541_s1 + $0xa0] sm:$0xf] }
 0x182   :  { %v4927_v1 = vor.u32 %v6065_v61, %v4926_v60  ;;  %v1038_v21 = vpop.f32.mrf.mxu1  ;;  %v6167_v60 = vld [vmem:[#allocation10 + $0x1ac] sm:$0xf0] }
 0x183   :  { %6360 = vpow2.f32 %v4429_v3  ;;  %v6061_v3 = vld [vmem:[%s7541_s1 + $0x8c] sm:$0xf0] }
 0x184   :  { %v693_v15 = vpop.f32.mrf.mxu0  ;;  %v4911_v7 = vor.u32 %v6061_v3, %v4910_v2  ;;  %1426 = vmatpush.bf16.msra.mxu3 %v6050_v25 }
 0x185   :  { %v4751_v15 = vld [vmem:[%s7540_s0 + $0x8] sm:$0xff] }
 0x186   :  { %v6983_v16 = vpack.c.bf16 %v4751_v15, %v4751_v15  ;;  %v6991_v18 = vpop.f32.mrf.mxu2 }
 0x188   :  { %v6993_v22 = vpop.f32.mrf.mxu3 }
 0x189   :  { %v6361_v29 = vpop.eup %6360 }
 0x18a   :  { %v734_v30 = vadd.f32 1.0, %v6361_v29  ;;  %v1040_v23 = vpop.f32.mrf.mxu1  ;;  %v6049_v29 = vld [vmem:[%s7551_s11 + $0x30] sm:$0xff] }
 0x18b   :  { %1427 = vmatpush.bf16.msra.mxu3 %v6049_v29  ;;  %v6096_v23 = vld [vmem:[#allocation2 + $0x1ec] sm:$0xf]  ;;  %v6159_v29 = vld [vmem:[#allocation10 + $0x16c] sm:$0xf0] }
 0x18c   :  { %6362 = vrcp.f32 %v734_v30  ;;  %v746_v49 = vand.u32 2147483648, %v734_v30  ;;  %v744_v51 = vand.u32 2147483647, %v734_v30  ;;  %vm740_vm14 = vweird.f32 %v734_v30  ;;  %v6989_v17 = vpop.f32.mrf.mxu0 }
 0x18e   :  { %v747_v54 = vor.u32 1.1754944e-38, %v746_v49  ;;  %vm745_vm1 = vcmp.eq.f32.partialorder %v744_v51, 8.507059e+37  ;;  %v1053_v20 = vpop.f32.mrf.mxu2  ;;  %v6046_v49 = vld [vmem:[%s7551_s11 + $0x18] sm:$0xff]  ;;  %v6171_v51 = vld [vmem:[#allocation10 + $0x1cc] sm:$0xf0] }
 0x18f   :  { %1428 = vmatpush.bf16.msra.mxu3 %v6048_v34  ;;  %v5060_v34 = vld [vmem:[#allocation10 + $0x170] sm:$0xf0] }
 0x190   :  { %v1027_v24 = vpop.f32.mrf.mxu3  ;;  %v5063_v38 = vor.u32 %v6157_v33, %v5060_v34  ;;  %v6076_v33 = vld [vmem:[#allocation2 + $0x14c] sm:$0xf] }
 0x192   :  { %v6363_v44 = vpop.eup %6362 }
 0x193   :  { %v736_v45 = vmul.f32 %v6363_v44, %v734_v30  ;;  %vm741_vm13 = vweird.f32 %v6363_v44  ;;  %v4939_v30 = vor.u32 %v6064_v26, %v4936_v4  ;;  %1429 = vmatpush.bf16.msra.mxu3 %v6047_v40  ;;  %v4888_v26 = vld [vmem:[#allocation2 + $0x1f8] sm:$0xf0]  ;;  %v5058_v4 = vld [vmem:[#allocation10 + $0x160] sm:$0xf] }
 0x194   :  { %vm742_vm15 = vmor %vm740_vm14, %vm741_vm13  ;;  %v1066_v19 = vpop.f32.mrf.mxu0  ;;  %v5059_v32 = vor.u32 %v6159_v29, %v5058_v4  ;;  %v5042_v40 = vld [vmem:[#allocation10 + $0x140] sm:$0xf]  ;;  %vm1477_vm14 = vcmask 523264  }
 0x195   :  { %v737_v48 = vsub.f32 1.0, %v736_v45  ;;  %v6173_v45 = vld [vmem:[#allocation10 + $0x1e4] sm:$0xf] }
 0x197   :  { %v738_v50 = vmul.f32 %v6363_v44, %v737_v48  ;;  %v5127_v48 = vor.u32 %v6173_v45, %v5124_v46  ;;  %1430 = vmatpush.bf16.msra.mxu3 %v6046_v49  ;;  %v5044_v46 = vld [vmem:[#allocation10 + $0x150] sm:$0xf0] }
 0x199   :  { %v739_v53 = vadd.f32 %v6363_v44, %v738_v50  ;;  %v5106_v50 = vld [vmem:[#allocation10 + $0x1c0] sm:$0xf] }
 0x19b   :  { %v743_v55 = vsel %vm742_vm15, %v6363_v44, %v739_v53  ;;  %v6175_v44 = vld [vmem:[#allocation10 + $0x1ec] sm:$0xf0]  ;;  %v5107_v53 = vor.u32 %v6171_v51, %v5106_v50 }
 0x19c   :  { %v748_v56 = vsel %vm745_vm1, %v747_v54, %v743_v55  ;;  %v5123_v47 = vor.u32 %v6175_v44, %v5122_v43  ;;  %v6169_v54 = vld [vmem:[#allocation10 + $0x1c4] sm:$0xf]  ;;  %v5108_v55 = vld [vmem:[#allocation10 + $0x1d0] sm:$0xf0]  ;;  %v6155_v43 = vld [vmem:[#allocation10 + $0x14c] sm:$0xf0] }
 0x19d   :  { %v751_v57 = vsub.f32 1.0, %v748_v56  ;;  %v750_v6 = vmul.f32 %v748_v56, %v6921_v27  ;;  %v7033_v56 = vld [vmem:[%s7550_s10] sm:$0xf]  ;;  %v6153_v44 = vld [vmem:[#allocation10 + $0x144] sm:$0xf]  ;;  %v5043_v45 = vor.u32 %v6155_v43, %v5042_v40 }
 0x19e   :  { %v1283_v61 = vperm.slane %v7033_v56, 1  ;;  %v1282_v15 = vperm.slane %v7033_v56, 0 }
 0x19f   :  { %v789_v59 = vmul.f32 %v6934_v35, %v751_v57  ;;  %v4931_v35 = vor.u32 %v6063_v62, %v4928_v63  ;;  %v5111_v57 = vor.u32 %v6169_v54, %v5108_v55  ;;  %v6165_v63 = vld [vmem:[#allocation10 + $0x1a4] sm:$0xf]  ;;  %v4856_v54 = vld [vmem:[#allocation2 + $0x1b8] sm:$0xf0] }
 0x1a1   :  { %v790_v0 = vadd.f32 %v789_v59, %v750_v6  ;;  %v6045_v6 = vld [vmem:[%s7551_s11 + $0x10] sm:$0xff] }
 0x1a2   :  { %v5090_v59 = vld [vmem:[#allocation10 + $0x1a0] sm:$0xf]  ;;  %1431 = vmatpush.bf16.msra.mxu3 %v6045_v6 }
 0x1a3   :  { %v823_v27 = vpack.c.bf16 %v790_v0, %v790_v0  ;;  %v5091_v62 = vor.u32 %v6167_v60, %v5090_v59  ;;  %v5092_v0 = vld [vmem:[#allocation10 + $0x1b0] sm:$0xf0]  ;;  %v5026_v6 = vld [vmem:[#allocation10 + $0x120] sm:$0xf]  ;;  %v6151_v59 = vld [vmem:[#allocation10 + $0x12c] sm:$0xf0] }
 0x1a4   :  { %v6149_v60 = vld [vmem:[#allocation10 + $0x124] sm:$0xf] }
 0x1a5   :  { %1236 = vmatmul.bf16.vlgmr.msrb.gmra.mxu3 %v823_v27  ;;  %1249 = vmatmul.bf16.vlgmr.msra.gmra.mxu1 %v823_v27 }
 0x1a6   :  { %1262 = vmatmul.bf16.vlgmr.msra.gmra.mxu2 %v823_v27  ;;  %1275 = vmatmul.bf16.vlgmr.msra.gmra.mxu0 %v823_v27 }
 0x1a7   :  { %1824 = vmatpush.bf16.msra.mxu2 %v4927_v1  ;;  %1837 = vmatpush.bf16.msra.mxu0 %v4931_v35  ;;  %v1285_v1 = vperm.slane %v7033_v56, 3  ;;  %v5095_v35 = vor.u32 %v6165_v63, %v5092_v0  ;;  %v5027_v63 = vor.u32 %v6151_v59, %v5026_v6  ;;  %v5028_v0 = vld [vmem:[#allocation10 + $0x130] sm:$0xf0] }
 0x1a8   :  { %1432 = vmatpush.bf16.msra.mxu3 %v6044_v5  ;;  %v6147_v5 = vld [vmem:[#allocation10 + $0x10c] sm:$0xf0] }
 0x1ab   :  { %1825 = vmatpush.bf16.msra.mxu2 %v4911_v7  ;;  %1838 = vmatpush.bf16.msra.mxu0 %v4915_v52  ;;  %v5074_v7 = vld [vmem:[#allocation10 + $0x180] sm:$0xf] }
 0x1ac   :  { %v5075_v12 = vor.u32 %v6163_v9, %v5074_v7  ;;  %v6145_v7 = vld [vmem:[#allocation10 + $0x104] sm:$0xf] }
 0x1af   :  { %1826 = vmatpush.bf16.msra.mxu2 %v4895_v13  ;;  %1839 = vmatpush.bf16.msra.mxu0 %v4899_v14  ;;  %v5076_v13 = vld [vmem:[#allocation10 + $0x190] sm:$0xf0] }
 0x1b0   :  { %v5079_v19 = vor.u32 %v6161_v8, %v5076_v13  ;;  %v5012_v8 = vld [vmem:[#allocation10 + $0x110] sm:$0xf0] }
 0x1b6   :  { %1712 = vmatmul.bf16.vlgmr.msrb.gmra.mxu2 %v6925_v28  ;;  %1725 = vmatmul.bf16.vlgmr.msrb.gmra.mxu0 %v6925_v28 }
 0x1b7   :  { %1863 = vmatpush.bf16.msrb.mxu2 %v4939_v30  ;;  %2058 = vmatpush.bf16.msrb.mxu0 %v6101_v31  ;;  %v4891_v31 = vor.u32 %v6096_v23, %v4888_v26  ;;  %v4824_v23 = vld [vmem:[#allocation2 + $0x178] sm:$0xf0] }
 0x1bb   :  { %1864 = vmatpush.bf16.msrb.mxu2 %v4923_v36  ;;  %2059 = vmatpush.bf16.msrb.mxu0 %v6100_v37 }
 0x1bf   :  { %1865 = vmatpush.bf16.msrb.mxu2 %v4907_v41  ;;  %2060 = vmatpush.bf16.msrb.mxu0 %v6099_v42 }
 0x1c6   :  { %4940 = vmatmul.msk.bf16.vlgmr.msra.gmra.mxu2 %vm478_vm0, %v6983_v16  ;;  %4941 = vmatmul.msk.bf16.vlgmr.msra.gmra.mxu0 %vm478_vm0, %v6983_v16 }
 0x1c7   :  { %2360 = vmatpush.bf16.msra.mxu2 %v5123_v47  ;;  %2373 = vmatpush.bf16.msra.mxu0 %v5127_v48  ;;  %v5047_v48 = vor.u32 %v6153_v44, %v5044_v46 }
 0x1cb   :  { %2361 = vmatpush.bf16.msra.mxu2 %v5107_v53  ;;  %2374 = vmatpush.bf16.msra.mxu0 %v5111_v57  ;;  %v6088_v53 = vld [vmem:[#allocation2 + $0x1ac] sm:$0xf] }
 0x1cc   :  { %v4859_v57 = vor.u32 %v6088_v53, %v4856_v54 }
 0x1cf   :  { %2362 = vmatpush.bf16.msra.mxu2 %v5091_v62  ;;  %2375 = vmatpush.bf16.msra.mxu0 %v5095_v35  ;;  %v4840_v35 = vld [vmem:[#allocation2 + $0x198] sm:$0xf0] }
 0x1d3   :  { %2363 = vmatpush.bf16.msra.mxu2 %v5075_v12  ;;  %2376 = vmatpush.bf16.msra.mxu0 %v5079_v19  ;;  %v1284_v19 = vperm.slane %v7033_v56, 2 }
 0x1d6   :  { %4943 = vmatmul.msk.bf16.vlgmr.msrb.gmra.mxu2 %vm478_vm0, %v6983_v16  ;;  %4992 = vmatmul.msk.bf16.vlgmr.msrb.gmra.mxu0 %vm478_vm0, %v6983_v16 }
 0x1d7   :  { %2364 = vmatpush.bf16.msra.mxu2 %v5059_v32  ;;  %2377 = vmatpush.bf16.msra.mxu0 %v5063_v38 }
 0x1db   :  { %2365 = vmatpush.bf16.msra.mxu2 %v5043_v45  ;;  %2378 = vmatpush.bf16.msra.mxu0 %v5047_v48  ;;  %v4776_v48 = vld [vmem:[#allocation2 + $0x118] sm:$0xf0] }
 0x1df   :  { %2366 = vmatpush.bf16.msra.mxu2 %v5027_v63 }
 0x222   :  { %v1250_v27 = vpop.f32.mrf.mxu1 }
 0x223   :  { %v1251_v2 = vadd.f32 %v1250_v27, %v1038_v21  ;;  %v1276_v3 = vpop.f32.mrf.mxu0  ;;  %v6043_v21 = vld [vmem:[%s7551_s11] sm:$0xff]  ;;  %v5031_v27 = vor.u32 %v6149_v60, %v5028_v0 }
 0x224   :  { %v1277_v58 = vadd.f32 %v1276_v3, %v6989_v17  ;;  %1433 = vmatpush.bf16.msra.mxu3 %v6043_v21  ;;  %v6080_v21 = vld [vmem:[#allocation2 + $0x16c] sm:$0xf] }
 0x225   :  { %v1291_v52 = vadd.f32 %v1283_v61, %v1251_v2  ;;  %2379 = vmatpush.bf16.msra.mxu0 %v5031_v27 }
 0x226   :  { %v1293_v10 = vadd.f32 %v1285_v1, %v1277_v58  ;;  %v6084_v1 = vld [vmem:[#allocation2 + $0x18c] sm:$0xf]  ;;  %v5010_v58 = vld [vmem:[#allocation10 + $0x100] sm:$0xf] }
 0x227   :  { %v4700_v14 = vmul.f32 -1.442695, %v1291_v52  ;;  %v4843_v3 = vor.u32 %v6084_v1, %v4840_v35  ;;  %v5011_v9 = vor.u32 %v6147_v5, %v5010_v58 }
 0x228   :  { %v4701_v20 = vmul.f32 -1.442695, %v1293_v10  ;;  %v1237_v17 = vpop.f32.mrf.mxu3  ;;  %1743 = vmatpush.bf16.msrb.mxu3 %v4891_v31  ;;  %v5015_v10 = vor.u32 %v6145_v7, %v5012_v8 }
 0x229   :  { %6364 = vpow2.f32 %v4700_v14  ;;  %v1238_v24 = vadd.f32 %v1237_v17, %v6993_v22  ;;  %v7051_v25 = vpop.f32.mrf.mxu2  ;;  %v4872_v22 = vld [vmem:[#allocation2 + $0x1d8] sm:$0xf0]  ;;  %2367 = vmatpush.bf16.msra.mxu2 %v5011_v9 }
 0x22a   :  { %6366 = vpow2.f32 %v4701_v20  ;;  %v1252_v30 = vpop.f32.mrf.mxu1  ;;  %v4875_v42 = vor.u32 %v6092_v39, %v4872_v22  ;;  %2380 = vmatpush.bf16.msra.mxu0 %v5015_v10 }
 0x22b   :  { %v1290_v36 = vadd.f32 %v1282_v15, %v1238_v24  ;;  %v1278_v37 = vpop.f32.mrf.mxu0  ;;  %v1264_v15 = vadd.f32 %v7051_v25, %v6991_v18  ;;  %v4827_v24 = vor.u32 %v6080_v21, %v4824_v23  ;;  %v4808_v18 = vld [vmem:[#allocation2 + $0x158] sm:$0xf0] }
 0x22c   :  { %1744 = vmatpush.bf16.msrb.mxu3 %v4875_v42  ;;  %v4811_v34 = vor.u32 %v6076_v33, %v4808_v18  ;;  %v4792_v42 = vld [vmem:[#allocation2 + $0x138] sm:$0xf0]  ;;  %v6090_v33 = vld [vmem:[#allocation2 + $0x1b4] sm:$0xf0] }
 0x22d   :  { %v4699_v41 = vmul.f32 -1.442695, %v1290_v36  ;;  %v1292_v30 = vadd.f32 %v1284_v19, %v1264_v15  ;;  %v6052_v15 = vld [vmem:[#allocation12 + $0x8] sm:$0xff]  ;;  %v4886_v19 = vld [vmem:[#allocation2 + $0x1e8] sm:$0xf] }
 0x22f   :  { %v6365_v47 = vpop.eup %6364  ;;  %6368 = vpow2.f32 %v4699_v41  ;;  %v6072_v41 = vld [vmem:[#allocation2 + $0x12c] sm:$0xf] }
 0x230   :  { %v6367_v49 = vpop.eup %6366  ;;  %v7053_v50 = vadd.f32 1.0, %v6365_v47  ;;  %v1239_v51 = vpop.f32.mrf.mxu3  ;;  %1745 = vmatpush.bf16.msrb.mxu3 %v4859_v57  ;;  %v4795_v46 = vor.u32 %v6072_v41, %v4792_v42  ;;  %v6068_v47 = vld [vmem:[#allocation2 + $0x10c] sm:$0xf]  ;;  %v4790_v41 = vld [vmem:[#allocation2 + $0x128] sm:$0xf] }
 0x231   :  { %v1265_v55 = vpop.f32.mrf.mxu2  ;;  %v7056_v61 = vadd.f32 1.0, %v6367_v49  ;;  %v4779_v57 = vor.u32 %v6068_v47, %v4776_v48  ;;  %v6074_v42 = vld [vmem:[#allocation2 + $0x134] sm:$0xf0]  ;;  %v6336_v48 = vld [vmem:[%s7552_s12] ss:$0 sm:$0xff] }
 0x232   :  { %6370 = vrcp.f32 %v7053_v50  ;;  %v1328_v56 = vand.u32 2147483648, %v7053_v50  ;;  %vm1322_vm3 = vweird.f32 %v7053_v50  ;;  %v1326_v38 = vand.u32 2147483647, %v7053_v50 }
 0x233   :  { %v7058_v62 = vpop.f32.mrf.mxu0  ;;  %6372 = vrcp.f32 %v7056_v61  ;;  %v1348_v58 = vand.u32 2147483648, %v7056_v61  ;;  %vm1342_vm11 = vweird.f32 %v7056_v61  ;;  %v1346_v5 = vand.u32 2147483647, %v7056_v61 }
 0x234   :  { %1746 = vmatpush.bf16.msrb.mxu3 %v4843_v3  ;;  %v1329_v49 = vor.u32 1.1754944e-38, %v1328_v56  ;;  %vm1327_vm7 = vcmp.eq.f32.partialorder %v1326_v38, 8.507059e+37  ;;  %v4838_v56 = vld [vmem:[#allocation2 + $0x188] sm:$0xf] }
 0x235   :  { %v6369_v2 = vpop.eup %6368  ;;  %vm1347_vm13 = vcmp.eq.f32.partialorder %v1346_v5, 8.507059e+37 }
 0x236   :  { %v7060_v52 = vadd.f32 1.0, %v6369_v2 }
 0x238   :  { %v6371_v12 = vpop.eup %6370  ;;  %6374 = vrcp.f32 %v7060_v52  ;;  %1747 = vmatpush.bf16.msrb.mxu3 %v4827_v24  ;;  %v1307_v37 = vand.u32 2147483647, %v7060_v52  ;;  %v1309_v22 = vand.u32 2147483648, %v7060_v52  ;;  %vm1303_vm6 = vweird.f32 %v7060_v52 }
 0x239   :  { %v1318_v13 = vmul.f32 %v6371_v12, %v7053_v50  ;;  %v1713_v14 = vpop.f32.mrf.mxu2  ;;  %v7068_v26 = vpop.eup %6372  ;;  %vm1323_vm2 = vweird.f32 %v6371_v12  ;;  %6376 = vtanh.f32 %v1292_v30  ;;  %v6094_v30 = vld [vmem:[#allocation2 + $0x1d4] sm:$0xf0] }
 0x23a   :  { %v1338_v25 = vmul.f32 %v7068_v26, %v7056_v61  ;;  %vm7078_vm4 = vmor %vm1322_vm3, %vm1323_vm2  ;;  %v1310_v54 = vor.u32 1.1754944e-38, %v1309_v22  ;;  %vm1308_vm9 = vcmp.eq.f32.partialorder %v1307_v37, 8.507059e+37  ;;  %vm1343_vm10 = vweird.f32 %v7068_v26  ;;  %v6054_v61 = vld [vmem:[#allocation12 + $0x18] sm:$0xff]  ;;  %v6082_v37 = vld [vmem:[#allocation2 + $0x174] sm:$0xf0] }
 0x23b   :  { %v1319_v20 = vsub.f32 1.0, %v1318_v13  ;;  %v1728_v17 = vpop.f32.mrf.mxu0  ;;  %vm1344_vm12 = vmor %vm1342_vm11, %vm1343_vm10  ;;  %1485 = vmatpush.bf16.msrb.mxu1 %v6054_v61  ;;  %v6078_v22 = vld [vmem:[#allocation2 + $0x154] sm:$0xf0]  ;;  %v6176_v61 = vld [vmem:[#allocation10 + $0x1f4] sm:$0xf0] }
 0x23c   :  { %1748 = vmatpush.bf16.msrb.mxu3 %v4811_v34  ;;  %v1339_v50 = vsub.f32 1.0, %v1338_v25  ;;  %v6051_v17 = vld [vmem:[#allocation12] sm:$0xff]  ;;  %v6086_v25 = vld [vmem:[#allocation2 + $0x194] sm:$0xf0] }
 0x23d   :  { %v1320_v4 = vmul.f32 %v6371_v12, %v1319_v20  ;;  %v6098_v20 = vld [vmem:[#allocation2 + $0x1f4] sm:$0xf0]  ;;  %v4839_v34 = vor.u32 %v6086_v25, %v4838_v56 }
 0x23e   :  { %v6375_v29 = vpop.eup %6374  ;;  %v1340_v60 = vmul.f32 %v7068_v26, %v1339_v50  ;;  %v4887_v21 = vor.u32 %v6098_v20, %v4886_v19  ;;  %v6172_v19 = vld [vmem:[#allocation10 + $0x1d4] sm:$0xf0]  ;;  %v5034_v25 = vld [vmem:[#allocation10 + $0x128] sm:$0xf] }
 0x23f   :  { %v1299_v31 = vmul.f32 %v6375_v29, %v7060_v52  ;;  %v1321_v32 = vadd.f32 %v6371_v12, %v1320_v4  ;;  %vm1304_vm5 = vweird.f32 %v6375_v29  ;;  %v6377_v59 = vpop.eup %6376  ;;  %v1349_v52 = vor.u32 1.1754944e-38, %v1348_v58  ;;  %v6058_v58 = vld [vmem:[%s7541_s1 + $0x74] sm:$0xf0] }
 0x240   :  { %vm1305_vm8 = vmor %vm1303_vm6, %vm1304_vm5  ;;  %1749 = vmatpush.bf16.msrb.mxu3 %v4795_v46  ;;  %v1341_v3 = vadd.f32 %v7068_v26, %v1340_v60 }
 0x241   :  { %v1300_v36 = vsub.f32 1.0, %v1299_v31  ;;  %v1715_v39 = vpop.f32.mrf.mxu2  ;;  %v1325_v44 = vsel %vm7078_vm4, %v6371_v12, %v1321_v32  ;;  %v4854_v32 = vld [vmem:[#allocation2 + $0x1a8] sm:$0xf] }
 0x242   :  { %v1330_v55 = vsel %vm1327_vm7, %v1329_v49, %v1325_v44  ;;  %v1345_v7 = vsel %vm1344_vm12, %v7068_v26, %v1341_v3  ;;  %v4855_v18 = vor.u32 %v6090_v33, %v4854_v32  ;;  %v4806_v39 = vld [vmem:[#allocation2 + $0x148] sm:$0xf]  ;;  %v5050_v33 = vld [vmem:[#allocation10 + $0x148] sm:$0xf] }
 0x243   :  { %v1301_v43 = vmul.f32 %v6375_v29, %v1300_v36  ;;  %v1841_v45 = vpop.f32.mrf.mxu0  ;;  %v1352_v0 = vmul.f32 0.0, %v1330_v55  ;;  %v1350_v10 = vsel %vm1347_vm13, %v1349_v52, %v1345_v7  ;;  %v4822_v36 = vld [vmem:[#allocation2 + $0x168] sm:$0xf]  ;;  %v4807_v40 = vor.u32 %v6078_v22, %v4806_v39  ;;  %v6066_v55 = vld [vmem:[%s7541_s1 + $0xb4] sm:$0xf0]  ;;  %v6112_v52 = vld [vmem:[#allocation7 + $0x28] sm:$0xff] }
 0x244   :  { %v7085_v51 = vadd.f32 %v1841_v45, %v7058_v62  ;;  %1750 = vmatpush.bf16.msrb.mxu3 %v4779_v57  ;;  %v4823_v38 = vor.u32 %v6082_v37, %v4822_v36  ;;  %v4774_v44 = vld [vmem:[#allocation2 + $0x108] sm:$0xf]  ;;  %v6070_v45 = vld [vmem:[#allocation2 + $0x114] sm:$0xf0]  ;;  %v6109_v22 = vld [vmem:[#allocation6 + $0x78] sm:$0xff] }
 0x245   :  { %v1302_v53 = vadd.f32 %v6375_v29, %v1301_v43  ;;  %v4791_v43 = vor.u32 %v6074_v42, %v4790_v41  ;;  %v4775_v46 = vor.u32 %v6070_v45, %v4774_v44  ;;  %v4902_v3 = vld [vmem:[%s7541_s1 + $0x68] sm:$0xf]  ;;  %v5018_v37 = vld [vmem:[#allocation10 + $0x108] sm:$0xf]  ;;  %v6107_v41 = vld [vmem:[#allocation6 + $0x68] sm:$0xff] }
 0x246   :  { %v4903_v5 = vor.u32 %v6058_v58, %v4902_v3  ;;  %v6106_v45 = vld [vmem:[#allocation6 + $0x60] sm:$0xff]  ;;  %v6174_v58 = vld [vmem:[#allocation10 + $0x1ec] sm:$0xf] }
 0x247   :  { %v1306_v6 = vsel %vm1305_vm8, %v6375_v29, %v1302_v53  ;;  %v4870_v29 = vld [vmem:[#allocation2 + $0x1c8] sm:$0xf] }
 0x248   :  { %v1311_v63 = vsel %vm1308_vm9, %v1310_v54, %v1306_v6  ;;  %v4871_v31 = vor.u32 %v6094_v30, %v4870_v29  ;;  %v4934_v54 = vld [vmem:[%s7541_s1 + $0xa8] sm:$0xf]  ;;  %v5066_v30 = vld [vmem:[#allocation10 + $0x168] sm:$0xf] }
 0x249   :  { %v1353_v27 = vmul.f32 %v6377_v59, %v1311_v63  ;;  %v1828_v1 = vpop.f32.mrf.mxu2  ;;  %v4935_v59 = vor.u32 %v6066_v55, %v4934_v54  ;;  %v4918_v63 = vld [vmem:[%s7541_s1 + $0x88] sm:$0xf] }
 0x24a   :  { %v7089_v62 = vadd.f32 %v1828_v1, %v1713_v14  ;;  %v6053_v14 = vld [vmem:[#allocation12 + $0x10] sm:$0xff] }
 0x24b   :  { %v7091_v35 = vadd.f32 %v1353_v27, %v1352_v0  ;;  %v1843_v2 = vpop.f32.mrf.mxu0  ;;  %1486 = vmatpush.bf16.msrb.mxu1 %v6053_v14  ;;  %v6062_v0 = vld [vmem:[%s7541_s1 + $0x94] sm:$0xf0] }
 0x24c   :  { %v4919_v2 = vor.u32 %v6062_v0, %v4918_v63 }
 0x24d   :  { %6378 = vtanh.f32 %v7091_v35 }
 0x24f   :  { %1487 = vmatpush.bf16.msrb.mxu1 %v6052_v15  ;;  %v5114_v15 = vld [vmem:[#allocation10 + $0x1c8] sm:$0xf] }
 0x250   :  { %v5115_v20 = vor.u32 %v6172_v19, %v5114_v15 }
 0x251   :  { %v1830_v9 = vpop.f32.mrf.mxu2 }
 0x253   :  { %v6379_v8 = vpop.eup %6378  ;;  %1488 = vmatpush.bf16.msrb.mxu1 %v6051_v17  ;;  %v7106_v23 = vpop.f32.mrf.mxu0  ;;  %v5098_v17 = vld [vmem:[#allocation10 + $0x1a8] sm:$0xf] }
 0x254   :  { %v1356_v12 = vmul.f32 %v6379_v8, %v1350_v10  ;;  %v6111_v8 = vld [vmem:[#allocation7 + $0x20] sm:$0xff]  ;;  %v6110_v10 = vld [vmem:[#allocation7 + $0x18] sm:$0xff] }
 0x256   :  { %v7100_v13 = vpack.c.bf16 %v1356_v12, %v1356_v12  ;;  %v5130_v12 = vld [vmem:[#allocation10 + $0x1e8] sm:$0xf] }
 0x257   :  { %1730 = vmatpush.bf16.msra.mxu1 %v4887_v21  ;;  %v5131_v14 = vor.u32 %v6176_v61, %v5130_v12  ;;  %v6168_v21 = vld [vmem:[#allocation10 + $0x1b4] sm:$0xf0]  ;;  %v6166_v61 = vld [vmem:[#allocation10 + $0x1ac] sm:$0xf] }
 0x258   :  { %1434 = vmatmul.bf16.vlgmr.msra.gmra.mxu3 %v7100_v13  ;;  %2368 = vmatmul.bf16.vlgmr.msra.gmra.mxu2 %v7100_v13 }
 0x259   :  { %2381 = vmatmul.bf16.vlgmr.msra.gmra.mxu0 %v7100_v13  ;;  %v7108_v24 = vpop.f32.mrf.mxu2  ;;  %2022 = vmatpush.bf16.msra.mxu3 %v6109_v22  ;;  %v5052_v22 = vld [vmem:[#allocation10 + $0x158] sm:$0xf0] }
 0x25b   :  { %v2064_v26 = vpop.f32.mrf.mxu0  ;;  %1731 = vmatpush.bf16.msra.mxu1 %v4871_v31  ;;  %v6160_v31 = vld [vmem:[#allocation10 + $0x174] sm:$0xf0] }
 0x25c   :  { %v5082_v26 = vld [vmem:[#allocation10 + $0x188] sm:$0xf]  ;;  %v5067_v32 = vor.u32 %v6160_v31, %v5066_v30 }
 0x25f   :  { %1732 = vmatpush.bf16.msra.mxu1 %v4855_v18  ;;  %v6156_v18 = vld [vmem:[#allocation10 + $0x154] sm:$0xf0] }
 0x260   :  { %v5051_v56 = vor.u32 %v6156_v18, %v5050_v33  ;;  %v5068_v33 = vld [vmem:[#allocation10 + $0x178] sm:$0xf0] }
 0x261   :  { %v1869_v4 = vpop.f32.mrf.mxu2 }
 0x262   :  { %v6164_v4 = vld [vmem:[#allocation10 + $0x194] sm:$0xf0] }
 0x263   :  { %1733 = vmatpush.bf16.msra.mxu1 %v4839_v34  ;;  %v5083_v29 = vor.u32 %v6164_v4, %v5082_v26  ;;  %v6152_v34 = vld [vmem:[#allocation10 + $0x134] sm:$0xf0]  ;;  %v6162_v4 = vld [vmem:[#allocation10 + $0x18c] sm:$0xf] }
 0x264   :  { %v5035_v36 = vor.u32 %v6152_v34, %v5034_v25 }
 0x267   :  { %1734 = vmatpush.bf16.msra.mxu1 %v4823_v38  ;;  %v6148_v38 = vld [vmem:[#allocation10 + $0x114] sm:$0xf0] }
 0x268   :  { %1751 = vmatmul.bf16.vlgmr.msrb.gmra.mxu3 %v6925_v28  ;;  %v5019_v39 = vor.u32 %v6148_v38, %v5018_v37 }
 0x26b   :  { %1735 = vmatpush.bf16.msra.mxu1 %v4807_v40  ;;  %v7147_v40 = vld [vmem:[%s7543_s3 + $0x4] sm:$0xf] }
 0x26c   :  { %v1875_v42 = vperm.slane %v7147_v40, 1  ;;  %v1876_v34 = vperm.slane %v7147_v40, 2 }
 0x26e   :  { %v1883_v44 = vadd.f32 %v1875_v42, %v7085_v51 }
 0x26f   :  { %1736 = vmatpush.bf16.msra.mxu1 %v4791_v43  ;;  %v1874_v43 = vperm.slane %v7147_v40, 0 }
 0x273   :  { %1737 = vmatpush.bf16.msra.mxu1 %v4775_v46  ;;  %v1882_v46 = vadd.f32 %v1874_v43, %v7089_v62  ;;  %v6150_v43 = vld [vmem:[#allocation10 + $0x12c] sm:$0xf] }
 0x275   :  { %v4945_v54 = vmul.f32 -1.442695, %v1882_v46 }
 0x2d6   :  { %v7110_v47 = vpop.f32.mrf.mxu0 }
 0x2db   :  { %v1435_v49 = vpop.f32.mrf.mxu3  ;;  %v7115_v50 = vpop.f32.mrf.mxu2 }
 0x2dc   :  { %v1436_v53 = vadd.f32 %v6336_v48, %v1435_v49  ;;  %v6105_v48 = vld [vmem:[#allocation6 + $0x58] sm:$0xff]  ;;  %v4946_v49 = vmul.f32 -1.442695, %v1883_v44  ;;  %v5036_v44 = vld [vmem:[#allocation10 + $0x138] sm:$0xf0] }
 0x2de   :  { %v1439_v57 = vmax.f32 %v1436_v53, 0.0  ;;  %v2384_v6 = vpop.f32.mrf.mxu0  ;;  %v6337_v53 = vld [vmem:[%s7554_s14] ss:$0 sm:$0xff]  ;;  %6380 = vpow2.f32 %v4946_v49 }
 0x2df   :  { %v1877_v6 = vperm.slane %v7147_v40, 3  ;;  %6382 = vpow2.f32 %v4945_v54 }
 0x2e0   :  { %v1448_v60 = vpack.c.bf16 %v1439_v57, %v1439_v57 }
 0x2e2   :  { %4750 = vmatmul.msk.bf16.vlgmr.msrb.gmra.mxu1 %vm1477_vm14, %v1448_v60  ;;  %v6104_v60 = vld [vmem:[#allocation6 + $0x50] sm:$0xff] }
 0x2e3   :  { %v1437_v27 = vpop.f32.mrf.mxu3  ;;  %v2371_v1 = vpop.f32.mrf.mxu2  ;;  %1850 = vmatpush.bf16.msrb.mxu1 %v4935_v59 }
 0x2e4   :  { %v6381_v62 = vpop.eup %6380 }
 0x2e5   :  { %v6383_v63 = vpop.eup %6382  ;;  %v7162_v0 = vadd.f32 1.0, %v6381_v62 }
 0x2e6   :  { %v7164_v3 = vadd.f32 1.0, %v6383_v63  ;;  %v6146_v63 = vld [vmem:[#allocation10 + $0x10c] sm:$0xf] }
 0x2e7   :  { %1851 = vmatpush.bf16.msrb.mxu1 %v4919_v2  ;;  %v6103_v2 = vld [vmem:[#allocation6 + $0x48] sm:$0xff]  ;;  %6384 = vrcp.f32 %v7162_v0  ;;  %vm1914_vm1 = vweird.f32 %v7162_v0  ;;  %v1918_v49 = vand.u32 2147483647, %v7162_v0 }
 0x2e8   :  { %v1901_v54 = vand.u32 2147483648, %v7164_v3  ;;  %vm1895_vm4 = vweird.f32 %v7164_v3 }
 0x2e9   :  { %vm1919_vm6 = vcmp.eq.f32.partialorder %v1918_v49, 8.507059e+37 }
 0x2eb   :  { %v7136_v7 = vpop.f32.mrf.mxu3  ;;  %1852 = vmatpush.bf16.msrb.mxu1 %v4903_v5  ;;  %v5132_v5 = vld [vmem:[#allocation10 + $0x1f8] sm:$0xf0] }
 0x2ec   :  { %v1868_v57 = vadd.f32 %v7108_v24, %v7136_v7  ;;  %v6102_v24 = vld [vmem:[#allocation6 + $0x40] sm:$0xff]  ;;  %v5135_v7 = vor.u32 %v6174_v58, %v5132_v5  ;;  %v5258_v5 = vld [vmem:[#allocation9 + $0x1e8] sm:$0xf] }
 0x2ed   :  { %v6385_v12 = vpop.eup %6384 }
 0x2ee   :  { %v1885_v59 = vadd.f32 %v1877_v6, %v1868_v57  ;;  %vm1915_vm15 = vweird.f32 %v6385_v12  ;;  %v1899_v57 = vand.u32 2147483647, %v7164_v3 }
 0x2ef   :  { %vm7187_vm3 = vmor %vm1914_vm1, %vm1915_vm15 }
 0x2f0   :  { %v4947_v1 = vmul.f32 -1.442695, %v1885_v59  ;;  %vm1900_vm7 = vcmp.eq.f32.partialorder %v1899_v57, 8.507059e+37  ;;  %v5194_v57 = vld [vmem:[#allocation9 + $0x168] sm:$0xf] }
 0x2f2   :  { %1738 = vmatmul.bf16.vlgmr.msra.gmra.mxu1 %v6925_v28  ;;  %v5099_v28 = vor.u32 %v6168_v21, %v5098_v17  ;;  %6386 = vpow2.f32 %v4947_v1  ;;  %v1910_v17 = vmul.f32 %v6385_v12, %v7162_v0 }
 0x2f3   :  { %v1754_v9 = vpop.f32.mrf.mxu3  ;;  %2123 = vmatpush.bf16.msra.mxu1 %v6112_v52  ;;  %6388 = vrcp.f32 %v7164_v3 }
 0x2f4   :  { %v6170_v9 = vld [vmem:[#allocation10 + $0x1cc] sm:$0xf]  ;;  %v1911_v31 = vsub.f32 1.0, %v1910_v17  ;;  %v5260_v17 = vld [vmem:[#allocation9 + $0x1f8] sm:$0xf0] }
 0x2f6   :  { %v1912_v25 = vmul.f32 %v6385_v12, %v1911_v31 }
 0x2f7   :  { %2124 = vmatpush.bf16.msra.mxu1 %v6111_v8  ;;  %v5116_v8 = vld [vmem:[#allocation10 + $0x1d8] sm:$0xf0] }
 0x2f8   :  { %v6387_v15 = vpop.eup %6386  ;;  %v1913_v42 = vadd.f32 %v6385_v12, %v1912_v25 }
 0x2f9   :  { %v7168_v19 = vpop.eup %6388  ;;  %v7171_v21 = vadd.f32 1.0, %v6387_v15 }
 0x2fa   :  { %vm1896_vm2 = vweird.f32 %v7168_v19  ;;  %v1917_v6 = vsel %vm7187_vm3, %v6385_v12, %v1913_v42  ;;  %v5210_v42 = vld [vmem:[#allocation9 + $0x188] sm:$0xf] }
 0x2fb   :  { %2125 = vmatpush.bf16.msra.mxu1 %v6110_v10  ;;  %v5119_v10 = vor.u32 %v6170_v9, %v5116_v8  ;;  %6390 = vrcp.f32 %v7171_v21  ;;  %vm1897_vm5 = vmor %vm1895_vm4, %vm1896_vm2  ;;  %vm1934_vm9 = vweird.f32 %v7171_v21 }
 0x302   :  { %4942 = vmatmul.msk.bf16.vlgmr.msrb.gmra.mxu1 %vm478_vm0, %v6983_v16 }
 0x303   :  { %2386 = vmatpush.bf16.msrb.mxu1 %v5131_v14  ;;  %v5100_v14 = vld [vmem:[#allocation10 + $0x1b8] sm:$0xf0] }
 0x307   :  { %2387 = vmatpush.bf16.msrb.mxu1 %v5115_v20  ;;  %v5103_v20 = vor.u32 %v6166_v61, %v5100_v14  ;;  %v1940_v61 = vand.u32 2147483648, %v7171_v21 }
 0x30b   :  { %2388 = vmatpush.bf16.msrb.mxu1 %v5099_v28  ;;  %v1891_v28 = vmul.f32 %v7168_v19, %v7164_v3 }
 0x30d   :  { %v1892_v18 = vsub.f32 1.0, %v1891_v28 }
 0x30f   :  { %2389 = vmatpush.bf16.msrb.mxu1 %v5083_v29  ;;  %v5084_v29 = vld [vmem:[#allocation10 + $0x198] sm:$0xf0]  ;;  %v1893_v38 = vmul.f32 %v7168_v19, %v1892_v18  ;;  %v6140_v18 = vld [vmem:[#allocation9 + $0x1d4] sm:$0xf0] }
 0x310   :  { %v5087_v30 = vor.u32 %v6162_v4, %v5084_v29 }
 0x312   :  { %5007 = vmatmul.msk.bf16.vlgmr.msra.gmra.mxu1 %vm478_vm0, %v6983_v16  ;;  %v6108_v16 = vld [vmem:[#allocation6 + $0x70] sm:$0xff] }
 0x313   :  { %2390 = vmatpush.bf16.msrb.mxu1 %v5067_v32  ;;  %2023 = vmatpush.bf16.msra.mxu3 %v6108_v16  ;;  %v6158_v32 = vld [vmem:[#allocation10 + $0x16c] sm:$0xf] }
 0x317   :  { %2391 = vmatpush.bf16.msrb.mxu1 %v5051_v56  ;;  %2024 = vmatpush.bf16.msra.mxu3 %v6107_v41  ;;  %v5071_v56 = vor.u32 %v6158_v32, %v5068_v33  ;;  %v5242_v33 = vld [vmem:[#allocation9 + $0x1c8] sm:$0xf] }
 0x318   :  { %v5243_v25 = vor.u32 %v6140_v18, %v5242_v33 }
 0x31b   :  { %2392 = vmatpush.bf16.msrb.mxu1 %v5035_v36  ;;  %2025 = vmatpush.bf16.msra.mxu3 %v6106_v45  ;;  %v7177_v36 = vpop.eup %6390  ;;  %v1920_v45 = vand.u32 2147483648, %v7162_v0  ;;  %v5020_v0 = vld [vmem:[#allocation10 + $0x118] sm:$0xf0] }
 0x31c   :  { %v1930_v46 = vmul.f32 %v7177_v36, %v7171_v21  ;;  %vm1935_vm8 = vweird.f32 %v7177_v36 }
 0x31d   :  { %vm1936_vm10 = vmor %vm1934_vm9, %vm1935_vm8 }
 0x31e   :  { %v1931_v62 = vsub.f32 1.0, %v1930_v46  ;;  %v5250_v46 = vld [vmem:[#allocation9 + $0x1e0] sm:$0xf] }
 0x31f   :  { %2393 = vmatpush.bf16.msrb.mxu1 %v5019_v39  ;;  %2026 = vmatpush.bf16.msra.mxu3 %v6105_v48  ;;  %v6154_v39 = vld [vmem:[#allocation10 + $0x14c] sm:$0xf]  ;;  %v1894_v48 = vadd.f32 %v7168_v19, %v1893_v38  ;;  %v6136_v38 = vld [vmem:[#allocation9 + $0x1b4] sm:$0xf0] }
 0x320   :  { %v5055_v41 = vor.u32 %v6154_v39, %v5052_v22  ;;  %v1932_v3 = vmul.f32 %v7177_v36, %v1931_v62  ;;  %v6134_v39 = vld [vmem:[#allocation9 + $0x1ac] sm:$0xf] }
 0x321   :  { %v1898_v59 = vsel %vm1897_vm5, %v7168_v19, %v1894_v48  ;;  %v1941_v19 = vor.u32 1.1754944e-38, %v1940_v61 }
 0x322   :  { %2394 = vmatmul.bf16.vlgmr.msrb.gmra.mxu1 %v7100_v13  ;;  %v1933_v12 = vadd.f32 %v7177_v36, %v1932_v3  ;;  %v5178_v3 = vld [vmem:[#allocation9 + $0x148] sm:$0xf] }
 0x323   :  { %2027 = vmatpush.bf16.msra.mxu3 %v6104_v60 }
 0x324   :  { %v1937_v15 = vsel %vm1936_vm10, %v7177_v36, %v1933_v12 }
 0x327   :  { %2028 = vmatpush.bf16.msra.mxu3 %v6103_v2  ;;  %v5023_v2 = vor.u32 %v6146_v63, %v5020_v0  ;;  %v6139_v63 = vld [vmem:[#allocation9 + $0x1cc] sm:$0xf0] }
 0x32b   :  { %2029 = vmatpush.bf16.msra.mxu3 %v6102_v24 }
 0x32f   :  { %2399 = vmatpush.bf16.msrb.mxu3 %v5135_v7  ;;  %v6144_v7 = vld [vmem:[#allocation9 + $0x1f4] sm:$0xf0] }
 0x330   :  { %v5259_v8 = vor.u32 %v6144_v7, %v5258_v5  ;;  %v6122_v5 = vld [vmem:[#allocation9 + $0x14c] sm:$0xf] }
 0x332   :  { %2598 = vmatpush.bf16.msra.mxu1 %v5259_v8  ;;  %v6135_v8 = vld [vmem:[#allocation9 + $0x1ac] sm:$0xf0] }
 0x333   :  { %2400 = vmatpush.bf16.msrb.mxu3 %v5119_v10 }
 0x336   :  { %2599 = vmatpush.bf16.msra.mxu1 %v5243_v25  ;;  %v5204_v25 = vld [vmem:[#allocation9 + $0x190] sm:$0xf0] }
 0x337   :  { %2401 = vmatpush.bf16.msrb.mxu3 %v5103_v20  ;;  %v6142_v20 = vld [vmem:[#allocation9 + $0x1ec] sm:$0xf] }
 0x33b   :  { %2402 = vmatpush.bf16.msrb.mxu3 %v5087_v30  ;;  %v5263_v30 = vor.u32 %v6142_v20, %v5260_v17  ;;  %v5162_v20 = vld [vmem:[#allocation9 + $0x128] sm:$0xf]  ;;  %v6120_v17 = vld [vmem:[#allocation9 + $0x134] sm:$0xf0] }
 0x33f   :  { %2403 = vmatpush.bf16.msrb.mxu3 %v5071_v56  ;;  %v6138_v56 = vld [vmem:[#allocation9 + $0x1cc] sm:$0xf] }
 0x343   :  { %2404 = vmatpush.bf16.msrb.mxu3 %v5055_v41 }
 0x35f   :  { %v1490_v55 = vpop.f32.mrf.mxu1 }
 0x360   :  { %v1491_v51 = vadd.f32 %v6337_v53, %v1490_v55  ;;  %v5039_v55 = vor.u32 %v6150_v43, %v5036_v44  ;;  %v6132_v43 = vld [vmem:[#allocation9 + $0x194] sm:$0xf0]  ;;  %v6130_v44 = vld [vmem:[#allocation9 + $0x18c] sm:$0xf]  ;;  %v6141_v53 = vld [vmem:[#allocation9 + $0x1e4] sm:$0xf] }
 0x362   :  { %1494 = vst [vmem:[%s7555_s15] sm:$0xff] %v1491_v51  ;;  %v1921_v51 = vor.u32 1.1754944e-38, %v1920_v45  ;;  %2405 = vmatpush.bf16.msrb.mxu3 %v5039_v55  ;;  %v5212_v45 = vld [vmem:[#allocation9 + $0x198] sm:$0xf0] }
 0x363   :  { %v5215_v48 = vor.u32 %v6130_v44, %v5212_v45  ;;  %v5463_v45 = vld [vmem:[#allocation2 + $0x2e0] sm:$0xf] }
 0x364   :  { %v1922_v1 = vsel %vm1919_vm6, %v1921_v51, %v1917_v6  ;;  %v6128_v6 = vld [vmem:[#allocation9 + $0x174] sm:$0xf0]  ;;  %v6126_v51 = vld [vmem:[#allocation9 + $0x16c] sm:$0xf] }
 0x365   :  { %v5195_v62 = vor.u32 %v6128_v6, %v5194_v57  ;;  %v6123_v6 = vld [vmem:[#allocation9 + $0x14c] sm:$0xf0] }
 0x366   :  { %2406 = vmatpush.bf16.msrb.mxu3 %v5023_v2  ;;  %v5236_v2 = vld [vmem:[#allocation9 + $0x1d0] sm:$0xf0] }
 0x367   :  { %v1492_v27 = vpop.f32.mrf.mxu1 }
 0x368   :  { %v1902_v27 = vor.u32 1.1754944e-38, %v1901_v54  ;;  %v5252_v54 = vld [vmem:[#allocation9 + $0x1f0] sm:$0xf0] }
 0x369   :  { %v5255_v55 = vor.u32 %v6141_v53, %v5252_v54  ;;  %v6229_v53 = vld [vmem:[#allocation2 + $0x2e4] sm:$0xf]  ;;  %v5465_v54 = vld [vmem:[#allocation2 + $0x2f0] sm:$0xf0] }
 0x36a   :  { %v1903_v58 = vsel %vm1900_vm7, %v1902_v27, %v1898_v59  ;;  %v5196_v59 = vld [vmem:[#allocation9 + $0x178] sm:$0xf0]  ;;  %v5468_v57 = vor.u32 %v6229_v53, %v5465_v54 }
 0x36b   :  { %2585 = vmatpush.bf16.msrb.mxu0 %v5255_v55  ;;  %v5199_v0 = vor.u32 %v6126_v51, %v5196_v59  ;;  %v5170_v55 = vld [vmem:[#allocation9 + $0x140] sm:$0xf]  ;;  %v6121_v51 = vld [vmem:[#allocation9 + $0x144] sm:$0xf] }
 0x36c   :  { %v5171_v59 = vor.u32 %v6123_v6, %v5170_v55  ;;  %v6207_v6 = vld [vmem:[#allocation2 + $0x22c] sm:$0xf0] }
 0x36f   :  { %v1739_v52 = vpop.f32.mrf.mxu1 }
 0x377   :  { %v1741_v26 = vpop.f32.mrf.mxu1 }
 0x37f   :  { %v1854_v37 = vpop.f32.mrf.mxu1 }
 0x380   :  { %v1855_v16 = vadd.f32 %v1854_v37, %v1739_v52  ;;  %v1944_v52 = vmul.f32 %v1922_v1, %v6912_v11  ;;  %v1938_v11 = vand.u32 2147483647, %v7171_v21  ;;  %v5226_v37 = vld [vmem:[#allocation9 + $0x1a8] sm:$0xf]  ;;  %v6137_v1 = vld [vmem:[#allocation9 + $0x1c4] sm:$0xf] }
 0x381   :  { %v5227_v22 = vor.u32 %v6136_v38, %v5226_v37  ;;  %v6116_v37 = vld [vmem:[#allocation9 + $0x114] sm:$0xf0]  ;;  %v6114_v38 = vld [vmem:[#allocation9 + $0x10c] sm:$0xf] }
 0x382   :  { %v1884_v40 = vadd.f32 %v1876_v34, %v1855_v16  ;;  %vm1939_vm11 = vcmp.eq.f32.partialorder %v1938_v11, 8.507059e+37  ;;  %v5244_v34 = vld [vmem:[#allocation9 + $0x1d8] sm:$0xf0]  ;;  %v6133_v11 = vld [vmem:[#allocation9 + $0x1a4] sm:$0xf] }
 0x383   :  { %v1942_v26 = vsel %vm1939_vm11, %v1941_v19, %v1937_v15  ;;  %v5247_v36 = vor.u32 %v6138_v56, %v5244_v34  ;;  %v5228_v16 = vld [vmem:[#allocation9 + $0x1b8] sm:$0xf0]  ;;  %2600 = vmatpush.bf16.msra.mxu1 %v5227_v22  ;;  %v5220_v15 = vld [vmem:[#allocation9 + $0x1b0] sm:$0xf0]  ;;  %v6129_v56 = vld [vmem:[#allocation9 + $0x184] sm:$0xf] }
 0x384   :  { %6392 = vtanh.f32 %v1884_v40  ;;  %v5231_v41 = vor.u32 %v6134_v39, %v5228_v16  ;;  %v6143_v40 = vld [vmem:[#allocation9 + $0x1ec] sm:$0xf0]  ;;  %v5223_v19 = vor.u32 %v6133_v11, %v5220_v15  ;;  %v5146_v34 = vld [vmem:[#allocation9 + $0x108] sm:$0xf]  ;;  %v5148_v39 = vld [vmem:[#allocation9 + $0x118] sm:$0xf0] }
 0x385   :  { %v5251_v49 = vor.u32 %v6143_v40, %v5250_v46  ;;  %v5147_v22 = vor.u32 %v6116_v37, %v5146_v34  ;;  %v5151_v16 = vor.u32 %v6114_v38, %v5148_v39  ;;  %v6231_v46 = vld [vmem:[#allocation2 + $0x2ec] sm:$0xf0]  ;;  %v6338_v40 = vld [vmem:[%s7546_s6 + $0x1] ss:$0 sm:$0xff]  ;;  %v5433_v11 = vld [vmem:[#allocation2 + $0x2b0] sm:$0xf0] }
 0x387   :  { %v1856_v60 = vpop.f32.mrf.mxu1  ;;  %2572 = vmatpush.bf16.msrb.mxu2 %v5251_v49  ;;  %v5464_v49 = vor.u32 %v6231_v46, %v5463_v45  ;;  %v5383_v45 = vld [vmem:[#allocation2 + $0x240] sm:$0xf]  ;;  %v6211_v46 = vld [vmem:[#allocation2 + $0x24c] sm:$0xf0] }
 0x388   :  { %v5234_v60 = vld [vmem:[#allocation9 + $0x1c0] sm:$0xf]  ;;  %v5384_v54 = vor.u32 %v6211_v46, %v5383_v45  ;;  %v5521_v45 = vld [vmem:[%s7541_s1 + $0x118] sm:$0xf0] }
 0x389   :  { %v5235_v27 = vor.u32 %v6139_v63, %v5234_v60  ;;  %v5447_v60 = vld [vmem:[#allocation2 + $0x2c0] sm:$0xf]  ;;  %v6227_v63 = vld [vmem:[#allocation2 + $0x2cc] sm:$0xf0] }
 0x38a   :  { %v6393_v24 = vpop.eup %6392  ;;  %v6183_v46 = vld [vmem:[%s7551_s11 + $0x70] sm:$0xff] }
 0x38b   :  { %v1945_v9 = vmul.f32 %v6393_v24, %v1903_v58  ;;  %v5239_v24 = vor.u32 %v6137_v1, %v5236_v2  ;;  %2573 = vmatpush.bf16.msrb.mxu2 %v5235_v27  ;;  %v6124_v58 = vld [vmem:[#allocation9 + $0x154] sm:$0xf0]  ;;  %v5448_v2 = vor.u32 %v6227_v63, %v5447_v60  ;;  %v5351_v63 = vld [vmem:[#allocation2 + $0x200] sm:$0xf] }
 0x38c   :  { %v5179_v7 = vor.u32 %v6124_v58, %v5178_v3  ;;  %v5154_v3 = vld [vmem:[#allocation9 + $0x120] sm:$0xf]  ;;  %v6119_v58 = vld [vmem:[#allocation9 + $0x12c] sm:$0xf0] }
 0x38d   :  { %v7199_v10 = vadd.f32 %v1945_v9, %v1944_v52  ;;  %2586 = vmatpush.bf16.msrb.mxu0 %v5239_v24  ;;  %v5180_v52 = vld [vmem:[#allocation9 + $0x158] sm:$0xf0]  ;;  %v5218_v9 = vld [vmem:[#allocation9 + $0x1a0] sm:$0xf]  ;;  %v5449_v24 = vld [vmem:[#allocation2 + $0x2d0] sm:$0xf0] }
 0x38e   :  { %v5183_v12 = vor.u32 %v6122_v5, %v5180_v52  ;;  %v5219_v61 = vor.u32 %v6135_v8, %v5218_v9  ;;  %v6117_v52 = vld [vmem:[#allocation9 + $0x124] sm:$0xf]  ;;  %v5156_v9 = vld [vmem:[#allocation9 + $0x130] sm:$0xf0]  ;;  %v5431_v8 = vld [vmem:[#allocation2 + $0x2a0] sm:$0xf] }
 0x38f   :  { %6394 = vtanh.f32 %v7199_v10  ;;  %v7205_v14 = vpop.f32.mrf.mxu1 }
 0x390   :  { %2574 = vmatpush.bf16.msrb.mxu2 %v5219_v61  ;;  %v6221_v61 = vld [vmem:[#allocation2 + $0x2a4] sm:$0xf] }
 0x391   :  { %2587 = vmatpush.bf16.msrb.mxu0 %v5223_v19  ;;  %v5155_v19 = vor.u32 %v6119_v58, %v5154_v3 }
 0x395   :  { %v6395_v28 = vpop.eup %6394 }
 0x396   :  { %v7210_v4 = vmul.f32 %v6395_v28, %v1942_v26  ;;  %v6118_v28 = vld [vmem:[#allocation9 + $0x12c] sm:$0xf]  ;;  %v5163_v26 = vor.u32 %v6120_v17, %v5162_v20  ;;  %v5138_v20 = vld [vmem:[#allocation9 + $0x100] sm:$0xf]  ;;  %v5159_v17 = vor.u32 %v6117_v52, %v5156_v9 }
 0x397   :  { %v2129_v29 = vpop.f32.mrf.mxu1 }
 0x398   :  { %v7214_v31 = vpack.c.bf16 %v7210_v4, %v7210_v4  ;;  %v5164_v29 = vld [vmem:[#allocation9 + $0x138] sm:$0xf0] }
 0x399   :  { %v5167_v33 = vor.u32 %v6118_v28, %v5164_v29  ;;  %v6113_v29 = vld [vmem:[#allocation9 + $0x104] sm:$0xf] }
 0x39a   :  { %2030 = vmatmul.bf16.vlgmr.msra.gmra.mxu3 %v7214_v31 }
 0x39b   :  { %2611 = vmatpush.bf16.msra.mxu3 %v5263_v30  ;;  %v5202_v30 = vld [vmem:[#allocation9 + $0x180] sm:$0xf] }
 0x39f   :  { %v7217_v21 = vpop.f32.mrf.mxu1  ;;  %2612 = vmatpush.bf16.msra.mxu3 %v5247_v36  ;;  %v5207_v36 = vor.u32 %v6129_v56, %v5204_v25  ;;  %v6217_v56 = vld [vmem:[#allocation2 + $0x284] sm:$0xf]  ;;  %v5417_v25 = vld [vmem:[#allocation2 + $0x290] sm:$0xf0] }
 0x3a0   :  { %v5420_v39 = vor.u32 %v6217_v56, %v5417_v25  ;;  %v6193_v56 = vld [vmem:[%s7541_s1 + $0xe4] sm:$0xf]  ;;  %v5497_v25 = vld [vmem:[%s7541_s1 + $0xf0] sm:$0xf0] }
 0x3a1   :  { %2588 = vmatpush.bf16.msrb.mxu0 %v5207_v36 }
 0x3a3   :  { %2613 = vmatpush.bf16.msra.mxu3 %v5231_v41  ;;  %v5186_v41 = vld [vmem:[#allocation9 + $0x160] sm:$0xf] }
 0x3a7   :  { %v2397_v32 = vpop.f32.mrf.mxu1  ;;  %2614 = vmatpush.bf16.msra.mxu3 %v5215_v48 }
 0x3a8   :  { %v6131_v32 = vld [vmem:[#allocation9 + $0x18c] sm:$0xf0] }
 0x3a9   :  { %v5203_v18 = vor.u32 %v6131_v32, %v5202_v30  ;;  %v5140_v30 = vld [vmem:[#allocation9 + $0x110] sm:$0xf0]  ;;  %v5436_v32 = vor.u32 %v6221_v61, %v5433_v11 }
 0x3aa   :  { %2407 = vmatmul.bf16.vlgmr.msrb.gmra.mxu3 %v7100_v13  ;;  %v5211_v13 = vor.u32 %v6132_v43, %v5210_v42  ;;  %v6127_v42 = vld [vmem:[#allocation9 + $0x16c] sm:$0xf0]  ;;  %v6125_v43 = vld [vmem:[#allocation9 + $0x164] sm:$0xf]  ;;  %v5143_v37 = vor.u32 %v6113_v29, %v5140_v30  ;;  %v6197_v29 = vld [vmem:[%s7541_s1 + $0x104] sm:$0xf] }
 0x3ab   :  { %2615 = vmatpush.bf16.msra.mxu3 %v5199_v0  ;;  %2575 = vmatpush.bf16.msrb.mxu2 %v5203_v18  ;;  %v5187_v44 = vor.u32 %v6127_v42, %v5186_v41  ;;  %v6225_v0 = vld [vmem:[#allocation2 + $0x2c4] sm:$0xf]  ;;  %v6219_v18 = vld [vmem:[#allocation2 + $0x28c] sm:$0xf0]  ;;  %v5401_v42 = vld [vmem:[#allocation2 + $0x270] sm:$0xf0] }
 0x3ac   :  { %2601 = vmatpush.bf16.msra.mxu1 %v5211_v13  ;;  %v5188_v13 = vld [vmem:[#allocation9 + $0x170] sm:$0xf0]  ;;  %v5513_v30 = vld [vmem:[%s7541_s1 + $0x110] sm:$0xf0] }
 0x3ad   :  { %v5191_v48 = vor.u32 %v6125_v43, %v5188_v13  ;;  %v6213_v41 = vld [vmem:[#allocation2 + $0x264] sm:$0xf] }
 0x3ae   :  { %v5404_v13 = vor.u32 %v6213_v41, %v5401_v42  ;;  %v5336_v42 = vld [vmem:[%s7540_s0 + $0x10] sm:$0xff] }
 0x3af   :  { %2616 = vmatpush.bf16.msra.mxu3 %v5183_v12  ;;  %2576 = vmatpush.bf16.msrb.mxu2 %v5187_v44  ;;  %v6223_v12 = vld [vmem:[#allocation2 + $0x2ac] sm:$0xf0] }
 0x3b0   :  { %2602 = vmatpush.bf16.msra.mxu1 %v5195_v62  ;;  %v5172_v62 = vld [vmem:[#allocation9 + $0x150] sm:$0xf0]  ;;  %2589 = vmatpush.bf16.msrb.mxu0 %v5191_v48  ;;  %v5432_v28 = vor.u32 %v6223_v12, %v5431_v8 }
 0x3b1   :  { %v5175_v1 = vor.u32 %v6121_v51, %v5172_v62  ;;  %v6209_v48 = vld [vmem:[#allocation2 + $0x244] sm:$0xf]  ;;  %v5369_v62 = vld [vmem:[#allocation2 + $0x230] sm:$0xf0] }
 0x3b2   :  { %v6205_v51 = vld [vmem:[#allocation2 + $0x224] sm:$0xf] }
 0x3b3   :  { %2617 = vmatpush.bf16.msra.mxu3 %v5167_v33  ;;  %2577 = vmatpush.bf16.msrb.mxu2 %v5171_v59  ;;  %v5415_v33 = vld [vmem:[#allocation2 + $0x280] sm:$0xf]  ;;  %v5372_v60 = vor.u32 %v6205_v51, %v5369_v62  ;;  %v6190_v51 = vld [vmem:[%s7541_s1 + $0xcc] sm:$0xf]  ;;  %v5489_v62 = vld [vmem:[%s7541_s1 + $0xd8] sm:$0xf0] }
 0x3b4   :  { %2603 = vmatpush.bf16.msra.mxu1 %v5179_v7  ;;  %v5452_v7 = vor.u32 %v6225_v0, %v5449_v24  ;;  %2590 = vmatpush.bf16.msrb.mxu0 %v5175_v1  ;;  %v5416_v38 = vor.u32 %v6219_v18, %v5415_v33  ;;  %v6203_v0 = vld [vmem:[#allocation2 + $0x20c] sm:$0xf0]  ;;  %v6201_v1 = vld [vmem:[#allocation2 + $0x204] sm:$0xf]  ;;  %v5495_v33 = vld [vmem:[%s7541_s1 + $0xe0] sm:$0xf] }
 0x3b5   :  { %v5352_v58 = vor.u32 %v6203_v0, %v5351_v63  ;;  %v6195_v18 = vld [vmem:[%s7541_s1 + $0xec] sm:$0xf0] }
 0x3b6   :  { %v6233_v63 = vld [vmem:[#allocation4 + $0x30] sm:$0xff] }
 0x3b7   :  { %2618 = vmatpush.bf16.msra.mxu3 %v5151_v16  ;;  %2578 = vmatpush.bf16.msrb.mxu2 %v5155_v19  ;;  %v6215_v16 = vld [vmem:[#allocation2 + $0x26c] sm:$0xf0] }
 0x3b8   :  { %2604 = vmatpush.bf16.msra.mxu1 %v5163_v26  ;;  %v6115_v26 = vld [vmem:[#allocation9 + $0x10c] sm:$0xf0]  ;;  %2591 = vmatpush.bf16.msrb.mxu0 %v5159_v17  ;;  %v5707_v0 = vld [vmem:[#allocation10 + $0x2e0] sm:$0xf] }
 0x3b9   :  { %v5139_v34 = vor.u32 %v6115_v26, %v5138_v20  ;;  %v6199_v26 = vld [vmem:[%s7541_s1 + $0x10c] sm:$0xf0] }
 0x3bb   :  { %3066 = vmatpush.bf16.msrb.mxu3 %v5468_v57  ;;  %2579 = vmatpush.bf16.msrb.mxu2 %v5139_v34  ;;  %v5367_v57 = vld [vmem:[#allocation2 + $0x220] sm:$0xf]  ;;  %v5496_v34 = vor.u32 %v6195_v18, %v5495_v33 }
 0x3bc   :  { %2605 = vmatpush.bf16.msra.mxu1 %v5147_v22  ;;  %v5399_v22 = vld [vmem:[#allocation2 + $0x260] sm:$0xf]  ;;  %2592 = vmatpush.bf16.msrb.mxu0 %v5143_v37  ;;  %v5368_v59 = vor.u32 %v6207_v6, %v5367_v57  ;;  %v6234_v6 = vld [vmem:[#allocation4 + $0x38] sm:$0xff] }
 0x3bd   :  { %v5400_v43 = vor.u32 %v6215_v16, %v5399_v22  ;;  %v5479_v37 = vld [vmem:[%s7541_s1 + $0xc0] sm:$0xf]  ;;  %v5481_v22 = vld [vmem:[%s7541_s1 + $0xd0] sm:$0xf0] }
 0x3bf   :  { %3067 = vmatpush.bf16.msrb.mxu3 %v5452_v7 }
 0x3c0   :  { %3053 = vmatpush.bf16.msrb.mxu1 %v5464_v49  ;;  %v5385_v49 = vld [vmem:[#allocation2 + $0x250] sm:$0xf0] }
 0x3c1   :  { %v5388_v55 = vor.u32 %v6209_v48, %v5385_v49  ;;  %v6235_v48 = vld [vmem:[#allocation4 + $0x40] sm:$0xff]  ;;  %v6194_v49 = vld [vmem:[%s7541_s1 + $0xec] sm:$0xf] }
 0x3c3   :  { %3068 = vmatpush.bf16.msrb.mxu3 %v5436_v32 }
 0x3c4   :  { %3054 = vmatpush.bf16.msrb.mxu1 %v5448_v2  ;;  %v5353_v2 = vld [vmem:[#allocation2 + $0x210] sm:$0xf0] }
 0x3c5   :  { %v5356_v7 = vor.u32 %v6201_v1, %v5353_v2  ;;  %v6307_v1 = vld [vmem:[#allocation10 + $0x2e4] sm:$0xf]  ;;  %v5709_v2 = vld [vmem:[#allocation10 + $0x2f0] sm:$0xf0] }
 0x3c7   :  { %3069 = vmatpush.bf16.msrb.mxu3 %v5420_v39  ;;  %v6189_v39 = vld [vmem:[%s7541_s1 + $0xc4] sm:$0xf] }
 0x3c8   :  { %3055 = vmatpush.bf16.msrb.mxu1 %v5432_v28  ;;  %v5511_v28 = vld [vmem:[%s7541_s1 + $0x100] sm:$0xf]  ;;  %v5484_v41 = vor.u32 %v6189_v39, %v5481_v22  ;;  %v6295_v39 = vld [vmem:[#allocation10 + $0x284] sm:$0xf]  ;;  %v5661_v22 = vld [vmem:[#allocation10 + $0x290] sm:$0xf0] }
 0x3c9   :  { %v5512_v32 = vor.u32 %v6199_v26, %v5511_v28  ;;  %v5675_v28 = vld [vmem:[#allocation10 + $0x2a0] sm:$0xf]  ;;  %v6301_v26 = vld [vmem:[#allocation10 + $0x2ac] sm:$0xf0] }
 0x3cb   :  { %3070 = vmatpush.bf16.msrb.mxu3 %v5404_v13  ;;  %v6198_v13 = vld [vmem:[%s7541_s1 + $0x10c] sm:$0xf] }
 0x3cc   :  { %3056 = vmatpush.bf16.msrb.mxu1 %v5416_v38  ;;  %v6191_v38 = vld [vmem:[%s7541_s1 + $0xcc] sm:$0xf0] }
 0x3cd   :  { %v5480_v16 = vor.u32 %v6191_v38, %v5479_v37 }
 0x3cf   :  { %3071 = vmatpush.bf16.msrb.mxu3 %v5388_v55  ;;  %v6182_v55 = vld [vmem:[%s7551_s11 + $0x68] sm:$0xff] }
 0x3d0   :  { %3057 = vmatpush.bf16.msrb.mxu1 %v5400_v43  ;;  %v7269_v43 = vpack.c.bf16 %v5336_v42, %v5336_v42  ;;  %v5664_v42 = vor.u32 %v6295_v39, %v5661_v22 }
 0x3d3   :  { %3072 = vmatpush.bf16.msrb.mxu3 %v5372_v60  ;;  %v5492_v60 = vor.u32 %v6190_v51, %v5489_v62 }
 0x3d4   :  { %3058 = vmatpush.bf16.msrb.mxu1 %v5384_v54  ;;  %v5505_v54 = vld [vmem:[%s7541_s1 + $0xf8] sm:$0xf0] }
 0x3d5   :  { %v5508_v57 = vor.u32 %v6194_v49, %v5505_v54  ;;  %v5643_v49 = vld [vmem:[#allocation10 + $0x260] sm:$0xf]  ;;  %v6293_v54 = vld [vmem:[#allocation10 + $0x26c] sm:$0xf0] }
 0x3d7   :  { %3073 = vmatpush.bf16.msrb.mxu3 %v5356_v7  ;;  %v5691_v7 = vld [vmem:[#allocation10 + $0x2c0] sm:$0xf] }
 0x3d8   :  { %3059 = vmatpush.bf16.msrb.mxu1 %v5368_v59  ;;  %v6181_v59 = vld [vmem:[%s7551_s11 + $0x60] sm:$0xff] }
 0x3dc   :  { %3060 = vmatpush.bf16.msrb.mxu1 %v5352_v58  ;;  %v7308_v58 = vld [vmem:[%s7550_s10 + $0x4] sm:$0xf] }
 0x3dd   :  { %v2627_v33 = vperm.slane %v7308_v58, 0  ;;  %v2629_v39 = vperm.slane %v7308_v58, 2 }
 0x41d   :  { %v2031_v27 = vpop.f32.mrf.mxu3 }
 0x41e   :  { %v2063_v5 = vadd.f32 %v7106_v23, %v2031_v27 }
 0x420   :  { %v2071_v15 = vadd.f32 %v6338_v40, %v2063_v5 }
 0x422   :  { %v4994_v23 = vmul.f32 -1.442695, %v2071_v15 }
 0x424   :  { %6396 = vpow2.f32 %v4994_v23 }
 0x425   :  { %v2033_v36 = vpop.f32.mrf.mxu3 }
 0x426   :  { %v5500_v36 = vor.u32 %v6193_v56, %v5497_v25  ;;  %v2630_v56 = vperm.slane %v7308_v58, 3  ;;  %v5659_v25 = vld [vmem:[#allocation10 + $0x280] sm:$0xf] }
 0x42a   :  { %v6397_v44 = vpop.eup %6396 }
 0x42b   :  { %v2075_v40 = vadd.f32 1.0, %v6397_v44  ;;  %v6184_v44 = vld [vmem:[%s7551_s11 + $0x78] sm:$0xff] }
 0x42c   :  { %2773 = vmatpush.bf16.msra.mxu2 %v6184_v44 }
 0x42d   :  { %6398 = vrcp.f32 %v2075_v40  ;;  %v7224_v53 = vpop.f32.mrf.mxu3  ;;  %v2087_v52 = vand.u32 2147483648, %v2075_v40  ;;  %v2085_v8 = vand.u32 2147483647, %v2075_v40  ;;  %vm2081_vm13 = vweird.f32 %v2075_v40 }
 0x42f   :  { %v2088_v61 = vor.u32 1.1754944e-38, %v2087_v52  ;;  %vm2086_vm1 = vcmp.eq.f32.partialorder %v2085_v8, 8.507059e+37  ;;  %v6305_v52 = vld [vmem:[#allocation10 + $0x2cc] sm:$0xf0]  ;;  %v6303_v8 = vld [vmem:[#allocation10 + $0x2c4] sm:$0xf] }
 0x430   :  { %2774 = vmatpush.bf16.msra.mxu2 %v6183_v46  ;;  %v6230_v46 = vld [vmem:[#allocation2 + $0x2ec] sm:$0xf] }
 0x433   :  { %v6399_v27 = vpop.eup %6398 }
 0x434   :  { %v2077_v24 = vmul.f32 %v6399_v27, %v2075_v40  ;;  %vm2082_vm12 = vweird.f32 %v6399_v27  ;;  %v5524_v40 = vor.u32 %v6198_v13, %v5521_v45  ;;  %2775 = vmatpush.bf16.msra.mxu2 %v6182_v55  ;;  %v6177_v45 = vld [vmem:[%s7551_s11 + $0x40] sm:$0xff]  ;;  %v6291_v55 = vld [vmem:[#allocation10 + $0x264] sm:$0xf] }
 0x435   :  { %v2410_v3 = vpop.f32.mrf.mxu3  ;;  %vm2083_vm15 = vmor %vm2081_vm13, %vm2082_vm12 }
 0x436   :  { %v2078_v5 = vsub.f32 1.0, %v2077_v24  ;;  %v5712_v3 = vor.u32 %v6307_v1, %v5709_v2 }
 0x438   :  { %v2079_v9 = vmul.f32 %v6399_v27, %v2078_v5  ;;  %2776 = vmatpush.bf16.msra.mxu2 %v6181_v59  ;;  %v6180_v5 = vld [vmem:[%s7551_s11 + $0x58] sm:$0xff] }
 0x43a   :  { %v2080_v12 = vadd.f32 %v6399_v27, %v2079_v9  ;;  %v5692_v9 = vor.u32 %v6305_v52, %v5691_v7  ;;  %v5629_v52 = vld [vmem:[#allocation10 + $0x250] sm:$0xf0] }
 0x43c   :  { %v2084_v11 = vsel %vm2083_vm15, %v6399_v27, %v2080_v12  ;;  %v6309_v27 = vld [vmem:[#allocation10 + $0x2ec] sm:$0xf0]  ;;  %v5693_v12 = vld [vmem:[#allocation10 + $0x2d0] sm:$0xf0]  ;;  %2777 = vmatpush.bf16.msra.mxu2 %v6180_v5 }
 0x43d   :  { %v2089_v15 = vsel %vm2086_vm1, %v2088_v61, %v2084_v11  ;;  %v5708_v24 = vor.u32 %v6309_v27, %v5707_v0  ;;  %v2628_v61 = vperm.slane %v7308_v58, 1  ;;  %v5696_v11 = vor.u32 %v6303_v8, %v5693_v12  ;;  %v5627_v0 = vld [vmem:[#allocation10 + $0x240] sm:$0xf]  ;;  %v6222_v12 = vld [vmem:[#allocation2 + $0x2ac] sm:$0xf] }
 0x43e   :  { %v2092_v19 = vsub.f32 1.0, %v2089_v15  ;;  %v2091_v20 = vmul.f32 %v2089_v15, %v7210_v4  ;;  %v6210_v58 = vld [vmem:[#allocation2 + $0x24c] sm:$0xf] }
 0x440   :  { %v2131_v17 = vmul.f32 %v7205_v14, %v2092_v19  ;;  %v5516_v14 = vor.u32 %v6197_v29, %v5513_v30  ;;  %v5676_v29 = vor.u32 %v6301_v26, %v5675_v28  ;;  %v6299_v30 = vld [vmem:[#allocation10 + $0x2a4] sm:$0xf] }
 0x442   :  { %v2132_v23 = vadd.f32 %v2131_v17, %v2091_v20  ;;  %v6179_v17 = vld [vmem:[%s7551_s11 + $0x50] sm:$0xff] }
 0x443   :  { %2778 = vmatpush.bf16.msra.mxu2 %v6179_v17  ;;  %v6283_v17 = vld [vmem:[#allocation10 + $0x224] sm:$0xf] }
 0x444   :  { %v2166_v4 = vpack.c.bf16 %v2132_v23, %v2132_v23  ;;  %v5677_v23 = vld [vmem:[#allocation10 + $0x2b0] sm:$0xf0] }
 0x446   :  { %2580 = vmatmul.bf16.vlgmr.msrb.gmra.mxu2 %v2166_v4  ;;  %2593 = vmatmul.bf16.vlgmr.msrb.gmra.mxu0 %v2166_v4 }
 0x447   :  { %2606 = vmatmul.bf16.vlgmr.msra.gmra.mxu1 %v2166_v4  ;;  %2619 = vmatmul.bf16.vlgmr.msra.gmra.mxu3 %v2166_v4 }
 0x448   :  { %3173 = vmatpush.bf16.msra.mxu1 %v5512_v32  ;;  %3186 = vmatpush.bf16.msra.mxu3 %v5516_v14  ;;  %v5680_v32 = vor.u32 %v6299_v30, %v5677_v23 }
 0x44c   :  { %3174 = vmatpush.bf16.msra.mxu1 %v5496_v34  ;;  %3187 = vmatpush.bf16.msra.mxu3 %v5500_v36  ;;  %v6297_v34 = vld [vmem:[#allocation10 + $0x28c] sm:$0xf0] }
 0x44d   :  { %v5660_v38 = vor.u32 %v6297_v34, %v5659_v25  ;;  %v6281_v34 = vld [vmem:[#allocation10 + $0x20c] sm:$0xf0] }
 0x450   :  { %3175 = vmatpush.bf16.msra.mxu1 %v5480_v16  ;;  %3188 = vmatpush.bf16.msra.mxu3 %v5484_v41 }
 0x457   :  { %3061 = vmatmul.bf16.vlgmr.msrb.gmra.mxu1 %v7214_v31  ;;  %3074 = vmatmul.bf16.vlgmr.msrb.gmra.mxu3 %v7214_v31 }
 0x458   :  { %3212 = vmatpush.bf16.msrb.mxu1 %v5524_v40  ;;  %3407 = vmatpush.bf16.msrb.mxu3 %v6235_v48  ;;  %v5473_v40 = vld [vmem:[#allocation2 + $0x2f8] sm:$0xf0] }
 0x45c   :  { %3213 = vmatpush.bf16.msrb.mxu1 %v5508_v57  ;;  %3408 = vmatpush.bf16.msrb.mxu3 %v6234_v6  ;;  %v5645_v6 = vld [vmem:[#allocation10 + $0x270] sm:$0xf0] }
 0x45d   :  { %v5648_v62 = vor.u32 %v6291_v55, %v5645_v6 }
 0x460   :  { %3214 = vmatpush.bf16.msrb.mxu1 %v5492_v60  ;;  %3409 = vmatpush.bf16.msrb.mxu3 %v6233_v63  ;;  %v6226_v60 = vld [vmem:[#allocation2 + $0x2cc] sm:$0xf]  ;;  %v5457_v63 = vld [vmem:[#allocation2 + $0x2d8] sm:$0xf0] }
 0x461   :  { %v5460_v2 = vor.u32 %v6226_v60, %v5457_v63 }
 0x467   :  { %5525 = vmatmul.msk.bf16.vlgmr.msra.gmra.mxu1 %vm478_vm0, %v7269_v43  ;;  %5526 = vmatmul.msk.bf16.vlgmr.msra.gmra.mxu3 %vm478_vm0, %v7269_v43 }
 0x468   :  { %3709 = vmatpush.bf16.msra.mxu1 %v5708_v24  ;;  %3722 = vmatpush.bf16.msra.mxu3 %v5712_v3  ;;  %v6289_v24 = vld [vmem:[#allocation10 + $0x24c] sm:$0xf0]  ;;  %v6287_v3 = vld [vmem:[#allocation10 + $0x244] sm:$0xf] }
 0x469   :  { %v5628_v7 = vor.u32 %v6289_v24, %v5627_v0  ;;  %v5632_v8 = vor.u32 %v6287_v3, %v5629_v52  ;;  %v6206_v24 = vld [vmem:[#allocation2 + $0x22c] sm:$0xf]  ;;  %v5377_v3 = vld [vmem:[#allocation2 + $0x238] sm:$0xf0] }
 0x46a   :  { %v5380_v52 = vor.u32 %v6206_v24, %v5377_v3  ;;  %v5359_v24 = vld [vmem:[#allocation2 + $0x208] sm:$0xf]  ;;  %v6204_v3 = vld [vmem:[#allocation2 + $0x214] sm:$0xf0] }
 0x46c   :  { %3710 = vmatpush.bf16.msra.mxu1 %v5692_v9  ;;  %3723 = vmatpush.bf16.msra.mxu3 %v5696_v11  ;;  %v5611_v11 = vld [vmem:[#allocation10 + $0x220] sm:$0xf] }
 0x470   :  { %3711 = vmatpush.bf16.msra.mxu1 %v5676_v29  ;;  %3724 = vmatpush.bf16.msra.mxu3 %v5680_v32  ;;  %v5613_v29 = vld [vmem:[#allocation10 + $0x230] sm:$0xf0] }
 0x474   :  { %3712 = vmatpush.bf16.msra.mxu1 %v5660_v38  ;;  %3725 = vmatpush.bf16.msra.mxu3 %v5664_v42 }
 0x477   :  { %5528 = vmatmul.msk.bf16.vlgmr.msrb.gmra.mxu1 %vm478_vm0, %v7269_v43  ;;  %5577 = vmatmul.msk.bf16.vlgmr.msrb.gmra.mxu3 %vm478_vm0, %v7269_v43 }
 0x478   :  { %3726 = vmatpush.bf16.msra.mxu3 %v5648_v62 }
 0x47c   :  { %3727 = vmatpush.bf16.msra.mxu3 %v5632_v8 }
 0x4c3   :  { %v2594_v15 = vpop.f32.mrf.mxu0 }
 0x4c4   :  { %v2595_v19 = vadd.f32 %v2594_v15, %v7110_v47  ;;  %v7319_v20 = vpop.f32.mrf.mxu1  ;;  %v6178_v47 = vld [vmem:[%s7551_s11 + $0x48] sm:$0xff] }
 0x4c5   :  { %2779 = vmatpush.bf16.msra.mxu2 %v6178_v47  ;;  %v2608_v38 = vadd.f32 %v7319_v20, %v7217_v21  ;;  %v5393_v20 = vld [vmem:[#allocation2 + $0x258] sm:$0xf0] }
 0x4c6   :  { %v2636_v4 = vadd.f32 %v2628_v61, %v2595_v19  ;;  %v5441_v61 = vld [vmem:[#allocation2 + $0x2b8] sm:$0xf0]  ;;  %v6285_v19 = vld [vmem:[#allocation10 + $0x22c] sm:$0xf0] }
 0x4c7   :  { %v5444_v15 = vor.u32 %v6222_v12, %v5441_v61  ;;  %v5612_v26 = vor.u32 %v6285_v19, %v5611_v11  ;;  %v6202_v12 = vld [vmem:[#allocation2 + $0x20c] sm:$0xf]  ;;  %v5361_v61 = vld [vmem:[#allocation2 + $0x218] sm:$0xf0] }
 0x4c8   :  { %v5266_v14 = vmul.f32 -1.442695, %v2636_v4  ;;  %v5616_v4 = vor.u32 %v6283_v17, %v5613_v29 }
 0x4c9   :  { %v2581_v18 = vpop.f32.mrf.mxu2  ;;  %2780 = vmatpush.bf16.msra.mxu2 %v6177_v45  ;;  %v5409_v45 = vld [vmem:[#allocation2 + $0x278] sm:$0xf0] }
 0x4ca   :  { %6400 = vpow2.f32 %v5266_v14  ;;  %v2582_v36 = vadd.f32 %v2581_v18, %v7115_v50  ;;  %v2620_v37 = vpop.f32.mrf.mxu3  ;;  %v5476_v50 = vor.u32 %v6230_v46, %v5473_v40  ;;  %v6218_v14 = vld [vmem:[#allocation2 + $0x28c] sm:$0xf]  ;;  %v5595_v18 = vld [vmem:[#allocation10 + $0x200] sm:$0xf]  ;;  %3728 = vmatpush.bf16.msra.mxu3 %v5616_v4 }
 0x4cb   :  { %v2621_v16 = vadd.f32 %v2620_v37, %v7224_v53  ;;  %v2596_v41 = vpop.f32.mrf.mxu0  ;;  %v5644_v53 = vor.u32 %v6293_v54, %v5643_v49  ;;  %v5597_v37 = vld [vmem:[#allocation10 + $0x210] sm:$0xf0]  ;;  %v5596_v42 = vor.u32 %v6281_v34, %v5595_v18 }
 0x4cc   :  { %v2635_v44 = vadd.f32 %v2627_v33, %v2582_v36  ;;  %v2609_v13 = vpop.f32.mrf.mxu1  ;;  %v5425_v33 = vld [vmem:[#allocation2 + $0x298] sm:$0xf0]  ;;  %v6279_v36 = vld [vmem:[#allocation10 + $0x204] sm:$0xf] }
 0x4cd   :  { %v2638_v48 = vadd.f32 %v2630_v56, %v2621_v16  ;;  %3092 = vmatpush.bf16.msrb.mxu2 %v5476_v50  ;;  %3713 = vmatpush.bf16.msra.mxu1 %v5644_v53  ;;  %v5428_v22 = vor.u32 %v6218_v14, %v5425_v33  ;;  %v6214_v13 = vld [vmem:[#allocation2 + $0x26c] sm:$0xf]  ;;  %v2637_v50 = vadd.f32 %v2629_v39, %v2608_v38 }
 0x4ce   :  { %v5265_v57 = vmul.f32 -1.442695, %v2635_v44  ;;  %v5600_v44 = vor.u32 %v6279_v36, %v5597_v37  ;;  %v5412_v40 = vor.u32 %v6214_v13, %v5409_v45  ;;  %v5396_v53 = vor.u32 %v6210_v58, %v5393_v20  ;;  %v6224_v58 = vld [vmem:[#allocation2 + $0x2b4] sm:$0xf0] }
 0x4cf   :  { %v5267_v51 = vmul.f32 -1.442695, %v2638_v48 }
 0x4d0   :  { %v6401_v59 = vpop.eup %6400  ;;  %6402 = vpow2.f32 %v5265_v57  ;;  %3729 = vmatpush.bf16.msra.mxu3 %v5600_v44  ;;  %v6185_v44 = vld [vmem:[#allocation12 + $0x20] sm:$0xff] }
 0x4d1   :  { %v7334_v27 = vadd.f32 1.0, %v6401_v59  ;;  %6404 = vpow2.f32 %v5267_v51  ;;  %v2583_v1 = vpop.f32.mrf.mxu2  ;;  %3093 = vmatpush.bf16.msrb.mxu2 %v5460_v2  ;;  %3714 = vmatpush.bf16.msra.mxu1 %v5628_v7  ;;  %v5391_v59 = vld [vmem:[#allocation2 + $0x248] sm:$0xf] }
 0x4d2   :  { %v2622_v5 = vpop.f32.mrf.mxu3 }
 0x4d3   :  { %6406 = vrcp.f32 %v7334_v27  ;;  %v2673_v55 = vand.u32 2147483648, %v7334_v27  ;;  %vm2667_vm3 = vweird.f32 %v7334_v27  ;;  %v2671_v6 = vand.u32 2147483647, %v7334_v27 }
 0x4d4   :  { %v7337_v9 = vpop.f32.mrf.mxu1 }
 0x4d5   :  { %3094 = vmatpush.bf16.msrb.mxu2 %v5444_v15  ;;  %3715 = vmatpush.bf16.msra.mxu1 %v5612_v26  ;;  %vm2672_vm6 = vcmp.eq.f32.partialorder %v2671_v6, 8.507059e+37  ;;  %v5407_v6 = vld [vmem:[#allocation2 + $0x268] sm:$0xf] }
 0x4d6   :  { %v6403_v28 = vpop.eup %6402 }
 0x4d7   :  { %v6405_v30 = vpop.eup %6404  ;;  %v7339_v23 = vadd.f32 1.0, %v6403_v28 }
 0x4d8   :  { %v7341_v32 = vadd.f32 1.0, %v6405_v30 }
 0x4d9   :  { %v6407_v47 = vpop.eup %6406  ;;  %6408 = vrcp.f32 %v7339_v23  ;;  %3095 = vmatpush.bf16.msrb.mxu2 %v5428_v22  ;;  %3716 = vmatpush.bf16.msra.mxu1 %v5596_v42  ;;  %v2654_v60 = vand.u32 2147483648, %v7339_v23  ;;  %v2652_v1 = vand.u32 2147483647, %v7339_v23  ;;  %vm2648_vm7 = vweird.f32 %v7339_v23  ;;  %v6187_v22 = vld [vmem:[#allocation12 + $0x30] sm:$0xff]  ;;  %v6232_v42 = vld [vmem:[#allocation2 + $0x2f4] sm:$0xf0] }
 0x4da   :  { %v2663_v56 = vmul.f32 %v6407_v47, %v7334_v27  ;;  %6410 = vrcp.f32 %v7341_v32  ;;  %v7346_v25 = vpop.f32.mrf.mxu3  ;;  %vm2668_vm2 = vweird.f32 %v6407_v47  ;;  %v2674_v27 = vor.u32 1.1754944e-38, %v2673_v55  ;;  %v5423_v55 = vld [vmem:[#allocation2 + $0x288] sm:$0xf] }
 0x4db   :  { %vm7359_vm4 = vmor %vm2667_vm3, %vm2668_vm2  ;;  %6412 = vtanh.f32 %v2637_v50  ;;  %v2655_v15 = vor.u32 1.1754944e-38, %v2654_v60  ;;  %vm2653_vm9 = vcmp.eq.f32.partialorder %v2652_v1, 8.507059e+37  ;;  %v2693_v18 = vand.u32 2147483648, %v7341_v32  ;;  %v5455_v50 = vld [vmem:[#allocation2 + $0x2c8] sm:$0xf] }
 0x4dc   :  { %v2664_v16 = vsub.f32 1.0, %v2663_v56  ;;  %v3064_v41 = vpop.f32.mrf.mxu1  ;;  %vm2687_vm11 = vweird.f32 %v7341_v32  ;;  %v6212_v60 = vld [vmem:[#allocation2 + $0x254] sm:$0xf0] }
 0x4dd   :  { %3096 = vmatpush.bf16.msrb.mxu2 %v5412_v40  ;;  %v5471_v41 = vld [vmem:[#allocation2 + $0x2e8] sm:$0xf]  ;;  %v6208_v1 = vld [vmem:[#allocation2 + $0x234] sm:$0xf0] }
 0x4de   :  { %v2665_v46 = vmul.f32 %v6407_v47, %v2664_v16  ;;  %v6186_v16 = vld [vmem:[#allocation12 + $0x28] sm:$0xff]  ;;  %v5472_v13 = vor.u32 %v6232_v42, %v5471_v41  ;;  %v6306_v41 = vld [vmem:[#allocation10 + $0x2d4] sm:$0xf0] }
 0x4df   :  { %v6409_v48 = vpop.eup %6408 }
 0x4e0   :  { %v7351_v49 = vpop.eup %6410  ;;  %v2666_v54 = vadd.f32 %v6407_v47, %v2665_v46  ;;  %v2644_v21 = vmul.f32 %v6409_v48, %v7339_v23  ;;  %vm2649_vm5 = vweird.f32 %v6409_v48 }
 0x4e1   :  { %v2683_v57 = vmul.f32 %v7351_v49, %v7341_v32  ;;  %3097 = vmatpush.bf16.msrb.mxu2 %v5396_v53  ;;  %vm2650_vm8 = vmor %vm2648_vm7, %vm2649_vm5  ;;  %v6413_v17 = vpop.eup %6412  ;;  %vm2688_vm10 = vweird.f32 %v7351_v49 }
 0x4e2   :  { %v2645_v51 = vsub.f32 1.0, %v2644_v21  ;;  %v3077_v62 = vpop.f32.mrf.mxu3  ;;  %v2670_v63 = vsel %vm7359_vm4, %v6407_v47, %v2666_v54  ;;  %vm2689_vm12 = vmor %vm2687_vm11, %vm2688_vm10  ;;  %v5439_v21 = vld [vmem:[#allocation2 + $0x2a8] sm:$0xf] }
 0x4e3   :  { %v2684_v5 = vsub.f32 1.0, %v2683_v57  ;;  %v2675_v11 = vsel %vm2672_vm6, %v2674_v27, %v2670_v63  ;;  %v5440_v20 = vor.u32 %v6224_v58, %v5439_v21  ;;  %v6220_v57 = vld [vmem:[#allocation2 + $0x294] sm:$0xf0]  ;;  %v5392_v63 = vor.u32 %v6212_v60, %v5391_v59  ;;  %v6243_v60 = vld [vmem:[#allocation6 + $0xb8] sm:$0xff] }
 0x4e4   :  { %v2646_v0 = vmul.f32 %v6409_v48, %v2645_v51  ;;  %v3177_v2 = vpop.f32.mrf.mxu1  ;;  %v2697_v29 = vmul.f32 %v2675_v11, %v7091_v35  ;;  %v2691_v35 = vand.u32 2147483647, %v7341_v32  ;;  %v6188_v32 = vld [vmem:[#allocation12 + $0x38] sm:$0xff]  ;;  %v5424_v53 = vor.u32 %v6220_v57, %v5423_v55  ;;  %v6216_v51 = vld [vmem:[#allocation2 + $0x274] sm:$0xf0] }
 0x4e5   :  { %v7368_v7 = vadd.f32 %v3177_v2, %v7337_v9  ;;  %v2685_v26 = vmul.f32 %v7351_v49, %v2684_v5  ;;  %3098 = vmatpush.bf16.msrb.mxu2 %v5380_v52  ;;  %v5364_v9 = vor.u32 %v6202_v12, %v5361_v61  ;;  %2833 = vmatpush.bf16.msra.mxu0 %v6188_v32  ;;  %v6339_v52 = vld [vmem:[%s7552_s12 + $0x1] ss:$0 sm:$0xff]  ;;  %v5519_v11 = vld [vmem:[%s7541_s1 + $0x108] sm:$0xf]  ;;  %v5635_v58 = vld [vmem:[#allocation10 + $0x248] sm:$0xf] }
 0x4e6   :  { %v2647_v8 = vadd.f32 %v6409_v48, %v2646_v0  ;;  %vm2692_vm13 = vcmp.eq.f32.partialorder %v2691_v35, 8.507059e+37  ;;  %v5408_v62 = vor.u32 %v6216_v51, %v5407_v6  ;;  %v5375_v0 = vld [vmem:[#allocation2 + $0x228] sm:$0xf]  ;;  %v5360_v27 = vor.u32 %v6204_v3, %v5359_v24  ;;  %v5619_v57 = vld [vmem:[#allocation10 + $0x228] sm:$0xf] }
 0x4e7   :  { %v2686_v47 = vadd.f32 %v7351_v49, %v2685_v26  ;;  %v5376_v2 = vor.u32 %v6208_v1, %v5375_v0  ;;  %v6310_v32 = vld [vmem:[#allocation10 + $0x2f4] sm:$0xf0]  ;;  %v5603_v51 = vld [vmem:[#allocation10 + $0x208] sm:$0xf]  ;;  %v6241_v0 = vld [vmem:[#allocation6 + $0xa8] sm:$0xff] }
 0x4e8   :  { %v2651_v19 = vsel %vm2650_vm8, %v6409_v48, %v2647_v8  ;;  %v6240_v3 = vld [vmem:[#allocation6 + $0xa0] sm:$0xff] }
 0x4e9   :  { %v2656_v28 = vsel %vm2653_vm9, %v2655_v15, %v2651_v19  ;;  %3099 = vmatpush.bf16.msrb.mxu2 %v5364_v9  ;;  %v2690_v56 = vsel %vm2689_vm12, %v7351_v49, %v2686_v47  ;;  %2834 = vmatpush.bf16.msra.mxu0 %v6187_v22  ;;  %v6228_v49 = vld [vmem:[#allocation2 + $0x2d4] sm:$0xf0]  ;;  %v5503_v9 = vld [vmem:[%s7541_s1 + $0xe8] sm:$0xf] }
 0x4ea   :  { %v2698_v30 = vmul.f32 %v6413_v17, %v2656_v28  ;;  %v3190_v4 = vpop.f32.mrf.mxu3  ;;  %v5456_v54 = vor.u32 %v6228_v49, %v5455_v50  ;;  %v6200_v15 = vld [vmem:[%s7541_s1 + $0x114] sm:$0xf0]  ;;  %v5487_v47 = vld [vmem:[%s7541_s1 + $0xc8] sm:$0xf] }
 0x4eb   :  { %v7375_v23 = vadd.f32 %v3190_v4, %v7346_v25  ;;  %v2694_v25 = vor.u32 1.1754944e-38, %v2693_v18  ;;  %v5520_v28 = vor.u32 %v6200_v15, %v5519_v11  ;;  %v6192_v18 = vld [vmem:[%s7541_s1 + $0xd4] sm:$0xf0] }
 0x4ec   :  { %v7377_v14 = vadd.f32 %v2698_v30, %v2697_v29  ;;  %v3179_v33 = vpop.f32.mrf.mxu1  ;;  %v6196_v29 = vld [vmem:[%s7541_s1 + $0xf4] sm:$0xf0]  ;;  %v5488_v35 = vor.u32 %v6192_v18, %v5487_v47  ;;  %v6308_v18 = vld [vmem:[#allocation10 + $0x2ec] sm:$0xf] }
 0x4ed   :  { %v2695_v37 = vsel %vm2692_vm13, %v2694_v25, %v2690_v56  ;;  %2835 = vmatpush.bf16.msra.mxu0 %v6186_v16  ;;  %v5504_v4 = vor.u32 %v6196_v29, %v5503_v9  ;;  %v6246_v25 = vld [vmem:[#allocation7 + $0x40] sm:$0xff]  ;;  %v5699_v16 = vld [vmem:[#allocation10 + $0x2c8] sm:$0xf] }
 0x4ee   :  { %6414 = vtanh.f32 %v7377_v14  ;;  %v5700_v42 = vor.u32 %v6306_v41, %v5699_v16  ;;  %v5651_v49 = vld [vmem:[#allocation10 + $0x268] sm:$0xf] }
 0x4f1   :  { %2836 = vmatpush.bf16.msra.mxu0 %v6185_v44  ;;  %v5683_v44 = vld [vmem:[#allocation10 + $0x2a8] sm:$0xf] }
 0x4f2   :  { %v3192_v34 = vpop.f32.mrf.mxu3 }
 0x4f4   :  { %v6415_v36 = vpop.eup %6414  ;;  %v7392_v45 = vpop.f32.mrf.mxu1 }
 0x4f5   :  { %v2701_v38 = vmul.f32 %v6415_v36, %v2695_v37  ;;  %3079 = vmatpush.bf16.msrb.mxu0 %v5472_v13  ;;  %v6245_v36 = vld [vmem:[#allocation7 + $0x38] sm:$0xff]  ;;  %v6244_v37 = vld [vmem:[#allocation7 + $0x30] sm:$0xff]  ;;  %v6302_v13 = vld [vmem:[#allocation10 + $0x2b4] sm:$0xf0] }
 0x4f7   :  { %v7386_v39 = vpack.c.bf16 %v2701_v38, %v2701_v38  ;;  %v5715_v38 = vld [vmem:[#allocation10 + $0x2e8] sm:$0xf] }
 0x4f8   :  { %v5716_v22 = vor.u32 %v6310_v32, %v5715_v38  ;;  %v6300_v32 = vld [vmem:[#allocation10 + $0x2ac] sm:$0xf] }
 0x4f9   :  { %2781 = vmatmul.bf16.vlgmr.msra.gmra.mxu2 %v7386_v39  ;;  %3717 = vmatmul.bf16.vlgmr.msra.gmra.mxu1 %v7386_v39 }
 0x4fa   :  { %3730 = vmatmul.bf16.vlgmr.msra.gmra.mxu3 %v7386_v39  ;;  %v7394_v46 = vpop.f32.mrf.mxu3  ;;  %3080 = vmatpush.bf16.msrb.mxu0 %v5456_v54  ;;  %v6294_v54 = vld [vmem:[#allocation10 + $0x274] sm:$0xf0] }
 0x4fb   :  { %v5652_v21 = vor.u32 %v6294_v54, %v5651_v49  ;;  %3371 = vmatpush.bf16.msra.mxu2 %v6243_v60  ;;  %v5637_v60 = vld [vmem:[#allocation10 + $0x258] sm:$0xf0] }
 0x4fc   :  { %v3218_v40 = vpop.f32.mrf.mxu1 }
 0x4fd   :  { %v5667_v40 = vld [vmem:[#allocation10 + $0x288] sm:$0xf] }
 0x4fe   :  { %3081 = vmatpush.bf16.msrb.mxu0 %v5440_v20  ;;  %v6290_v20 = vld [vmem:[#allocation10 + $0x254] sm:$0xf0] }
 0x4ff   :  { %v5636_v55 = vor.u32 %v6290_v20, %v5635_v58  ;;  %v5653_v58 = vld [vmem:[#allocation10 + $0x278] sm:$0xf0] }
 0x502   :  { %v3413_v48 = vpop.f32.mrf.mxu3  ;;  %3082 = vmatpush.bf16.msrb.mxu0 %v5424_v53  ;;  %v6286_v53 = vld [vmem:[#allocation10 + $0x234] sm:$0xf0] }
 0x503   :  { %v6298_v48 = vld [vmem:[#allocation10 + $0x294] sm:$0xf0]  ;;  %v5620_v6 = vor.u32 %v6286_v53, %v5619_v57 }
 0x504   :  { %v5668_v50 = vor.u32 %v6298_v48, %v5667_v40  ;;  %v6296_v48 = vld [vmem:[#allocation10 + $0x28c] sm:$0xf] }
 0x506   :  { %3083 = vmatpush.bf16.msrb.mxu0 %v5408_v62  ;;  %v6282_v62 = vld [vmem:[#allocation10 + $0x214] sm:$0xf0] }
 0x507   :  { %v5604_v59 = vor.u32 %v6282_v62, %v5603_v51 }
 0x509   :  { %3100 = vmatmul.bf16.vlgmr.msrb.gmra.mxu2 %v7214_v31 }
 0x50a   :  { %3084 = vmatpush.bf16.msrb.mxu0 %v5392_v63  ;;  %v6242_v63 = vld [vmem:[#allocation6 + $0xb0] sm:$0xff] }
 0x50b   :  { %3372 = vmatpush.bf16.msra.mxu2 %v6242_v63 }
 0x50e   :  { %3085 = vmatpush.bf16.msrb.mxu0 %v5376_v2 }
 0x50f   :  { %3373 = vmatpush.bf16.msra.mxu2 %v6241_v0 }
 0x512   :  { %3086 = vmatpush.bf16.msrb.mxu0 %v5360_v27 }
 0x513   :  { %3374 = vmatpush.bf16.msra.mxu2 %v6240_v3 }
 0x576   :  { %v7396_v5 = vpop.f32.mrf.mxu1 }
 0x57c   :  { %v2782_v8 = vpop.f32.mrf.mxu2 }
 0x57d   :  { %v2783_v12 = vadd.f32 %v6339_v52, %v2782_v8  ;;  %v7401_v61 = vpop.f32.mrf.mxu3  ;;  %v6239_v52 = vld [vmem:[#allocation6 + $0x98] sm:$0xff] }
 0x57e   :  { %v3720_v19 = vpop.f32.mrf.mxu1  ;;  %3375 = vmatpush.bf16.msra.mxu2 %v6239_v52 }
 0x57f   :  { %v2786_v17 = vmax.f32 %v2783_v12, 0.0  ;;  %v6340_v12 = vld [vmem:[%s7554_s14 + $0x1] ss:$0 sm:$0xff] }
 0x581   :  { %v2796_v26 = vpack.c.bf16 %v2786_v17, %v2786_v17 }
 0x583   :  { %5334 = vmatmul.msk.bf16.vlgmr.msra.gmra.mxu0 %vm1477_vm14, %v2796_v26  ;;  %v6238_v26 = vld [vmem:[#allocation6 + $0x90] sm:$0xff] }
 0x584   :  { %v2784_v30 = vpop.f32.mrf.mxu2  ;;  %3199 = vmatpush.bf16.msra.mxu0 %v5520_v28  ;;  %3376 = vmatpush.bf16.msra.mxu2 %v6238_v26 }
 0x585   :  { %v3733_v33 = vpop.f32.mrf.mxu3 }
 0x586   :  { %v6237_v33 = vld [vmem:[#allocation6 + $0x88] sm:$0xff] }
 0x588   :  { %3200 = vmatpush.bf16.msra.mxu0 %v5504_v4  ;;  %3377 = vmatpush.bf16.msra.mxu2 %v6237_v33 }
 0x58c   :  { %v7422_v56 = vpop.f32.mrf.mxu2  ;;  %3201 = vmatpush.bf16.msra.mxu0 %v5488_v35  ;;  %v5717_v35 = vld [vmem:[#allocation10 + $0x2f8] sm:$0xf0] }
 0x58d   :  { %v3217_v19 = vadd.f32 %v7392_v45, %v7422_v56  ;;  %v6236_v45 = vld [vmem:[#allocation6 + $0x80] sm:$0xff]  ;;  %v5720_v56 = vor.u32 %v6308_v18, %v5717_v35 }
 0x58e   :  { %3378 = vmatpush.bf16.msra.mxu2 %v6236_v45 }
 0x592   :  { %3748 = vmatpush.bf16.msrb.mxu2 %v5720_v56 }
 0x593   :  { %3087 = vmatmul.bf16.vlgmr.msrb.gmra.mxu0 %v7214_v31  ;;  %v5684_v31 = vor.u32 %v6302_v13, %v5683_v44 }
 0x594   :  { %v3103_v34 = vpop.f32.mrf.mxu2  ;;  %3472 = vmatpush.bf16.msrb.mxu0 %v6246_v25 }
 0x595   :  { %v6304_v34 = vld [vmem:[#allocation10 + $0x2cc] sm:$0xf] }
 0x598   :  { %3473 = vmatpush.bf16.msrb.mxu0 %v6245_v36  ;;  %v5701_v36 = vld [vmem:[#allocation10 + $0x2d8] sm:$0xf0] }
 0x59c   :  { %3474 = vmatpush.bf16.msrb.mxu0 %v6244_v37  ;;  %v5704_v37 = vor.u32 %v6304_v34, %v5701_v36 }
 0x59e   :  { %3749 = vmatpush.bf16.msrb.mxu2 %v5704_v37 }
 0x5a3   :  { %5527 = vmatmul.msk.bf16.vlgmr.msra.gmra.mxu0 %vm478_vm0, %v7269_v43 }
 0x5a4   :  { %3735 = vmatpush.bf16.msra.mxu0 %v5716_v22  ;;  %v5685_v22 = vld [vmem:[#allocation10 + $0x2b8] sm:$0xf0] }
 0x5a8   :  { %3736 = vmatpush.bf16.msra.mxu0 %v5700_v42  ;;  %v5688_v42 = vor.u32 %v6300_v32, %v5685_v22 }
 0x5aa   :  { %3750 = vmatpush.bf16.msrb.mxu2 %v5688_v42 }
 0x5ac   :  { %3737 = vmatpush.bf16.msra.mxu0 %v5684_v31 }
 0x5b0   :  { %3738 = vmatpush.bf16.msra.mxu0 %v5668_v50  ;;  %v5669_v50 = vld [vmem:[#allocation10 + $0x298] sm:$0xf0] }
 0x5b1   :  { %v5672_v49 = vor.u32 %v6296_v48, %v5669_v50  ;;  %v5835_v48 = vld [vmem:[#allocation9 + $0x2e0] sm:$0xf]  ;;  %v6275_v50 = vld [vmem:[#allocation9 + $0x2e4] sm:$0xf] }
 0x5b3   :  { %5592 = vmatmul.msk.bf16.vlgmr.msrb.gmra.mxu0 %vm478_vm0, %v7269_v43  ;;  %v7433_v43 = vld [vmem:[%s7543_s3 + $0x8] sm:$0xf]  ;;  %3751 = vmatpush.bf16.msrb.mxu2 %v5672_v49 }
 0x5b4   :  { %3739 = vmatpush.bf16.msra.mxu0 %v5652_v21  ;;  %v3224_v1 = vperm.slane %v7433_v43, 1  ;;  %v3223_v2 = vperm.slane %v7433_v43, 0  ;;  %v3226_v17 = vperm.slane %v7433_v43, 3  ;;  %v6292_v21 = vld [vmem:[#allocation10 + $0x26c] sm:$0xf]  ;;  %v3225_v53 = vperm.slane %v7433_v43, 2 }
 0x5b6   :  { %v3232_v24 = vadd.f32 %v3224_v1, %v7375_v23  ;;  %v3231_v27 = vadd.f32 %v3223_v2, %v7368_v7  ;;  %v3234_v28 = vadd.f32 %v3226_v17, %v3217_v19  ;;  %v6284_v2 = vld [vmem:[#allocation10 + $0x22c] sm:$0xf] }
 0x5b8   :  { %3740 = vmatpush.bf16.msra.mxu0 %v5636_v55  ;;  %v5531_v8 = vmul.f32 -1.442695, %v3232_v24  ;;  %v5530_v11 = vmul.f32 -1.442695, %v3231_v27  ;;  %v5532_v4 = vmul.f32 -1.442695, %v3234_v28  ;;  %v5656_v55 = vor.u32 %v6292_v21, %v5653_v58 }
 0x5b9   :  { %v5621_v24 = vld [vmem:[#allocation10 + $0x238] sm:$0xf0]  ;;  %v5843_v21 = vld [vmem:[#allocation9 + $0x2e8] sm:$0xf]  ;;  %v6278_v58 = vld [vmem:[#allocation9 + $0x2f4] sm:$0xf0] }
 0x5ba   :  { %6416 = vpow2.f32 %v5531_v8  ;;  %3752 = vmatpush.bf16.msrb.mxu2 %v5656_v55  ;;  %v5844_v55 = vor.u32 %v6278_v58, %v5843_v21  ;;  %v6257_v21 = vld [vmem:[#allocation9 + $0x24c] sm:$0xf0]  ;;  %v6255_v58 = vld [vmem:[#allocation9 + $0x244] sm:$0xf] }
 0x5bb   :  { %6418 = vpow2.f32 %v5530_v11 }
 0x5bc   :  { %3741 = vmatpush.bf16.msra.mxu0 %v5620_v6 }
 0x5c0   :  { %3742 = vmatpush.bf16.msra.mxu0 %v5604_v59  ;;  %v6417_v7 = vpop.eup %6416  ;;  %v6288_v59 = vld [vmem:[#allocation10 + $0x24c] sm:$0xf] }
 0x5c1   :  { %v6419_v9 = vpop.eup %6418  ;;  %v7448_v29 = vadd.f32 1.0, %v6417_v7  ;;  %v5640_v0 = vor.u32 %v6288_v59, %v5637_v60  ;;  %v6271_v59 = vld [vmem:[#allocation9 + $0x2c4] sm:$0xf]  ;;  %v5821_v60 = vld [vmem:[#allocation9 + $0x2d0] sm:$0xf0] }
 0x5c2   :  { %v7450_v47 = vadd.f32 1.0, %v6419_v9  ;;  %v6280_v9 = vld [vmem:[#allocation10 + $0x20c] sm:$0xf] }
 0x5c3   :  { %3743 = vmatmul.bf16.vlgmr.msra.gmra.mxu0 %v7386_v39  ;;  %6420 = vrcp.f32 %v7448_v29  ;;  %v3269_v3 = vand.u32 2147483648, %v7448_v29  ;;  %vm3263_vm15 = vweird.f32 %v7448_v29  ;;  %v3267_v8 = vand.u32 2147483647, %v7448_v29  ;;  %3753 = vmatpush.bf16.msrb.mxu2 %v5640_v0  ;;  %v6274_v0 = vld [vmem:[#allocation9 + $0x2d4] sm:$0xf0] }
 0x5c4   :  { %6422 = vpow2.f32 %v5532_v4  ;;  %v3250_v11 = vand.u32 2147483648, %v7450_v47  ;;  %vm3244_vm3 = vweird.f32 %v7450_v47  ;;  %v3248_v19 = vand.u32 2147483647, %v7450_v47  ;;  %3947 = vmatpush.bf16.msrb.mxu0 %v5844_v55 }
 0x5c5   :  { %6424 = vrcp.f32 %v7450_v47  ;;  %vm3268_vm5 = vcmp.eq.f32.partialorder %v3267_v8, 8.507059e+37  ;;  %v6267_v8 = vld [vmem:[#allocation9 + $0x2a4] sm:$0xf] }
 0x5c6   :  { %vm3249_vm6 = vcmp.eq.f32.partialorder %v3248_v19, 8.507059e+37  ;;  %v6270_v19 = vld [vmem:[#allocation9 + $0x2b4] sm:$0xf0] }
 0x5c9   :  { %v6421_v38 = vpop.eup %6420 }
 0x5ca   :  { %v6423_v16 = vpop.eup %6422  ;;  %v3259_v44 = vmul.f32 %v6421_v38, %v7448_v29  ;;  %vm3264_vm0 = vweird.f32 %v6421_v38  ;;  %v5605_v29 = vld [vmem:[#allocation10 + $0x218] sm:$0xf0] }
 0x5cb   :  { %v7454_v41 = vpop.eup %6424  ;;  %v7457_v13 = vadd.f32 1.0, %v6423_v16  ;;  %vm7470_vm2 = vmor %vm3263_vm15, %vm3264_vm0  ;;  %v5608_v33 = vor.u32 %v6280_v9, %v5605_v29  ;;  %v5787_v9 = vld [vmem:[#allocation9 + $0x280] sm:$0xf]  ;;  %v6265_v29 = vld [vmem:[#allocation9 + $0x28c] sm:$0xf0] }
 0x5cc   :  { %v3240_v31 = vmul.f32 %v7454_v41, %v7450_v47  ;;  %v3260_v54 = vsub.f32 1.0, %v3259_v44  ;;  %vm3245_vm1 = vweird.f32 %v7454_v41 }
 0x5cd   :  { %6426 = vrcp.f32 %v7457_v13  ;;  %vm3246_vm4 = vmor %vm3244_vm3, %vm3245_vm1  ;;  %v3289_v36 = vand.u32 2147483648, %v7457_v13  ;;  %vm3283_vm8 = vweird.f32 %v7457_v13 }
 0x5ce   :  { %v3241_v20 = vsub.f32 1.0, %v3240_v31  ;;  %v3261_v57 = vmul.f32 %v6421_v38, %v3260_v54  ;;  %v5837_v54 = vld [vmem:[#allocation9 + $0x2f0] sm:$0xf0] }
 0x5cf   :  { %v3290_v22 = vor.u32 1.1754944e-38, %v3289_v36  ;;  %v5771_v36 = vld [vmem:[#allocation9 + $0x260] sm:$0xf] }
 0x5d0   :  { %v3242_v62 = vmul.f32 %v7454_v41, %v3241_v20  ;;  %v3262_v1 = vadd.f32 %v6421_v38, %v3261_v57  ;;  %v5840_v20 = vor.u32 %v6275_v50, %v5837_v54  ;;  %v6276_v57 = vld [vmem:[#allocation9 + $0x2ec] sm:$0xf]  ;;  %v5781_v50 = vld [vmem:[#allocation9 + $0x278] sm:$0xf0] }
 0x5d2   :  { %v3243_v43 = vadd.f32 %v7454_v41, %v3242_v62  ;;  %v3266_v17 = vsel %vm7470_vm2, %v6421_v38, %v3262_v1  ;;  %v3287_v38 = vand.u32 2147483647, %v7457_v13  ;;  %3934 = vmatpush.bf16.msrb.mxu3 %v5840_v20  ;;  %v6273_v62 = vld [vmem:[#allocation9 + $0x2cc] sm:$0xf0]  ;;  %v5824_v1 = vor.u32 %v6271_v59, %v5821_v60  ;;  %v5757_v20 = vld [vmem:[#allocation9 + $0x250] sm:$0xf0] }
 0x5d3   :  { %v6427_v6 = vpop.eup %6426  ;;  %v5739_v60 = vld [vmem:[#allocation9 + $0x220] sm:$0xf] }
 0x5d4   :  { %v3279_v27 = vmul.f32 %v6427_v6, %v7457_v13  ;;  %v3247_v28 = vsel %vm3246_vm4, %v7454_v41, %v3243_v43  ;;  %vm3284_vm7 = vweird.f32 %v6427_v6  ;;  %vm3288_vm10 = vcmp.eq.f32.partialorder %v3287_v38, 8.507059e+37  ;;  %v6277_v13 = vld [vmem:[#allocation9 + $0x2ec] sm:$0xf0] }
 0x5d5   :  { %vm3285_vm9 = vmor %vm3283_vm8, %vm3284_vm7  ;;  %v5836_v49 = vor.u32 %v6277_v13, %v5835_v48  ;;  %v6269_v43 = vld [vmem:[#allocation9 + $0x2ac] sm:$0xf0]  ;;  %v6260_v13 = vld [vmem:[#allocation9 + $0x26c] sm:$0xf] }
 0x5d6   :  { %v3280_v7 = vsub.f32 1.0, %v3279_v27  ;;  %3935 = vmatpush.bf16.msrb.mxu3 %v5824_v1  ;;  %v6261_v38 = vld [vmem:[#allocation9 + $0x26c] sm:$0xf0]  ;;  %v5784_v54 = vor.u32 %v6260_v13, %v5781_v50 }
 0x5d7   :  { %3921 = vmatpush.bf16.msrb.mxu1 %v5836_v49  ;;  %v5755_v49 = vld [vmem:[#allocation9 + $0x240] sm:$0xf] }
 0x5d8   :  { %v3281_v18 = vmul.f32 %v6427_v6, %v3280_v7  ;;  %v6268_v7 = vld [vmem:[#allocation9 + $0x2ac] sm:$0xf]  ;;  %v5756_v55 = vor.u32 %v6257_v21, %v5755_v49 }
 0x5da   :  { %v3282_v34 = vadd.f32 %v6427_v6, %v3281_v18  ;;  %v6266_v18 = vld [vmem:[#allocation9 + $0x294] sm:$0xf0] }
 0x5dc   :  { %v3286_v32 = vsel %vm3285_vm9, %v6427_v6, %v3282_v34 }
 0x600   :  { %v2838_v15 = vpop.f32.mrf.mxu0 }
 0x601   :  { %v2839_v23 = vadd.f32 %v6340_v12, %v2838_v15  ;;  %v5624_v15 = vor.u32 %v6284_v2, %v5621_v24  ;;  %v6272_v24 = vld [vmem:[#allocation9 + $0x2cc] sm:$0xf] }
 0x603   :  { %5335 = vst [vmem:[%s7555_s15 + $0x8] sm:$0xff] %v2839_v23  ;;  %v3270_v23 = vor.u32 1.1754944e-38, %v3269_v3  ;;  %3754 = vmatpush.bf16.msrb.mxu2 %v5624_v15  ;;  %v5829_v3 = vld [vmem:[#allocation9 + $0x2d8] sm:$0xf0]  ;;  %v5811_v15 = vld [vmem:[#allocation9 + $0x2a8] sm:$0xf] }
 0x604   :  { %v5832_v27 = vor.u32 %v6272_v24, %v5829_v3  ;;  %v5741_v24 = vld [vmem:[#allocation9 + $0x230] sm:$0xf0]  ;;  %v5747_v3 = vld [vmem:[#allocation9 + $0x228] sm:$0xf] }
 0x605   :  { %v3271_v4 = vsel %vm3268_vm5, %v3270_v23, %v3266_v17  ;;  %v5812_v23 = vor.u32 %v6270_v19, %v5811_v15 }
 0x606   :  { %v3293_v35 = vmul.f32 %v3271_v4, %v7199_v10  ;;  %v3291_v10 = vsel %vm3288_vm10, %v3290_v22, %v3286_v32  ;;  %v5788_v4 = vor.u32 %v6265_v29, %v5787_v9  ;;  %v6259_v32 = vld [vmem:[#allocation9 + $0x264] sm:$0xf]  ;;  %v5772_v22 = vor.u32 %v6261_v38, %v5771_v36  ;;  %v6250_v9 = vld [vmem:[#allocation9 + $0x214] sm:$0xf0]  ;;  %v6248_v29 = vld [vmem:[#allocation9 + $0x20c] sm:$0xf] }
 0x607   :  { %3755 = vmatpush.bf16.msrb.mxu2 %v5608_v33  ;;  %v5789_v33 = vld [vmem:[#allocation9 + $0x290] sm:$0xf0] }
 0x608   :  { %v2840_v30 = vpop.f32.mrf.mxu0 }
 0x609   :  { %v3251_v30 = vor.u32 1.1754944e-38, %v3250_v11  ;;  %v5805_v11 = vld [vmem:[#allocation9 + $0x2b0] sm:$0xf0] }
 0x60a   :  { %v5808_v17 = vor.u32 %v6267_v8, %v5805_v11  ;;  %v5723_v11 = vld [vmem:[#allocation9 + $0x200] sm:$0xf] }
 0x60b   :  { %v3252_v47 = vsel %vm3249_vm6, %v3251_v30, %v3247_v28  ;;  %v5813_v28 = vld [vmem:[#allocation9 + $0x2b8] sm:$0xf0]  ;;  %v6263_v30 = vld [vmem:[#allocation9 + $0x284] sm:$0xf] }
 0x60c   :  { %3936 = vmatpush.bf16.msrb.mxu3 %v5808_v17  ;;  %v6249_v17 = vld [vmem:[#allocation9 + $0x20c] sm:$0xf0] }
 0x610   :  { %v3088_v25 = vpop.f32.mrf.mxu0 }
 0x618   :  { %v3090_v40 = vpop.f32.mrf.mxu0 }
 0x620   :  { %v3203_v51 = vpop.f32.mrf.mxu0 }
 0x621   :  { %v3204_v63 = vadd.f32 %v3203_v51, %v3088_v25  ;;  %v5819_v51 = vld [vmem:[#allocation9 + $0x2c0] sm:$0xf] }
 0x623   :  { %v3233_v52 = vadd.f32 %v3225_v53, %v3204_v63  ;;  %v5845_v53 = vld [vmem:[#allocation9 + $0x2f8] sm:$0xf0]  ;;  %v5827_v63 = vld [vmem:[#allocation9 + $0x2c8] sm:$0xf] }
 0x624   :  { %v5848_v6 = vor.u32 %v6276_v57, %v5845_v53  ;;  %v5828_v2 = vor.u32 %v6274_v0, %v5827_v63  ;;  %v5763_v57 = vld [vmem:[#allocation9 + $0x248] sm:$0xf]  ;;  %v6258_v53 = vld [vmem:[#allocation9 + $0x254] sm:$0xf0]  ;;  %v6253_v63 = vld [vmem:[#allocation9 + $0x22c] sm:$0xf0] }
 0x625   :  { %6428 = vtanh.f32 %v3233_v52  ;;  %v5803_v52 = vld [vmem:[#allocation9 + $0x2a0] sm:$0xf]  ;;  %v5764_v59 = vor.u32 %v6258_v53, %v5763_v57 }
 0x626   :  { %3948 = vmatpush.bf16.msrb.mxu0 %v5828_v2  ;;  %v5804_v12 = vor.u32 %v6269_v43, %v5803_v52  ;;  %v6251_v2 = vld [vmem:[#allocation9 + $0x224] sm:$0xf]  ;;  %v6252_v52 = vld [vmem:[#allocation9 + $0x22c] sm:$0xf]  ;;  %v5749_v43 = vld [vmem:[#allocation9 + $0x238] sm:$0xf0] }
 0x627   :  { %v5744_v15 = vor.u32 %v6251_v2, %v5741_v24  ;;  %v6314_v24 = vld [vmem:[%s7551_s11 + $0x98] sm:$0xff] }
 0x628   :  { %v3205_v26 = vpop.f32.mrf.mxu0 }
 0x629   :  { %v5816_v26 = vor.u32 %v6268_v7, %v5813_v28  ;;  %v5725_v7 = vld [vmem:[#allocation9 + $0x210] sm:$0xf0]  ;;  %v5752_v28 = vor.u32 %v6252_v52, %v5749_v43 }
 0x62a   :  { %3949 = vmatpush.bf16.msrb.mxu0 %v5812_v23  ;;  %v6247_v23 = vld [vmem:[#allocation9 + $0x204] sm:$0xf] }
 0x62b   :  { %v6429_v45 = vpop.eup %6428 }
 0x62c   :  { %v3294_v56 = vmul.f32 %v6429_v45, %v3252_v47  ;;  %v5795_v45 = vld [vmem:[#allocation9 + $0x288] sm:$0xf]  ;;  %v5792_v47 = vor.u32 %v6263_v30, %v5789_v33  ;;  %v5733_v30 = vld [vmem:[#allocation9 + $0x218] sm:$0xf0] }
 0x62e   :  { %v3295_v25 = vadd.f32 %v3294_v56, %v3293_v35  ;;  %v5796_v35 = vor.u32 %v6266_v18, %v5795_v45  ;;  %v6264_v56 = vld [vmem:[#allocation9 + $0x28c] sm:$0xf]  ;;  %3937 = vmatpush.bf16.msrb.mxu3 %v5792_v47  ;;  %v5728_v45 = vor.u32 %v6247_v23, %v5725_v7  ;;  %v5736_v47 = vor.u32 %v6248_v29, %v5733_v30  ;;  %v6322_v29 = vld [vmem:[#allocation12 + $0x58] sm:$0xff] }
 0x630   :  { %6430 = vtanh.f32 %v3295_v25  ;;  %v7482_v37 = vpop.f32.mrf.mxu0  ;;  %v5797_v25 = vld [vmem:[#allocation9 + $0x298] sm:$0xf0]  ;;  %3950 = vmatpush.bf16.msrb.mxu0 %v5796_v35 }
 0x631   :  { %v5800_v34 = vor.u32 %v6264_v56, %v5797_v25 }
 0x636   :  { %v6431_v16 = vpop.eup %6430 }
 0x637   :  { %v7486_v41 = vmul.f32 %v6431_v16, %v3291_v10  ;;  %v5773_v16 = vld [vmem:[#allocation9 + $0x270] sm:$0xf0]  ;;  %v5779_v10 = vld [vmem:[#allocation9 + $0x268] sm:$0xf] }
 0x638   :  { %v3478_v42 = vpop.f32.mrf.mxu0 }
 0x639   :  { %v3322_v44 = vpack.c.bf16 %v7486_v41, %v7486_v41  ;;  %v6262_v42 = vld [vmem:[#allocation9 + $0x274] sm:$0xf0] }
 0x63a   :  { %v5780_v48 = vor.u32 %v6262_v42, %v5779_v10 }
 0x63b   :  { %3379 = vmatmul.bf16.vlgmr.msra.gmra.mxu2 %v3322_v44  ;;  %v6341_v44 = vld [vmem:[%s7546_s6 + $0x2] ss:$0 sm:$0xff] }
 0x63c   :  { %3960 = vmatpush.bf16.msra.mxu2 %v5848_v6  ;;  %v6256_v6 = vld [vmem:[#allocation9 + $0x24c] sm:$0xf]  ;;  %3951 = vmatpush.bf16.msrb.mxu0 %v5780_v48 }
 0x640   :  { %v7490_v31 = vpop.f32.mrf.mxu0  ;;  %3961 = vmatpush.bf16.msra.mxu2 %v5832_v27  ;;  %v6254_v27 = vld [vmem:[#allocation9 + $0x234] sm:$0xf0]  ;;  %3952 = vmatpush.bf16.msrb.mxu0 %v5764_v59 }
 0x641   :  { %v5748_v19 = vor.u32 %v6254_v27, %v5747_v3 }
 0x644   :  { %3962 = vmatpush.bf16.msra.mxu2 %v5816_v26  ;;  %v5731_v26 = vld [vmem:[#allocation9 + $0x208] sm:$0xf]  ;;  %3953 = vmatpush.bf16.msrb.mxu0 %v5748_v19 }
 0x645   :  { %v5732_v18 = vor.u32 %v6250_v9, %v5731_v26 }
 0x648   :  { %v3746_v40 = vpop.f32.mrf.mxu0  ;;  %3963 = vmatpush.bf16.msra.mxu2 %v5800_v34  ;;  %3954 = vmatpush.bf16.msrb.mxu0 %v5732_v18 }
 0x649   :  { %v5776_v40 = vor.u32 %v6259_v32, %v5773_v16 }
 0x64b   :  { %3756 = vmatmul.bf16.vlgmr.msrb.gmra.mxu2 %v7386_v39  ;;  %v5820_v39 = vor.u32 %v6273_v62, %v5819_v51  ;;  %3938 = vmatpush.bf16.msrb.mxu3 %v5776_v40  ;;  %v5760_v62 = vor.u32 %v6255_v58, %v5757_v20  ;;  %v6318_v58 = vld [vmem:[%s7551_s11 + $0xb8] sm:$0xff]  ;;  %v5849_v20 = vld [vmem:[%s7550_s10 + $0x8] sm:$0xf] }
 0x64c   :  { %3964 = vmatpush.bf16.msra.mxu2 %v5784_v54  ;;  %v3977_v59 = vperm.slane %v5849_v20, 1 }
 0x64d   :  { %3922 = vmatpush.bf16.msrb.mxu1 %v5820_v39  ;;  %v5765_v39 = vld [vmem:[#allocation9 + $0x258] sm:$0xf0] }
 0x64e   :  { %v5768_v1 = vor.u32 %v6256_v6, %v5765_v39  ;;  %v6316_v6 = vld [vmem:[%s7551_s11 + $0xa8] sm:$0xff] }
 0x64f   :  { %3939 = vmatpush.bf16.msrb.mxu3 %v5760_v62 }
 0x650   :  { %3965 = vmatpush.bf16.msra.mxu2 %v5768_v1 }
 0x651   :  { %3923 = vmatpush.bf16.msrb.mxu1 %v5804_v12  ;;  %v5740_v12 = vor.u32 %v6253_v63, %v5739_v60  ;;  %v3979_v60 = vperm.slane %v5849_v20, 3  ;;  %v6315_v63 = vld [vmem:[%s7551_s11 + $0xa0] sm:$0xff] }
 0x653   :  { %3940 = vmatpush.bf16.msrb.mxu3 %v5744_v15 }
 0x654   :  { %3966 = vmatpush.bf16.msra.mxu2 %v5752_v28  ;;  %v6311_v28 = vld [vmem:[%s7551_s11 + $0x80] sm:$0xff] }
 0x655   :  { %3924 = vmatpush.bf16.msrb.mxu1 %v5788_v4  ;;  %v5724_v4 = vor.u32 %v6249_v17, %v5723_v11  ;;  %v6312_v17 = vld [vmem:[%s7551_s11 + $0x88] sm:$0xff] }
 0x657   :  { %3941 = vmatpush.bf16.msrb.mxu3 %v5728_v45  ;;  %v6321_v45 = vld [vmem:[#allocation12 + $0x50] sm:$0xff] }
 0x658   :  { %3967 = vmatpush.bf16.msra.mxu2 %v5736_v47 }
 0x659   :  { %3925 = vmatpush.bf16.msrb.mxu1 %v5772_v22 }
 0x65b   :  { %4182 = vmatpush.bf16.msra.mxu3 %v6322_v29 }
 0x65d   :  { %3926 = vmatpush.bf16.msrb.mxu1 %v5756_v55 }
 0x65f   :  { %4183 = vmatpush.bf16.msra.mxu3 %v6321_v45 }
 0x661   :  { %3927 = vmatpush.bf16.msrb.mxu1 %v5740_v12  ;;  %v6313_v12 = vld [vmem:[%s7551_s11 + $0x90] sm:$0xff] }
 0x665   :  { %3928 = vmatpush.bf16.msrb.mxu1 %v5724_v4 }
 0x669   :  { %4122 = vmatpush.bf16.msra.mxu1 %v6318_v58 }
 0x6be   :  { %v3380_v51 = vpop.f32.mrf.mxu2 }
 0x6bf   :  { %v3412_v0 = vadd.f32 %v7394_v46, %v3380_v51 }
 0x6c1   :  { %v3420_v8 = vadd.f32 %v6341_v44, %v3412_v0 }
 0x6c3   :  { %v5579_v46 = vmul.f32 -1.442695, %v3420_v8 }
 0x6c5   :  { %6432 = vpow2.f32 %v5579_v46 }
 0x6c6   :  { %v3382_v33 = vpop.f32.mrf.mxu2 }
 0x6c7   :  { %v3978_v33 = vperm.slane %v5849_v20, 2 }
 0x6cb   :  { %v6433_v35 = vpop.eup %6432 }
 0x6cc   :  { %v3424_v56 = vadd.f32 1.0, %v6433_v35 }
 0x6ce   :  { %6434 = vrcp.f32 %v3424_v56  ;;  %v3757_v25 = vpop.f32.mrf.mxu2  ;;  %v3436_v22 = vand.u32 2147483648, %v3424_v56  ;;  %v3434_v10 = vand.u32 2147483647, %v3424_v56  ;;  %vm3430_vm12 = vweird.f32 %v3424_v56 }
 0x6d0   :  { %v3437_v44 = vor.u32 1.1754944e-38, %v3436_v22  ;;  %vm3435_vm0 = vcmp.eq.f32.partialorder %v3434_v10, 8.507059e+37 }
 0x6d4   :  { %v6435_v34 = vpop.eup %6434 }
 0x6d5   :  { %v3426_v36 = vmul.f32 %v6435_v34, %v3424_v56  ;;  %vm3431_vm11 = vweird.f32 %v6435_v34 }
 0x6d6   :  { %v3759_v38 = vpop.f32.mrf.mxu2  ;;  %vm3432_vm13 = vmor %vm3430_vm12, %vm3431_vm11 }
 0x6d7   :  { %v3427_v32 = vsub.f32 1.0, %v3426_v36 }
 0x6d9   :  { %v3428_v16 = vmul.f32 %v6435_v34, %v3427_v32 }
 0x6db   :  { %v3429_v42 = vadd.f32 %v6435_v34, %v3428_v16 }
 0x6dd   :  { %v3433_v40 = vsel %vm3432_vm13, %v6435_v34, %v3429_v42 }
 0x6de   :  { %v3438_v48 = vsel %vm3435_vm0, %v3437_v44, %v3433_v40 }
 0x6df   :  { %v3441_v13 = vsub.f32 1.0, %v3438_v48  ;;  %v3440_v50 = vmul.f32 %v3438_v48, %v7486_v41  ;;  %v6317_v41 = vld [vmem:[%s7551_s11 + $0xb0] sm:$0xff] }
 0x6e0   :  { %4123 = vmatpush.bf16.msra.mxu1 %v6317_v41 }
 0x6e1   :  { %v3480_v49 = vmul.f32 %v7482_v37, %v3441_v13  ;;  %v3976_v37 = vperm.slane %v5849_v20, 0 }
 0x6e3   :  { %v3481_v54 = vadd.f32 %v3480_v49, %v3440_v50 }
 0x6e4   :  { %4124 = vmatpush.bf16.msra.mxu1 %v6316_v6 }
 0x6e5   :  { %v3515_v21 = vpack.c.bf16 %v3481_v54, %v3481_v54 }
 0x6e7   :  { %3929 = vmatmul.bf16.vlgmr.msrb.gmra.mxu1 %v3515_v21  ;;  %3942 = vmatmul.bf16.vlgmr.msrb.gmra.mxu3 %v3515_v21 }
 0x6e8   :  { %3955 = vmatmul.bf16.vlgmr.msrb.gmra.mxu0 %v3515_v21  ;;  %3968 = vmatmul.bf16.vlgmr.msra.gmra.mxu2 %v3515_v21 }
 0x6e9   :  { %4125 = vmatpush.bf16.msra.mxu1 %v6315_v63 }
 0x6ed   :  { %4126 = vmatpush.bf16.msra.mxu1 %v6314_v24 }
 0x6f1   :  { %4127 = vmatpush.bf16.msra.mxu1 %v6313_v12 }
 0x6f5   :  { %4128 = vmatpush.bf16.msra.mxu1 %v6312_v17 }
 0x6f9   :  { %4129 = vmatpush.bf16.msra.mxu1 %v6311_v28 }
 0x764   :  { %v3930_v55 = vpop.f32.mrf.mxu1 }
 0x765   :  { %v3931_v57 = vadd.f32 %v3930_v55, %v7396_v5  ;;  %v3956_v53 = vpop.f32.mrf.mxu0 }
 0x766   :  { %v3957_v4 = vadd.f32 %v3956_v53, %v7490_v31 }
 0x767   :  { %v3984_v51 = vadd.f32 %v3976_v37, %v3931_v57 }
 0x768   :  { %v3986_v56 = vadd.f32 %v3978_v33, %v3957_v4 }
 0x769   :  { %v5850_v62 = vmul.f32 -1.442695, %v3984_v51 }
 0x76a   :  { %v3943_v39 = vpop.f32.mrf.mxu3 }
 0x76b   :  { %6436 = vpow2.f32 %v5850_v62  ;;  %v3944_v0 = vadd.f32 %v3943_v39, %v7401_v61  ;;  %v3969_v1 = vpop.f32.mrf.mxu2 }
 0x76c   :  { %v3970_v5 = vadd.f32 %v3969_v1, %v3757_v25  ;;  %v3932_v2 = vpop.f32.mrf.mxu1  ;;  %v6320_v25 = vld [vmem:[#allocation12 + $0x48] sm:$0xff]  ;;  %v6319_v1 = vld [vmem:[#allocation12 + $0x40] sm:$0xff] }
 0x76d   :  { %v3985_v3 = vadd.f32 %v3977_v59, %v3944_v0  ;;  %v3958_v27 = vpop.f32.mrf.mxu0  ;;  %4184 = vmatpush.bf16.msra.mxu3 %v6320_v25 }
 0x76e   :  { %v3987_v52 = vadd.f32 %v3979_v60, %v3970_v5 }
 0x76f   :  { %v5851_v43 = vmul.f32 -1.442695, %v3985_v3 }
 0x770   :  { %v5852_v8 = vmul.f32 -1.442695, %v3987_v52  ;;  %v6343_v52 = vld [vmem:[%s7554_s14 + $0x2] ss:$0 sm:$0xff] }
 0x771   :  { %v6437_v11 = vpop.eup %6436  ;;  %6438 = vpow2.f32 %v5851_v43  ;;  %4185 = vmatpush.bf16.msra.mxu3 %v6319_v1 }
 0x772   :  { %v3991_v61 = vadd.f32 1.0, %v6437_v11  ;;  %6440 = vpow2.f32 %v5852_v8  ;;  %v3945_v15 = vpop.f32.mrf.mxu3 }
 0x773   :  { %v3971_v19 = vpop.f32.mrf.mxu2 }
 0x774   :  { %6442 = vrcp.f32 %v3991_v61  ;;  %v4003_v32 = vand.u32 2147483648, %v3991_v61  ;;  %vm3997_vm1 = vweird.f32 %v3991_v61  ;;  %v4001_v16 = vand.u32 2147483647, %v3991_v61 }
 0x776   :  { %v4004_v48 = vor.u32 1.1754944e-38, %v4003_v32  ;;  %vm4002_vm4 = vcmp.eq.f32.partialorder %v4001_v16, 8.507059e+37 }
 0x777   :  { %v6439_v23 = vpop.eup %6438 }
 0x778   :  { %v6441_v7 = vpop.eup %6440  ;;  %v4010_v46 = vadd.f32 1.0, %v6439_v23 }
 0x779   :  { %v4030_v26 = vadd.f32 1.0, %v6441_v7 }
 0x77a   :  { %v6443_v9 = vpop.eup %6442  ;;  %6444 = vrcp.f32 %v4010_v46  ;;  %v4022_v31 = vand.u32 2147483648, %v4010_v46  ;;  %v4020_v40 = vand.u32 2147483647, %v4010_v46  ;;  %vm4016_vm5 = vweird.f32 %v4010_v46 }
 0x77b   :  { %v3993_v30 = vmul.f32 %v6443_v9, %v3991_v61  ;;  %6446 = vrcp.f32 %v4030_v26  ;;  %vm3998_vm15 = vweird.f32 %v6443_v9  ;;  %v4042_v6 = vand.u32 2147483648, %v4030_v26 }
 0x77c   :  { %vm3999_vm2 = vmor %vm3997_vm1, %vm3998_vm15  ;;  %6448 = vtanh.f32 %v3986_v56  ;;  %v4023_v54 = vor.u32 1.1754944e-38, %v4022_v31  ;;  %vm4021_vm7 = vcmp.eq.f32.partialorder %v4020_v40, 8.507059e+37  ;;  %vm4036_vm9 = vweird.f32 %v4030_v26 }
 0x77d   :  { %v3994_v18 = vsub.f32 1.0, %v3993_v30  ;;  %v4040_v51 = vand.u32 2147483647, %v4030_v26  ;;  %v4043_v59 = vor.u32 1.1754944e-38, %v4042_v6 }
 0x77f   :  { %v3995_v47 = vmul.f32 %v6443_v9, %v3994_v18  ;;  %vm4041_vm11 = vcmp.eq.f32.partialorder %v4040_v51, 8.507059e+37 }
 0x780   :  { %v6445_v35 = vpop.eup %6444 }
 0x781   :  { %v6447_v34 = vpop.eup %6446  ;;  %v3996_v36 = vadd.f32 %v6443_v9, %v3995_v47  ;;  %v4012_v38 = vmul.f32 %v6445_v35, %v4010_v46  ;;  %vm4017_vm3 = vweird.f32 %v6445_v35 }
 0x782   :  { %v4032_v22 = vmul.f32 %v6447_v34, %v4030_v26  ;;  %vm4018_vm6 = vmor %vm4016_vm5, %vm4017_vm3  ;;  %v6449_v58 = vpop.eup %6448  ;;  %vm4037_vm8 = vweird.f32 %v6447_v34 }
 0x783   :  { %v4013_v10 = vsub.f32 1.0, %v4012_v38  ;;  %v4000_v42 = vsel %vm3999_vm2, %v6443_v9, %v3996_v36  ;;  %vm4038_vm10 = vmor %vm4036_vm9, %vm4037_vm8 }
 0x784   :  { %v4033_v13 = vsub.f32 1.0, %v4032_v22  ;;  %v4005_v49 = vsel %vm4002_vm4, %v4004_v48, %v4000_v42 }
 0x785   :  { %v4014_v44 = vmul.f32 %v6445_v35, %v4013_v10  ;;  %v4047_v37 = vmul.f32 %v6449_v58, %v4005_v49 }
 0x786   :  { %v4034_v41 = vmul.f32 %v6447_v34, %v4033_v13 }
 0x787   :  { %v4015_v50 = vadd.f32 %v6445_v35, %v4014_v44 }
 0x788   :  { %v4035_v53 = vadd.f32 %v6447_v34, %v4034_v41 }
 0x789   :  { %v4019_v21 = vsel %vm4018_vm6, %v6445_v35, %v4015_v50 }
 0x78a   :  { %v4024_v20 = vsel %vm4021_vm7, %v4023_v54, %v4019_v21  ;;  %v4039_v62 = vsel %vm4038_vm10, %v6447_v34, %v4035_v53 }
 0x78b   :  { %v4046_v55 = vmul.f32 %v4024_v20, %v7377_v14  ;;  %v4044_v60 = vsel %vm4041_vm11, %v4043_v59, %v4039_v62  ;;  %v6342_v14 = vld [vmem:[%s7552_s12 + $0x2] ss:$0 sm:$0xff] }
 0x78d   :  { %v4048_v57 = vadd.f32 %v4047_v37, %v4046_v55 }
 0x78f   :  { %6450 = vtanh.f32 %v4048_v57 }
 0x795   :  { %v6451_v39 = vpop.eup %6450 }
 0x796   :  { %v4050_v63 = vmul.f32 %v6451_v39, %v4044_v60 }
 0x798   :  { %v4068_v0 = vpack.c.bf16 %v4050_v63, %v4050_v63 }
 0x79a   :  { %4130 = vmatmul.bf16.vlgmr.msra.gmra.mxu1 %v4068_v0 }
 0x817   :  { %v4131_v5 = vpop.f32.mrf.mxu1 }
 0x818   :  { %v4132_v2 = vadd.f32 %v6342_v14, %v4131_v5 }
 0x81a   :  { %v4135_v24 = vmax.f32 %v4132_v2, 0.0 }
 0x81c   :  { %v4145_v3 = vpack.c.bf16 %v4135_v24, %v4135_v24 }
 0x81e   :  { %5919 = vmatmul.msk.bf16.vlgmr.msra.gmra.mxu3 %vm1477_vm14, %v4145_v3 }
 0x81f   :  { %v4133_v27 = vpop.f32.mrf.mxu1 }
 0x8a1   :  { %v4187_v43 = vpop.f32.mrf.mxu3 }
 0x8a2   :  { %v4188_v8 = vadd.f32 %v6343_v52, %v4187_v43 }
 0x8a4   :  { %5920 = vst [vmem:[%s7555_s15 + $0x10] sm:$0xff] %v4188_v8 }
 0x8a9   :  { %v4189_v12 = vpop.f32.mrf.mxu3 }
 0x8aa   :  { %4197 = vsyncpa [#allocation3], 1 }
 0x8ab   :  { %4198 = vsyncpa [#allocation5], 1 }
 0x8ac   :  { %4199 = vsyncpa [#allocation8], 1 }
 0x8ad   :  { %4200 = vsyncpa [#allocation11], 1 }

</bundles_post_ra>
